<compile_context>
chip_gen: v6e
topology: v6e:2x2x1
jax: 0.10.0
libtpu: 0.0.40
codegen_flags: <defaults>
</compile_context>

<pallas_src>
import functools

import jax
import jax.numpy as jnp
from jax.experimental import pallas as pl
from jax.experimental.pallas import tpu as pltpu

LANES = 128
SUBLANES = 8


def _round_up(v, m):
    return (v + m - 1) // m * m


def _fused_resblock_kernel(lhs1_ref, w1ds_ref, w2_ref, b1_ref, b2_ref,
                           mask_ref, o_ref, *, Wp):
    """One image of the fused BasicResBlock on a flattened padded grid.

    lhs1_ref : (1, Np, K1p)   bf16  im2col(x): 9 taps * Cin packed into lanes
    w1ds_ref : (K1p, 2*Cp)    bf16  [ conv1*BN1-scale | 1x1-downsample*BNds-scale ]
    w2_ref   : (9, Cp, Cp)    bf16  conv2*BN2-scale, one (Cp,Cp) matrix per tap
    b1_ref   : (1, Cp)        f32   folded BN1 bias
    b2_ref   : (1, Cp)        f32   folded BN2 bias + downsample BN bias
    mask_ref : (Np, 1)        f32   1.0 on interior pixels of the padded grid
    o_ref    : (1, No, Cp)    bf16  No = H*Wp (valid rows only)
    """
    no = o_ref.shape[1]
    cp = o_ref.shape[2]
    np_rows = lhs1_ref.shape[1]

    lhs1 = lhs1_ref[0]                                        # (Np, K1p) bf16

    # conv1 (+BN1 scale) and the 1x1 downsample (+BNds scale) in ONE MXU matmul.
    both = jnp.dot(lhs1, w1ds_ref[...],
                   preferred_element_type=jnp.float32)        # (Np, 2*Cp) f32
    ident = both[Wp:Wp + no, cp:]                             # downsample, valid rows

    # conv1 -> BN1 bias -> relu; zero the pad ring / pad columns so conv2 sees
    # exact zero padding (mask is (Np, 1), lane-broadcast in the multiply).
    y = jnp.maximum(both[:, :cp] + b1_ref[...], 0.0) * mask_ref[...]

    # +-1 column shifts of the flattened grid = two whole-buffer rolls (XLU),
    # off the accumulate path, reused by all 3 row offsets.  Row shifts are free
    # sublane-aligned static slices (Wp is a multiple of 8).  Roll wrap-around
    # only ever feeds pad-column outputs, which are discarded by the wrapper.
    y_c = y.astype(jnp.bfloat16)                                   # dx =  0
    y_p = pltpu.roll(y, np_rows - 1, axis=0).astype(jnp.bfloat16)  # [j] = y[j+1]
    y_m = pltpu.roll(y, 1, axis=0).astype(jnp.bfloat16)            # [j] = y[j-1]
    cols = (y_m, y_c, y_p)

    # conv2: straight sum of 9 dots into one f32 accumulator, seeded with the
    # downsample branch.  Nothing sits between each dot and its add.
    acc = ident
    for dy in (-1, 0, 1):
        for dx in (-1, 0, 1):
            t = (dy + 1) * 3 + (dx + 1)
            base = (dy + 1) * Wp
            lhs = cols[dx + 1][base:base + no, :]
            acc = acc + jnp.dot(lhs, w2_ref[t],
                                preferred_element_type=jnp.float32)

    o_ref[0] = jnp.maximum(acc + b2_ref[...], 0.0).astype(o_ref.dtype)


def basic_res_block_nhwc(x, p):
    """x: (B, H, W, Cin) float32.  Returns (B, H, W, Cout) bfloat16 (stride=1)."""
    B, H, W, Cin = x.shape
    Cout = p["w1"].shape[-1]

    cp = _round_up(Cout, LANES)
    k1 = 9 * Cin
    k1p = _round_up(k1, LANES)
    Wp = _round_up(W + 2, SUBLANES)       # padded width (>= W + 2), sublane aligned
    Hp = H + 2
    Np = Hp * Wp                          # rows of the padded, flattened grid
    No = H * Wp                           # rows actually stored (valid rows only)

    f32 = jnp.float32

    # ---- fold BN scales into weights; pack conv1 taps + downsample into lanes ----
    w1 = (p["w1"] * p["s1"].reshape(1, 1, 1, -1)).reshape(k1, Cout)
    wds = p["wds"] * p["sds"].reshape(1, -1)
    w1p = jnp.zeros((k1p, cp), f32).at[:k1, :Cout].set(w1)
    wdsp = jnp.zeros((k1p, cp), f32).at[4 * Cin:5 * Cin, :Cout].set(wds)  # center tap
    w1ds = jnp.concatenate([w1p, wdsp], axis=1).astype(jnp.bfloat16)      # (k1p, 2*cp)

    w2 = (p["w2"] * p["s2"].reshape(1, 1, 1, -1)).reshape(9, Cout, Cout)
    w2b = jnp.zeros((9, cp, cp), f32).at[:, :Cout, :Cout].set(w2).astype(jnp.bfloat16)

    b1 = jnp.zeros((1, cp), f32).at[:, :Cout].set(p["b1"].reshape(-1))
    b2 = jnp.zeros((1, cp), f32).at[:, :Cout].set((p["b2"] + p["bds"]).reshape(-1))

    # interior mask of the padded flat grid, (Np, 1): rows 1..H, cols 1..W valid
    rr = jnp.arange(Hp)[:, None]
    cc = jnp.arange(Wp)[None, :]
    mask = ((rr >= 1) & (rr <= H) & (cc >= 1) & (cc <= W)).reshape(Np, 1).astype(f32)

    # ---- im2col of x: 9 shifted taps concatenated along channels (lanes) ----
    canvas = jnp.zeros((B, Hp + 2, Wp + 2, Cin), x.dtype)
    canvas = canvas.at[:, 2:H + 2, 2:W + 2, :].set(x)
    taps = [canvas[:, 1 + dy:1 + dy + Hp, 1 + dx:1 + dx + Wp, :]
            for dy in (-1, 0, 1) for dx in (-1, 0, 1)]
    lhs1 = jnp.concatenate(taps, axis=-1)                     # (B, Hp, Wp, 9*Cin)
    lhs1 = jnp.pad(lhs1, ((0, 0), (0, 0), (0, 0), (0, k1p - k1)))
    lhs1 = lhs1.reshape(B, Np, k1p).astype(jnp.bfloat16)

    kernel = functools.partial(_fused_resblock_kernel, Wp=Wp)

    out_flat = pl.pallas_call(
        kernel,
        out_shape=jax.ShapeDtypeStruct((B, No, cp), jnp.bfloat16),
        grid=(B,),
        in_specs=[
            pl.BlockSpec((1, Np, k1p), lambda b: (b, 0, 0)),        # im2col(x)
            pl.BlockSpec((k1p, 2 * cp), lambda b: (0, 0)),          # [w1 | wds]
            pl.BlockSpec((9, cp, cp), lambda b: (0, 0, 0)),         # w2 (resident)
            pl.BlockSpec((1, cp), lambda b: (0, 0)),                # b1
            pl.BlockSpec((1, cp), lambda b: (0, 0)),                # b2 + bds
            pl.BlockSpec((Np, 1), lambda b: (0, 0)),                # interior mask
        ],
        out_specs=pl.BlockSpec((1, No, cp), lambda b: (b, 0, 0)),
        compiler_params=pltpu.CompilerParams(
            dimension_semantics=("parallel",)),
    )(lhs1, w1ds, w2b, b1, b2, mask)

    # stored rows are padded-grid rows 1..H; drop pad columns & pad channels.
    # (pad columns of out_flat hold garbage -- never consume out_flat directly.)
    out = out_flat.reshape(B, H, Wp, cp)[:, :, 1:W + 1, :Cout]
    return out


def _fold_bn(gamma, beta, mean, var, eps=1e-5):
    s = gamma / jnp.sqrt(var + eps)
    b = beta - mean * s
    return s.reshape(1, -1), b.reshape(1, -1)


def _make_bn_params(key, c):
    k1, k2, k3, k4 = jax.random.split(key, 4)
    gamma = 1.0 + 0.1 * jax.random.normal(k1, (c,), jnp.float32)
    beta = 0.1 * jax.random.normal(k2, (c,), jnp.float32)
    mean = 0.1 * jax.random.normal(k3, (c,), jnp.float32)
    var = 1.0 + 0.1 * jnp.abs(jax.random.normal(k4, (c,), jnp.float32))
    return _fold_bn(gamma, beta, mean, var)


def _reference_nhwc(x, p):
    """Pure-JAX reference with the SAME bf16 quantization of weights/activations."""
    def q(a):
        return a.astype(jnp.bfloat16).astype(jnp.float32)

    def conv(v, w):
        return jax.lax.conv_general_dilated(
            v, w, window_strides=(1, 1), padding="SAME",
            dimension_numbers=("NHWC", "HWIO", "NHWC"),
            precision=jax.lax.Precision.HIGHEST)

    w1 = q(p["w1"] * p["s1"].reshape(1, 1, 1, -1))
    w2 = q(p["w2"] * p["s2"].reshape(1, 1, 1, -1))
    wds = q(p["wds"] * p["sds"].reshape(1, -1))
    xq = q(x)
    y = jnp.maximum(conv(xq, w1) + p["b1"].reshape(1, 1, 1, -1), 0.0)
    main = conv(q(y), w2) + p["b2"].reshape(1, 1, 1, -1)
    ident = conv(xq, wds[None, None]) + p["bds"].reshape(1, 1, 1, -1)
    return jnp.maximum(main + ident, 0.0)


if __name__ == "__main__":
    key = jax.random.PRNGKey(0)
    B, Cin, Cout, H, W = 2, 4, 8, 16, 16   # stride=1, Cin != Cout -> downsample branch

    keys = jax.random.split(key, 8)
    # PyTorch-style NCHW input, transposed to NHWC for the kernel.
    x_nchw = jax.random.normal(keys[0], (B, Cin, H, W), jnp.float32)
    x = jnp.transpose(x_nchw, (0, 2, 3, 1))

    s1, b1 = _make_bn_params(keys[3], Cout)
    s2, b2 = _make_bn_params(keys[4], Cout)
    sds, bds = _make_bn_params(keys[5], Cout)
    params = {
        "w1": 0.1 * jax.random.normal(keys[1], (3, 3, Cin, Cout), jnp.float32),
        "w2": 0.1 * jax.random.normal(keys[2], (3, 3, Cout, Cout), jnp.float32),
        "wds": 0.1 * jax.random.normal(keys[6], (Cin, Cout), jnp.float32),
        "s1": s1, "b1": b1, "s2": s2, "b2": b2, "sds": sds, "bds": bds,
    }

    fwd = jax.jit(basic_res_block_nhwc)
    out_nhwc = jax.block_until_ready(fwd(x, params))
    ref_nhwc = jax.block_until_ready(_reference_nhwc(x, params))

    # Kernel stores bf16; quantize the reference the same way.  Remaining
    # differences are f32 accumulation order -> at most ~1 bf16 ulp.
    out_f32 = out_nhwc.astype(jnp.float32)
    ref_q = ref_nhwc.astype(jnp.bfloat16).astype(jnp.float32)
    if not jnp.allclose(out_f32, ref_q, atol=2e-2, rtol=2e-2):
        err = float(jnp.max(jnp.abs(out_f32 - ref_q)))
        raise AssertionError(
            f"Pallas BasicResBlock mismatch vs reference (max abs err {err})")

    # back to PyTorch NCHW layout
    out_nchw = jnp.transpose(out_f32, (0, 3, 1, 2))
    assert out_nchw.shape == (B, Cout, H, W)
    print("KERNEL_OK")
</pallas_src>

<mosaic_0001>
module attributes {stable_mosaic.version = 11 : i64} {
  func.func @_fused_resblock_kernel(%arg0: i32, %arg1: memref<1x432x128xbf16, #tpu.memory_space<vmem>>, %arg2: memref<128x256xbf16, #tpu.memory_space<vmem>>, %arg3: memref<9x128x128xbf16, #tpu.memory_space<vmem>>, %arg4: memref<1x128xf32, #tpu.memory_space<vmem>>, %arg5: memref<1x128xf32, #tpu.memory_space<vmem>>, %arg6: memref<432x1xf32, #tpu.memory_space<vmem>>, %arg7: memref<1x384x128xbf16, #tpu.memory_space<vmem>>) attributes {dimension_semantics = [#tpu.dimension_semantics<parallel>], iteration_bounds = array<i64: 2>, scalar_prefetch = 0 : i64, scratch_operands = 0 : i64, tpu.core_type = #tpu.core_type<tc>, window_params = [{transform_indices = @transform_0, window_bounds = array<i64: 1, 432, 128>}, {pipeline_mode = #tpu.pipeline_mode<synchronous>, transform_indices = @transform_1, window_bounds = array<i64: 128, 256>}, {pipeline_mode = #tpu.pipeline_mode<synchronous>, transform_indices = @transform_2, window_bounds = array<i64: 9, 128, 128>}, {pipeline_mode = #tpu.pipeline_mode<synchronous>, transform_indices = @transform_3, window_bounds = array<i64: 1, 128>}, {pipeline_mode = #tpu.pipeline_mode<synchronous>, transform_indices = @transform_4, window_bounds = array<i64: 1, 128>}, {pipeline_mode = #tpu.pipeline_mode<synchronous>, transform_indices = @transform_5, window_bounds = array<i64: 432, 1>}, {transform_indices = @transform_6, window_bounds = array<i64: 1, 384, 128>}]} {
    %c0 = arith.constant 0 : index
    %c0_0 = arith.constant 0 : index
    %c0_1 = arith.constant 0 : index
    %0 = vector.load %arg1[%c0, %c0_0, %c0_1] : memref<1x432x128xbf16, #tpu.memory_space<vmem>>, vector<1x432x128xbf16>
    %1 = vector.shape_cast %0 : vector<1x432x128xbf16> to vector<432x128xbf16>
    %c0_2 = arith.constant 0 : index
    %c0_3 = arith.constant 0 : index
    %2 = vector.load %arg2[%c0_2, %c0_3] : memref<128x256xbf16, #tpu.memory_space<vmem>>, vector<128x256xbf16>
    %cst = arith.constant dense<0.000000e+00> : vector<432x256xf32>
    %3 = tpu.matmul %1, %2, %cst {dimension_numbers = #tpu.dot_dimension_numbers<[1], [0], [0], [1], [0, 0, 1, 1], [], []>} : vector<432x128xbf16>, vector<128x256xbf16>, vector<432x256xf32> -> vector<432x256xf32>
    %4 = vector.extract_strided_slice %3 {offsets = [24, 128], sizes = [384, 128], strides = [1, 1]} : vector<432x256xf32> to vector<384x128xf32>
    %5 = vector.extract_strided_slice %3 {offsets = [0, 0], sizes = [432, 128], strides = [1, 1]} : vector<432x256xf32> to vector<432x128xf32>
    %c0_4 = arith.constant 0 : index
    %c0_5 = arith.constant 0 : index
    %6 = vector.load %arg4[%c0_4, %c0_5] : memref<1x128xf32, #tpu.memory_space<vmem>>, vector<1x128xf32>
    %7 = vector.broadcast %6 : vector<1x128xf32> to vector<432x128xf32>
    %8 = arith.addf %5, %7 : vector<432x128xf32>
    %cst_6 = arith.constant 0.000000e+00 : f32
    %9 = vector.broadcast %cst_6 : f32 to vector<432x128xf32>
    %10 = arith.maximumf %8, %9 : vector<432x128xf32>
    %c0_7 = arith.constant 0 : index
    %c0_8 = arith.constant 0 : index
    %11 = vector.load %arg6[%c0_7, %c0_8] : memref<432x1xf32, #tpu.memory_space<vmem>>, vector<432x1xf32>
    %12 = vector.broadcast %11 : vector<432x1xf32> to vector<432x128xf32>
    %13 = arith.mulf %10, %12 : vector<432x128xf32>
    %14 = arith.truncf %13 : vector<432x128xf32> to vector<432x128xbf16>
    %c431_i32 = arith.constant 431 : i32
    %15 = tpu.dynamic_rotate %13 by %c431_i32 dim 0 : vector<432x128xf32>, i32 -> vector<432x128xf32>
    %16 = arith.truncf %15 : vector<432x128xf32> to vector<432x128xbf16>
    %c1_i32 = arith.constant 1 : i32
    %17 = tpu.dynamic_rotate %13 by %c1_i32 dim 0 : vector<432x128xf32>, i32 -> vector<432x128xf32>
    %18 = arith.truncf %17 : vector<432x128xf32> to vector<432x128xbf16>
    %19 = vector.extract_strided_slice %18 {offsets = [0, 0], sizes = [384, 128], strides = [1, 1]} : vector<432x128xbf16> to vector<384x128xbf16>
    %c0_9 = arith.constant 0 : index
    %c0_10 = arith.constant 0 : index
    %c0_11 = arith.constant 0 : index
    %20 = vector.load %arg3[%c0_9, %c0_10, %c0_11] : memref<9x128x128xbf16, #tpu.memory_space<vmem>>, vector<1x128x128xbf16>
    %21 = vector.shape_cast %20 : vector<1x128x128xbf16> to vector<128x128xbf16>
    %cst_12 = arith.constant dense<0.000000e+00> : vector<384x128xf32>
    %22 = tpu.matmul %19, %21, %cst_12 {dimension_numbers = #tpu.dot_dimension_numbers<[1], [0], [0], [1], [0, 0, 1, 1], [], []>} : vector<384x128xbf16>, vector<128x128xbf16>, vector<384x128xf32> -> vector<384x128xf32>
    %23 = arith.addf %4, %22 : vector<384x128xf32>
    %24 = vector.extract_strided_slice %14 {offsets = [0, 0], sizes = [384, 128], strides = [1, 1]} : vector<432x128xbf16> to vector<384x128xbf16>
    %c1 = arith.constant 1 : index
    %c0_13 = arith.constant 0 : index
    %c0_14 = arith.constant 0 : index
    %25 = vector.load %arg3[%c1, %c0_13, %c0_14] : memref<9x128x128xbf16, #tpu.memory_space<vmem>>, vector<1x128x128xbf16>
    %26 = vector.shape_cast %25 : vector<1x128x128xbf16> to vector<128x128xbf16>
    %cst_15 = arith.constant dense<0.000000e+00> : vector<384x128xf32>
    %27 = tpu.matmul %24, %26, %cst_15 {dimension_numbers = #tpu.dot_dimension_numbers<[1], [0], [0], [1], [0, 0, 1, 1], [], []>} : vector<384x128xbf16>, vector<128x128xbf16>, vector<384x128xf32> -> vector<384x128xf32>
    %28 = arith.addf %23, %27 : vector<384x128xf32>
    %29 = vector.extract_strided_slice %16 {offsets = [0, 0], sizes = [384, 128], strides = [1, 1]} : vector<432x128xbf16> to vector<384x128xbf16>
    %c2 = arith.constant 2 : index
    %c0_16 = arith.constant 0 : index
    %c0_17 = arith.constant 0 : index
    %30 = vector.load %arg3[%c2, %c0_16, %c0_17] : memref<9x128x128xbf16, #tpu.memory_space<vmem>>, vector<1x128x128xbf16>
    %31 = vector.shape_cast %30 : vector<1x128x128xbf16> to vector<128x128xbf16>
    %cst_18 = arith.constant dense<0.000000e+00> : vector<384x128xf32>
    %32 = tpu.matmul %29, %31, %cst_18 {dimension_numbers = #tpu.dot_dimension_numbers<[1], [0], [0], [1], [0, 0, 1, 1], [], []>} : vector<384x128xbf16>, vector<128x128xbf16>, vector<384x128xf32> -> vector<384x128xf32>
    %33 = arith.addf %28, %32 : vector<384x128xf32>
    %34 = vector.extract_strided_slice %18 {offsets = [24, 0], sizes = [384, 128], strides = [1, 1]} : vector<432x128xbf16> to vector<384x128xbf16>
    %c3 = arith.constant 3 : index
    %c0_19 = arith.constant 0 : index
    %c0_20 = arith.constant 0 : index
    %35 = vector.load %arg3[%c3, %c0_19, %c0_20] : memref<9x128x128xbf16, #tpu.memory_space<vmem>>, vector<1x128x128xbf16>
    %36 = vector.shape_cast %35 : vector<1x128x128xbf16> to vector<128x128xbf16>
    %cst_21 = arith.constant dense<0.000000e+00> : vector<384x128xf32>
    %37 = tpu.matmul %34, %36, %cst_21 {dimension_numbers = #tpu.dot_dimension_numbers<[1], [0], [0], [1], [0, 0, 1, 1], [], []>} : vector<384x128xbf16>, vector<128x128xbf16>, vector<384x128xf32> -> vector<384x128xf32>
    %38 = arith.addf %33, %37 : vector<384x128xf32>
    %39 = vector.extract_strided_slice %14 {offsets = [24, 0], sizes = [384, 128], strides = [1, 1]} : vector<432x128xbf16> to vector<384x128xbf16>
    %c4 = arith.constant 4 : index
    %c0_22 = arith.constant 0 : index
    %c0_23 = arith.constant 0 : index
    %40 = vector.load %arg3[%c4, %c0_22, %c0_23] : memref<9x128x128xbf16, #tpu.memory_space<vmem>>, vector<1x128x128xbf16>
    %41 = vector.shape_cast %40 : vector<1x128x128xbf16> to vector<128x128xbf16>
    %cst_24 = arith.constant dense<0.000000e+00> : vector<384x128xf32>
    %42 = tpu.matmul %39, %41, %cst_24 {dimension_numbers = #tpu.dot_dimension_numbers<[1], [0], [0], [1], [0, 0, 1, 1], [], []>} : vector<384x128xbf16>, vector<128x128xbf16>, vector<384x128xf32> -> vector<384x128xf32>
    %43 = arith.addf %38, %42 : vector<384x128xf32>
    %44 = vector.extract_strided_slice %16 {offsets = [24, 0], sizes = [384, 128], strides = [1, 1]} : vector<432x128xbf16> to vector<384x128xbf16>
    %c5 = arith.constant 5 : index
    %c0_25 = arith.constant 0 : index
    %c0_26 = arith.constant 0 : index
    %45 = vector.load %arg3[%c5, %c0_25, %c0_26] : memref<9x128x128xbf16, #tpu.memory_space<vmem>>, vector<1x128x128xbf16>
    %46 = vector.shape_cast %45 : vector<1x128x128xbf16> to vector<128x128xbf16>
    %cst_27 = arith.constant dense<0.000000e+00> : vector<384x128xf32>
    %47 = tpu.matmul %44, %46, %cst_27 {dimension_numbers = #tpu.dot_dimension_numbers<[1], [0], [0], [1], [0, 0, 1, 1], [], []>} : vector<384x128xbf16>, vector<128x128xbf16>, vector<384x128xf32> -> vector<384x128xf32>
    %48 = arith.addf %43, %47 : vector<384x128xf32>
    %49 = vector.extract_strided_slice %18 {offsets = [48, 0], sizes = [384, 128], strides = [1, 1]} : vector<432x128xbf16> to vector<384x128xbf16>
    %c6 = arith.constant 6 : index
    %c0_28 = arith.constant 0 : index
    %c0_29 = arith.constant 0 : index
    %50 = vector.load %arg3[%c6, %c0_28, %c0_29] : memref<9x128x128xbf16, #tpu.memory_space<vmem>>, vector<1x128x128xbf16>
    %51 = vector.shape_cast %50 : vector<1x128x128xbf16> to vector<128x128xbf16>
    %cst_30 = arith.constant dense<0.000000e+00> : vector<384x128xf32>
    %52 = tpu.matmul %49, %51, %cst_30 {dimension_numbers = #tpu.dot_dimension_numbers<[1], [0], [0], [1], [0, 0, 1, 1], [], []>} : vector<384x128xbf16>, vector<128x128xbf16>, vector<384x128xf32> -> vector<384x128xf32>
    %53 = arith.addf %48, %52 : vector<384x128xf32>
    %54 = vector.extract_strided_slice %14 {offsets = [48, 0], sizes = [384, 128], strides = [1, 1]} : vector<432x128xbf16> to vector<384x128xbf16>
    %c7 = arith.constant 7 : index
    %c0_31 = arith.constant 0 : index
    %c0_32 = arith.constant 0 : index
    %55 = vector.load %arg3[%c7, %c0_31, %c0_32] : memref<9x128x128xbf16, #tpu.memory_space<vmem>>, vector<1x128x128xbf16>
    %56 = vector.shape_cast %55 : vector<1x128x128xbf16> to vector<128x128xbf16>
    %cst_33 = arith.constant dense<0.000000e+00> : vector<384x128xf32>
    %57 = tpu.matmul %54, %56, %cst_33 {dimension_numbers = #tpu.dot_dimension_numbers<[1], [0], [0], [1], [0, 0, 1, 1], [], []>} : vector<384x128xbf16>, vector<128x128xbf16>, vector<384x128xf32> -> vector<384x128xf32>
    %58 = arith.addf %53, %57 : vector<384x128xf32>
    %59 = vector.extract_strided_slice %16 {offsets = [48, 0], sizes = [384, 128], strides = [1, 1]} : vector<432x128xbf16> to vector<384x128xbf16>
    %c8 = arith.constant 8 : index
    %c0_34 = arith.constant 0 : index
    %c0_35 = arith.constant 0 : index
    %60 = vector.load %arg3[%c8, %c0_34, %c0_35] : memref<9x128x128xbf16, #tpu.memory_space<vmem>>, vector<1x128x128xbf16>
    %61 = vector.shape_cast %60 : vector<1x128x128xbf16> to vector<128x128xbf16>
    %cst_36 = arith.constant dense<0.000000e+00> : vector<384x128xf32>
    %62 = tpu.matmul %59, %61, %cst_36 {dimension_numbers = #tpu.dot_dimension_numbers<[1], [0], [0], [1], [0, 0, 1, 1], [], []>} : vector<384x128xbf16>, vector<128x128xbf16>, vector<384x128xf32> -> vector<384x128xf32>
    %63 = arith.addf %58, %62 : vector<384x128xf32>
    %c0_37 = arith.constant 0 : index
    %c0_38 = arith.constant 0 : index
    %64 = vector.load %arg5[%c0_37, %c0_38] : memref<1x128xf32, #tpu.memory_space<vmem>>, vector<1x128xf32>
    %65 = vector.broadcast %64 : vector<1x128xf32> to vector<384x128xf32>
    %66 = arith.addf %63, %65 : vector<384x128xf32>
    %cst_39 = arith.constant 0.000000e+00 : f32
    %67 = vector.broadcast %cst_39 : f32 to vector<384x128xf32>
    %68 = arith.maximumf %66, %67 : vector<384x128xf32>
    %69 = arith.truncf %68 : vector<384x128xf32> to vector<384x128xbf16>
    %c0_40 = arith.constant 0 : index
    %c0_41 = arith.constant 0 : index
    %c0_42 = arith.constant 0 : index
    %70 = vector.load %arg7[%c0_40, %c0_41, %c0_42] : memref<1x384x128xbf16, #tpu.memory_space<vmem>>, vector<1x384x128xbf16>
    %71 = vector.shape_cast %70 : vector<1x384x128xbf16> to vector<384x128xbf16>
    %72 = vector.shape_cast %69 : vector<384x128xbf16> to vector<1x384x128xbf16>
    tpu.vector_store %arg7[%c0_40, %c0_41, %c0_42], %72 {strides = array<i32>} : memref<1x384x128xbf16, #tpu.memory_space<vmem>>, vector<1x384x128xbf16>,
    return
  }
  func.func @transform_0(%arg0: i32) -> (i32, i32, i32) {
    %c0_i32 = arith.constant 0 : i32
    %c0_i32_0 = arith.constant 0 : i32
    %c0_i32_1 = arith.constant 0 : i32
    return %arg0, %c0_i32, %c0_i32_0 : i32, i32, i32
  }
  func.func @transform_1(%arg0: i32) -> (i32, i32) {
    %c0_i32 = arith.constant 0 : i32
    %c0_i32_0 = arith.constant 0 : i32
    %c0_i32_1 = arith.constant 0 : i32
    return %c0_i32, %c0_i32_0 : i32, i32
  }
  func.func @transform_2(%arg0: i32) -> (i32, i32, i32) {
    %c0_i32 = arith.constant 0 : i32
    %c0_i32_0 = arith.constant 0 : i32
    %c0_i32_1 = arith.constant 0 : i32
    %c0_i32_2 = arith.constant 0 : i32
    return %c0_i32, %c0_i32_0, %c0_i32_1 : i32, i32, i32
  }
  func.func @transform_3(%arg0: i32) -> (i32, i32) {
    %c0_i32 = arith.constant 0 : i32
    %c0_i32_0 = arith.constant 0 : i32
    %c0_i32_1 = arith.constant 0 : i32
    return %c0_i32, %c0_i32_0 : i32, i32
  }
  func.func @transform_4(%arg0: i32) -> (i32, i32) {
    %c0_i32 = arith.constant 0 : i32
    %c0_i32_0 = arith.constant 0 : i32
    %c0_i32_1 = arith.constant 0 : i32
    return %c0_i32, %c0_i32_0 : i32, i32
  }
  func.func @transform_5(%arg0: i32) -> (i32, i32) {
    %c0_i32 = arith.constant 0 : i32
    %c0_i32_0 = arith.constant 0 : i32
    %c0_i32_1 = arith.constant 0 : i32
    return %c0_i32, %c0_i32_0 : i32, i32
  }
  func.func @transform_6(%arg0: i32) -> (i32, i32, i32) {
    %c0_i32 = arith.constant 0 : i32
    %c0_i32_0 = arith.constant 0 : i32
    %c0_i32_1 = arith.constant 0 : i32
    return %arg0, %c0_i32, %c0_i32_0 : i32, i32, i32
  }
}

</mosaic_0001>

<bundles_post_ra>
// kernel: basic_res_block_nhwc.1
= control target key start
LH: loop header
LB: loop body
LE: loop exit
PB: predicated region body
PF: predicated region fallthrough
CT: control target
= control target key end

     0   :  { %s6944_s21 = smov 0   ;;  %s9689_s0 = inlined_call_operand.vmem [shape: bf16[2,432,128], index: 0, kind: input, shape index: {}]   ;;  %s9690_s1 = inlined_call_operand.vmem [shape: bf16[128,256], index: 1, kind: input, shape index: {}]   ;;  %s9691_s2 = inlined_call_operand.vmem [shape: bf16[9,128,128], index: 2, kind: input, shape index: {}]   ;;  %s9692_s3 = inlined_call_operand.vmem [shape: f32[1,128], index: 3, kind: input, shape index: {}]   ;;  %s9693_s4 = inlined_call_operand.vmem [shape: f32[1,128], index: 4, kind: input, shape index: {}]   ;;  %s9694_s5 = inlined_call_operand.vmem [shape: f32[432,1], index: 5, kind: input, shape index: {}]   ;;  %s9695_s6 = inlined_call_operand.vmem [shape: bf16[2,384,128], index: 6, kind: output, shape index: {}]  }
   0x1 LB: > { %s5390_s22 = sadd.s32 4294967295, %s6906_s21   ;;  %p5394_p0 = scmp.ge.s32.totalorder %s6906_s21, 1  ;;  %s6906_s21 = sphi %s6944_s21, %s16_s21  }
   0x2   : > { %p212_p1 = scmp.lt.s32.totalorder %s6906_s21, 3 }
   0x4   : > { %p213_p2 = pnand %p5394_p0, %p212_p1 }
   0x6   : > { %216 = sbr.rel (%p213_p2) target bundleno = 1125 (0x465), region = 44 }
   0xb   : > { %v6776_v0 = vld [vmem:[%s9690_s1 + $0x74] ss:$8 sps:$4 sm:$0xff]   ;;  %p242_p3 = scmp.lt.s32.totalorder %s5390_s22, 1  ;;  %v6778_v1 = vld [vmem:[%s9690_s1 + $0x70] ss:$8 sps:$4 sm:$0xff]   ;;  %v6908_v2 = vmov 0  }
   0xc   : > { %597 = vmatprep.mubr.bf16.mxu0 %v6908_v2  ;;  %6775 = vset.pattern.permute.xlu1 %v6908_v2  ;;  %v6779_v3 = vld [vmem:[%s9690_s1 + $0x64] ss:$8 sps:$4 sm:$0xff]   ;;  %v6781_v4 = vld [vmem:[%s9690_s1 + $0x60] ss:$8 sps:$4 sm:$0xff]   ;;  %v6782_v5 = vld [vmem:[%s9690_s1 + $0x54] ss:$8 sps:$4 sm:$0xff]  }
   0xd   : > { %565 = vmatprep.subr.bf16.mxu0 %v6776_v0  ;;  %s10262_s22 = smov (!%p242_p3, %s5390_s22), 1  ;;  %6774 = vset.pattern.permute.xlu0 %v6908_v2  ;;  %v6784_v6 = vld [vmem:[%s9690_s1 + $0x50] ss:$8 sps:$4 sm:$0xff]   ;;  %v6785_v7 = vld [vmem:[%s9690_s1 + $0x44] ss:$8 sps:$4 sm:$0xff]   ;;  %vm2711_vm2 = vcmask 1043456  }
   0xe   : > { %566 = vmatpush1.bf16.msra.mxu0 %v6778_v1  ;;  %s6763_s9 = smul.u32 216, %s10262_s22  ;;  %v6787_v8 = vld [vmem:[%s9690_s1 + $0x40] ss:$8 sps:$4 sm:$0xff]   ;;  %v6788_v9 = vld [vmem:[%s9690_s1 + $0x34] ss:$8 sps:$4 sm:$0xff]  }
   0xf   : > { %567 = vmatprep.subr.bf16.mxu0 %v6779_v3  ;;  %v994_v10 = vld [vmem:[%s9694_s5 + $0x88] sm:$0xff]  ;;  %v992_v11 = vld [vmem:[%s9694_s5 + $0x78] sm:$0xff]  ;;  %v995_v12 = vld [vmem:[%s9694_s5 + $0x90] sm:$0xff] }
  0x10   : > { %s6982_s16 = scalar_lea.vmem %s9689_s0, %s6763_s9  ;;  %1118 = vperm.xlu1 %6775, %v994_v10   ;;  %1108 = vperm.xlu0 %6774, %v992_v11   ;;  %v6790_v13 = vld [vmem:[%s9690_s1 + $0x30] ss:$8 sps:$4 sm:$0xff]   ;;  %v993_v14 = vld [vmem:[%s9694_s5 + $0x80] sm:$0xff]  ;;  %v6794_v19 = vld [vmem:[%s9690_s1 + $0x14] ss:$8 sps:$4 sm:$0xff]  }
  0x11   : > { %v6791_v15 = vld [vmem:[%s9690_s1 + $0x24] ss:$8 sps:$4 sm:$0xff]   ;;  %v6793_v17 = vld [vmem:[%s9690_s1 + $0x20] ss:$8 sps:$4 sm:$0xff]   ;;  %v996_v18 = vld [vmem:[%s9694_s5 + $0x98] sm:$0xff] }
  0x12   : > { %568 = vmatpush1.bf16.msra.mxu0 %v6781_v4  ;;  %v997_v16 = vld [vmem:[%s9694_s5 + $0xa0] sm:$0xff]  ;;  %v6796_v20 = vld [vmem:[%s9690_s1 + $0x10] ss:$8 sps:$4 sm:$0xff]   ;;  %v998_v22 = vld [vmem:[%s9694_s5 + $0xa8] sm:$0xff] }
  0x13   : > { %569 = vmatprep.subr.bf16.mxu0 %v6782_v5  ;;  %v999_v21 = vld [vmem:[%s9694_s5 + $0xb0] sm:$0xff]  ;;  %v6797_v23 = vld [vmem:[%s9690_s1 + $0x4] ss:$8 sps:$4 sm:$0xff]   ;;  %v6799_v25 = vld [vmem:[%s9690_s1] ss:$8 sps:$4 sm:$0xff]  }
  0x14   : > { %1123 = vperm.xlu1 %6775, %v995_v12   ;;  %1113 = vperm.xlu0 %6774, %v993_v14   ;;  %v1001_v24 = vld [vmem:[%s9694_s5 + $0xc0] sm:$0xff]  ;;  %v1000_v26 = vld [vmem:[%s9694_s5 + $0xb8] sm:$0xff]  ;;  %v1003_v28 = vld [vmem:[%s9694_s5 + $0xd0] sm:$0xff] }
  0x15   : > { %v6800_v27 = vld [vmem:[%s6982_s16] sm:$0xff]   ;;  %v1002_v29 = vld [vmem:[%s9694_s5 + $0xc8] sm:$0xff]  ;;  %v1004_v31 = vld [vmem:[%s9694_s5 + $0xd8] sm:$0xff] }
  0x16   : > { %570 = vmatpush1.bf16.msra.mxu0 %v6784_v6  ;;  %v1005_v30 = vld [vmem:[%s9694_s5 + $0xe0] sm:$0xff]  ;;  %v6801_v32 = vld [vmem:[%s6982_s16 + $0x8] sm:$0xff]   ;;  %v1007_v33 = vld [vmem:[%s9694_s5 + $0xf0] sm:$0xff] }
  0x17   : > { %571 = vmatprep.subr.bf16.mxu0 %v6785_v7  ;;  %v1006_v34 = vld [vmem:[%s9694_s5 + $0xe8] sm:$0xff]  ;;  %v1009_v35 = vld [vmem:[%s9694_s5 + $0x100] sm:$0xff]  ;;  %v1008_v36 = vld [vmem:[%s9694_s5 + $0xf8] sm:$0xff] }
  0x18   : > { %1133 = vperm.xlu1 %6775, %v997_v16   ;;  %1128 = vperm.xlu0 %6774, %v996_v18   ;;  %v6802_v37 = vld [vmem:[%s6982_s16 + $0x10] sm:$0xff]   ;;  %v1010_v39 = vld [vmem:[%s9694_s5 + $0x108] sm:$0xff]  ;;  %v1013_v40 = vld [vmem:[%s9694_s5 + $0x120] sm:$0xff] }
  0x19   : > { %v1011_v38 = vld [vmem:[%s9694_s5 + $0x110] sm:$0xff]  ;;  %v1012_v41 = vld [vmem:[%s9694_s5 + $0x118] sm:$0xff]  ;;  %v1014_v44 = vld [vmem:[%s9694_s5 + $0x128] sm:$0xff] }
  0x1a   : > { %572 = vmatpush1.bf16.msra.mxu0 %v6787_v8  ;;  %v6803_v42 = vld [vmem:[%s6982_s16 + $0x18] sm:$0xff]   ;;  %v1015_v43 = vld [vmem:[%s9694_s5 + $0x130] sm:$0xff]  ;;  %v1017_v45 = vld [vmem:[%s9694_s5 + $0x140] sm:$0xff] }
  0x1b   : > { %573 = vmatprep.subr.bf16.mxu0 %v6788_v9  ;;  %v1016_v46 = vld [vmem:[%s9694_s5 + $0x138] sm:$0xff]  ;;  %v6804_v47 = vld [vmem:[%s6982_s16 + $0x20] sm:$0xff]   ;;  %v1019_v48 = vld [vmem:[%s9694_s5 + $0x150] sm:$0xff] }
  0x1c   : > { %1143 = vperm.xlu1 %6775, %v999_v21   ;;  %1138 = vperm.xlu0 %6774, %v998_v22   ;;  %v1018_v49 = vld [vmem:[%s9694_s5 + $0x148] sm:$0xff]  ;;  %v1021_v50 = vld [vmem:[%s9694_s5 + $0x160] sm:$0xff]  ;;  %v1020_v51 = vld [vmem:[%s9694_s5 + $0x158] sm:$0xff] }
  0x1d   : > { %v6805_v52 = vld [vmem:[%s6982_s16 + $0x28] sm:$0xff]   ;;  %v1023_v53 = vld [vmem:[%s9694_s5 + $0x170] sm:$0xff]  ;;  %v977_v55 = vld [vmem:[%s9694_s5] sm:$0xff] }
  0x1e   : > { %574 = vmatpush1.bf16.msra.mxu0 %v6790_v13  ;;  %v1022_v54 = vld [vmem:[%s9694_s5 + $0x168] sm:$0xff]  ;;  %v1024_v56 = vld [vmem:[%s9694_s5 + $0x178] sm:$0xff]  ;;  %v6806_v57 = vld [vmem:[%s6982_s16 + $0x30] sm:$0xff]  }
  0x1f   : > { %575 = vmatprep.subr.bf16.mxu0 %v6791_v15  ;;  %v979_v58 = vld [vmem:[%s9694_s5 + $0x10] sm:$0xff]  ;;  %v978_v59 = vld [vmem:[%s9694_s5 + $0x8] sm:$0xff]  ;;  %v981_v60 = vld [vmem:[%s9694_s5 + $0x20] sm:$0xff] }
  0x20   : > { %1153 = vperm.xlu1 %6775, %v1001_v24   ;;  %1148 = vperm.xlu0 %6774, %v1000_v26   ;;  %v980_v61 = vld [vmem:[%s9694_s5 + $0x18] sm:$0xff]  ;;  %v983_v63 = vld [vmem:[%s9694_s5 + $0x30] sm:$0xff]  ;;  %v982_v0 = vld [vmem:[%s9694_s5 + $0x28] sm:$0xff] }
  0x21   : > { %v6807_v62 = vld [vmem:[%s6982_s16 + $0x38] sm:$0xff]   ;;  %v985_v3 = vld [vmem:[%s9694_s5 + $0x40] sm:$0xff]  ;;  %v987_v5 = vld [vmem:[%s9694_s5 + $0x50] sm:$0xff] }
  0x22   : > { %576 = vmatpush1.bf16.msra.mxu0 %v6793_v17  ;;  %v984_v1 = vld [vmem:[%s9694_s5 + $0x38] sm:$0xff]  ;;  %v6808_v4 = vld [vmem:[%s6982_s16 + $0x40] sm:$0xff]   ;;  %v986_v6 = vld [vmem:[%s9694_s5 + $0x48] sm:$0xff] }
  0x23   : > { %577 = vmatprep.subr.bf16.mxu0 %v6794_v19  ;;  %v988_v7 = vld [vmem:[%s9694_s5 + $0x58] sm:$0xff]  ;;  %v989_v8 = vld [vmem:[%s9694_s5 + $0x60] sm:$0xff]  ;;  %v6809_v9 = vld [vmem:[%s6982_s16 + $0x48] sm:$0xff]  }
  0x24   : > { %1163 = vperm.xlu1 %6775, %v1003_v28   ;;  %1158 = vperm.xlu0 %6774, %v1002_v29   ;;  %v991_v10 = vld [vmem:[%s9694_s5 + $0x70] sm:$0xff]  ;;  %v990_v11 = vld [vmem:[%s9694_s5 + $0x68] sm:$0xff]  ;;  %v1025_v12 = vld [vmem:[%s9694_s5 + $0x180] sm:$0xff] }
  0x25   : > { %v1030_v13 = vld [vmem:[%s9694_s5 + $0x1a8] sm:$0xff]  ;;  %v6810_v14 = vld [vmem:[%s6982_s16 + $0x50] sm:$0xff]   ;;  %v1029_v17 = vld [vmem:[%s9694_s5 + $0x1a0] sm:$0xff] }
  0x26   : > { %578 = vmatpush1.bf16.msra.mxu0 %v6796_v20  ;;  %v1027_v15 = vld [vmem:[%s9694_s5 + $0x190] sm:$0xff]  ;;  %v1026_v16 = vld [vmem:[%s9694_s5 + $0x188] sm:$0xff]  ;;  %v1028_v18 = vld [vmem:[%s9694_s5 + $0x198] sm:$0xff] }
  0x27   : > { %579 = vmatprep.subr.bf16.mxu0 %v6797_v23  ;;  %v6811_v19 = vld [vmem:[%s6982_s16 + $0x58] sm:$0xff]   ;;  %v6812_v20 = vld [vmem:[%s6982_s16 + $0x60] sm:$0xff]   ;;  %v6813_v21 = vld [vmem:[%s6982_s16 + $0x68] sm:$0xff]  }
  0x28   : > { %1173 = vperm.xlu1 %6775, %v1005_v30   ;;  %1168 = vperm.xlu0 %6774, %v1004_v31   ;;  %v6814_v26 = vld [vmem:[%s6982_s16 + $0x70] sm:$0xff]   ;;  %v6815_v30 = vld [vmem:[%s6982_s16 + $0x78] sm:$0xff]  }
  0x2a   : > { %580 = vmatpush1.bf16.msra.mxu0 %v6799_v25 }
  0x2c   : > { %1183 = vperm.xlu1 %6775, %v1007_v33   ;;  %1178 = vperm.xlu0 %6774, %v1006_v34   ;;  %v6828_v34 = vld [vmem:[%s9691_s2 + $0x30] sm:$0xff]  }
  0x2d   : > { %598 = vmatmul.mubr.bf16.vlgmr.msra.gmra.mxu0 %v6800_v27 }
  0x2e   : > { %605 = vmatprep.mubr.bf16.mxu0 %v6908_v2 }
  0x30   : > { %1193 = vperm.xlu1 %6775, %v1009_v35   ;;  %1188 = vperm.xlu0 %6774, %v1008_v36   ;;  %v6816_v35 = vld [vmem:[%s6982_s16 + $0x80] sm:$0xff]  }
  0x34   : > { %1203 = vperm.xlu1 %6775, %v1011_v38   ;;  %1198 = vperm.xlu0 %6774, %v1010_v39   ;;  %v6829_v38 = vld [vmem:[%s9691_s2 + $0x28] sm:$0xff]  }
  0x35   : > { %606 = vmatmul.mubr.bf16.gmra.mxu0 %v6801_v32  ;;  %v6827_v32 = vld [vmem:[%s9691_s2 + $0x38] sm:$0xff]  }
  0x36   : > { %614 = vmatprep.mubr.bf16.mxu0 %v6908_v2  ;;  %6747 = vmatprep.subr.bf16.mxu1 %v6827_v32 }
  0x37   : > { %6755 = vmatpush3.bf16.msra.mxu1 %v6827_v32  ;;  %6171 = vmatprep.subr.bf16.mxu0 %v6827_v32 }
  0x38   : > { %1213 = vperm.xlu1 %6775, %v1013_v40   ;;  %1208 = vperm.xlu0 %6774, %v1012_v41   ;;  %v6830_v40 = vld [vmem:[%s9691_s2 + $0x20] sm:$0xff]   ;;  %v6817_v41 = vld [vmem:[%s6982_s16 + $0x88] sm:$0xff]  }
  0x39   : > { %6172 = vmatpush3.bf16.msra.mxu0 %v6827_v32  ;;  %6748 = vmatprep.subr.bf16.mxu1 %v6828_v34 }
  0x3a   : > { %6173 = vmatprep.subr.bf16.mxu0 %v6828_v34 }
  0x3b   : > { %6756 = vmatpush3.bf16.msra.mxu1 %v6828_v34 }
  0x3c   : > { %1223 = vperm.xlu1 %6775, %v1015_v43   ;;  %1218 = vperm.xlu0 %6774, %v1014_v44   ;;  %v6831_v43 = vld [vmem:[%s9691_s2 + $0x18] sm:$0xff]  }
  0x3d   : > { %615 = vmatmul.mubr.bf16.gmra.mxu0 %v6802_v37  ;;  %6749 = vmatprep.subr.bf16.mxu1 %v6829_v38 }
  0x3e   : > { %624 = vmatprep.mubr.bf16.mxu0 %v6908_v2  ;;  %6174 = vmatpush3.bf16.msra.mxu0 %v6828_v34 }
  0x3f   : > { %6757 = vmatpush3.bf16.msra.mxu1 %v6829_v38  ;;  %6175 = vmatprep.subr.bf16.mxu0 %v6829_v38 }
  0x40   : > { %1233 = vperm.xlu1 %6775, %v1017_v45   ;;  %1228 = vperm.xlu0 %6774, %v1016_v46   ;;  %v6832_v46 = vld [vmem:[%s9691_s2 + $0x10] sm:$0xff]  }
  0x41   : > { %6750 = vmatprep.subr.bf16.mxu1 %v6830_v40 }
  0x42   : > { %6176 = vmatpush3.bf16.msra.mxu0 %v6829_v38 }
  0x43   : > { %6177 = vmatprep.subr.bf16.mxu0 %v6830_v40  ;;  %6758 = vmatpush3.bf16.msra.mxu1 %v6830_v40 }
  0x44   : > { %1243 = vperm.xlu1 %6775, %v1019_v48   ;;  %1238 = vperm.xlu0 %6774, %v1018_v49   ;;  %v6833_v49 = vld [vmem:[%s9691_s2 + $0x8] sm:$0xff]  }
  0x45   : > { %625 = vmatmul.mubr.bf16.gmra.mxu0 %v6803_v42  ;;  %6751 = vmatprep.subr.bf16.mxu1 %v6831_v43 }
  0x46   : > { %634 = vmatprep.mubr.bf16.mxu0 %v6908_v2  ;;  %6178 = vmatpush3.bf16.msra.mxu0 %v6830_v40 }
  0x47   : > { %6759 = vmatpush3.bf16.msra.mxu1 %v6831_v43  ;;  %6179 = vmatprep.subr.bf16.mxu0 %v6831_v43 }
  0x48   : > { %1253 = vperm.xlu1 %6775, %v1021_v50   ;;  %1248 = vperm.xlu0 %6774, %v1020_v51   ;;  %v6834_v51 = vld [vmem:[%s9691_s2] sm:$0xff]  }
  0x49   : > { %6752 = vmatprep.subr.bf16.mxu1 %v6832_v46 }
  0x4a   : > { %6180 = vmatpush3.bf16.msra.mxu0 %v6831_v43 }
  0x4b   : > { %6181 = vmatprep.subr.bf16.mxu0 %v6832_v46  ;;  %6760 = vmatpush3.bf16.msra.mxu1 %v6832_v46 }
  0x4c   : > { %1263 = vperm.xlu1 %6775, %v1023_v53   ;;  %1258 = vperm.xlu0 %6774, %v1022_v54  }
  0x4d   : > { %635 = vmatmul.mubr.bf16.gmra.mxu0 %v6804_v47  ;;  %v6818_v47 = vld [vmem:[%s6982_s16 + $0x90] sm:$0xff]   ;;  %6753 = vmatprep.subr.bf16.mxu1 %v6833_v49 }
  0x4e   : > { %644 = vmatprep.mubr.bf16.mxu0 %v6908_v2  ;;  %6182 = vmatpush3.bf16.msra.mxu0 %v6832_v46 }
  0x4f   : > { %6761 = vmatpush3.bf16.msra.mxu1 %v6833_v49  ;;  %6183 = vmatprep.subr.bf16.mxu0 %v6833_v49 }
  0x50   : > { %1033 = vperm.xlu1 %6775, %v977_v55   ;;  %1268 = vperm.xlu0 %6774, %v1024_v56   ;;  %v6820_v56 = vld [vmem:[%s6982_s16 + $0xa0] sm:$0xff]  }
  0x51   : > { %6754 = vmatprep.subr.bf16.mxu1 %v6834_v51 }
  0x52   : > { %6184 = vmatpush3.bf16.msra.mxu0 %v6833_v49 }
  0x53   : > { %6185 = vmatprep.subr.bf16.mxu0 %v6834_v51  ;;  %6762 = vmatpush3.bf16.msra.mxu1 %v6834_v51 }
  0x54   : > { %1043 = vperm.xlu1 %6775, %v979_v58   ;;  %1038 = vperm.xlu0 %6774, %v978_v59  }
  0x55   : > { %645 = vmatmul.mubr.bf16.gmra.mxu0 %v6805_v52  ;;  %v6819_v52 = vld [vmem:[%s6982_s16 + $0x98] sm:$0xff]  }
  0x56   : > { %654 = vmatprep.mubr.bf16.mxu0 %v6908_v2  ;;  %6186 = vmatpush3.bf16.msra.mxu0 %v6834_v51 }
  0x58   : > { %1053 = vperm.xlu1 %6775, %v981_v60   ;;  %1048 = vperm.xlu0 %6774, %v980_v61   ;;  %v6821_v60 = vld [vmem:[%s6982_s16 + $0xa8] sm:$0xff]  }
  0x5c   : > { %1063 = vperm.xlu1 %6775, %v983_v63   ;;  %1058 = vperm.xlu0 %6774, %v982_v0   ;;  %v6822_v63 = vld [vmem:[%s6982_s16 + $0xb0] sm:$0xff]  }
  0x5d   : > { %655 = vmatmul.mubr.bf16.gmra.mxu0 %v6806_v57 }
  0x5e   : > { %664 = vmatprep.mubr.bf16.mxu0 %v6908_v2 }
  0x60   : > { %1073 = vperm.xlu1 %6775, %v985_v3   ;;  %1068 = vperm.xlu0 %6774, %v984_v1  }
  0x64   : > { %1083 = vperm.xlu1 %6775, %v987_v5   ;;  %1078 = vperm.xlu0 %6774, %v986_v6  }
  0x65   : > { %665 = vmatmul.mubr.bf16.gmra.mxu0 %v6807_v62 }
  0x66   : > { %674 = vmatprep.mubr.bf16.mxu0 %v6908_v2 }
  0x68   : > { %1093 = vperm.xlu1 %6775, %v989_v8   ;;  %1088 = vperm.xlu0 %6774, %v988_v7   ;;  %v6824_v8 = vld [vmem:[%s6982_s16 + $0xc0] sm:$0xff]  }
  0x6c   : > { %1103 = vperm.xlu1 %6775, %v991_v10   ;;  %1098 = vperm.xlu0 %6774, %v990_v11   ;;  %v7313_v10 = vld [vmem:[%s9692_s3] ss:$0 sm:$0xff] }
  0x6d   : > { %675 = vmatmul.mubr.bf16.gmra.mxu0 %v6808_v4  ;;  %v6823_v4 = vld [vmem:[%s6982_s16 + $0xb8] sm:$0xff]  }
  0x6e   : > { %684 = vmatprep.mubr.bf16.mxu0 %v6908_v2 }
  0x70   : > { %1273 = vperm.xlu1 %6775, %v1025_v12   ;;  %1298 = vperm.xlu0 %6774, %v1030_v13  }
  0x74   : > { %1283 = vperm.xlu1 %6775, %v1027_v15   ;;  %1278 = vperm.xlu0 %6774, %v1026_v16   ;;  %v1436_v15 = vlaneseq }
  0x75   : > { %685 = vmatmul.mubr.bf16.gmra.mxu0 %v6809_v9 }
  0x76   : > { %694 = vmatprep.mubr.bf16.mxu0 %v6908_v2 }
  0x78   : > { %1293 = vperm.xlu1 %6775, %v1029_v17   ;;  %1288 = vperm.xlu0 %6774, %v1028_v18  }
  0x7d   : > { %695 = vmatmul.mubr.bf16.gmra.mxu0 %v6810_v14 }
  0x7e   : > { %704 = vmatprep.mubr.bf16.mxu0 %v6908_v2 }
  0x85   : > { %705 = vmatmul.mubr.bf16.gmra.mxu0 %v6811_v19  ;;  %v6825_v19 = vld [vmem:[%s6982_s16 + $0xc8] sm:$0xff]  }
  0x86   : > { %714 = vmatprep.mubr.bf16.mxu0 %v6908_v2 }
  0x8b   : > { %v7200_v22 = vpop.permute.xlu1 %1118  ;;  %v7202_v23 = vpop.permute.xlu0 %1108 }
  0x8d   : > { %715 = vmatmul.mubr.bf16.gmra.mxu0 %v6812_v20 }
  0x8e   : > { %724 = vmatprep.mubr.bf16.mxu0 %v6908_v2 }
  0x8f   : > { %v7205_v24 = vpop.permute.xlu1 %1123  ;;  %v7207_v25 = vpop.permute.xlu0 %1113 }
  0x93   : > { %v7210_v27 = vpop.permute.xlu0 %1128  ;;  %v7212_v28 = vpop.permute.xlu1 %1133 }
  0x95   : > { %725 = vmatmul.mubr.bf16.gmra.mxu0 %v6813_v21 }
  0x96   : > { %734 = vmatprep.mubr.bf16.mxu0 %v6908_v2 }
  0x97   : > { %v7215_v29 = vpop.permute.xlu0 %1138  ;;  %v7218_v31 = vpop.permute.xlu1 %1143 }
  0x9b   : > { %v7223_v33 = vpop.permute.xlu0 %1148  ;;  %v7230_v36 = vpop.permute.xlu1 %1153 }
  0x9d   : > { %735 = vmatmul.mubr.bf16.gmra.mxu0 %v6814_v26 }
  0x9e   : > { %744 = vmatprep.mubr.bf16.mxu0 %v6908_v2 }
  0x9f   : > { %v7232_v37 = vpop.permute.xlu0 %1158  ;;  %v7238_v39 = vpop.permute.xlu1 %1163 }
  0xa3   : > { %v7244_v42 = vpop.permute.xlu0 %1168  ;;  %v7249_v44 = vpop.permute.xlu1 %1173 }
  0xa5   : > { %745 = vmatmul.mubr.bf16.gmra.mxu0 %v6815_v30  ;;  %v7321_v30 = vshrl.u32 %v1436_v15, 7 }
  0xa6   : > { %754 = vmatprep.mubr.bf16.mxu0 %v6908_v2 }
  0xa7   : > { %v7252_v45 = vpop.permute.xlu0 %1178  ;;  %v7258_v48 = vpop.permute.xlu1 %1183  ;;  %vm1574_vm0 = vcmp.lt.s32.totalorder %v7321_v30, 1  ;;  %vm1438_vm1 = vcmp.lt.s32.totalorder %v7321_v30, 7  ;;  %v6856_v30 = vld [vmem:[%s9691_s2 + $0x90] sm:$0xff]  }
  0xab   : > { %v7263_v50 = vpop.permute.xlu0 %1188  ;;  %v7270_v53 = vpop.permute.xlu1 %1193 }
  0xad   : > { %755 = vmatmul.mubr.bf16.gmra.mxu0 %v6816_v35 }
  0xae   : > { %764 = vmatprep.mubr.bf16.mxu0 %v6908_v2 }
  0xaf   : > { %v7272_v54 = vpop.permute.xlu0 %1198  ;;  %v7275_v55 = vpop.permute.xlu1 %1203 }
  0xb3   : > { %v7278_v57 = vpop.permute.xlu0 %1208  ;;  %v7280_v58 = vpop.permute.xlu1 %1213 }
  0xb5   : > { %765 = vmatmul.mubr.bf16.gmra.mxu0 %v6817_v41 }
  0xb6   : > { %774 = vmatprep.mubr.bf16.mxu0 %v6908_v2 }
  0xb7   : > { %v7283_v59 = vpop.permute.xlu0 %1218  ;;  %v7286_v61 = vpop.permute.xlu1 %1223 }
  0xbb   : > { %v7288_v62 = vpop.permute.xlu0 %1228  ;;  %v7292_v0 = vpop.permute.xlu1 %1233 }
  0xbd   : > { %775 = vmatmul.mubr.bf16.gmra.mxu0 %v6818_v47 }
  0xbe   : > { %784 = vmatprep.mubr.bf16.mxu0 %v6908_v2 }
  0xbf   : > { %v7294_v1 = vpop.permute.xlu0 %1238  ;;  %v7297_v3 = vpop.permute.xlu1 %1243 }
  0xc3   : > { %v7300_v5 = vpop.permute.xlu0 %1248  ;;  %v7302_v6 = vpop.permute.xlu1 %1253 }
  0xc5   : > { %785 = vmatmul.mubr.bf16.gmra.mxu0 %v6819_v52 }
  0xc6   : > { %794 = vmatprep.mubr.bf16.mxu0 %v6908_v2 }
  0xc7   : > { %v7305_v7 = vpop.permute.xlu0 %1258  ;;  %v7308_v9 = vpop.permute.xlu1 %1263 }
  0xcb   : > { %v7315_v12 = vpop.permute.xlu0 %1268  ;;  %v1034_v17 = vpop.permute.xlu1 %1033 }
  0xcd   : > { %795 = vmatmul.mubr.bf16.gmra.mxu0 %v6820_v56 }
  0xce   : > { %804 = vmatprep.mubr.bf16.mxu0 %v6908_v2 }
  0xcf   : > { %v1039_v26 = vpop.permute.xlu0 %1038  ;;  %v1044_v43 = vpop.permute.xlu1 %1043 }
  0xd5   : > { %805 = vmatmul.mubr.bf16.gmra.mxu0 %v6821_v60  ;;  %v6826_v60 = vld [vmem:[%s6982_s16 + $0xd0] sm:$0xff]   ;;  %s6764_s16 = smul.u32 192, %s10262_s22 }
  0xd6   : > { %814 = vmatprep.mubr.bf16.mxu0 %v6908_v2 }
  0xd7   : > { %s9520_s14 = scalar_lea.vmem %s9695_s6, %s6764_s16 }
  0xdd   : > { %815 = vmatmul.mubr.bf16.gmra.mxu0 %v6822_v63 }
  0xde   : > { %824 = vmatprep.mubr.bf16.mxu0 %v6908_v2 }
  0xe5   : > { %825 = vmatmul.mubr.bf16.gmra.mxu0 %v6823_v4 }
  0xe6   : > { %834 = vmatprep.mubr.bf16.mxu0 %v6908_v2 }
  0xed   : > { %v599_v11 = vpop.f32.mrf.mxu0  ;;  %835 = vmatmul.mubr.bf16.gmra.mxu0 %v6824_v8 }
  0xee   : > { %v869_v13 = vadd.f32 %v7313_v10, %v599_v11  ;;  %844 = vmatprep.mubr.bf16.mxu0 %v6908_v2 }
  0xef   : > { %v601_v14 = vpop.f32.mrf.mxu0 }
  0xf0   : > { %v923_v16 = vmax.f32 %v869_v13, 0.0  ;;  %v1049_v13 = vpop.permute.xlu0 %1048 }
  0xf1   : > { %v602_v18 = vpop.f32.mrf.mxu0 }
  0xf2   : > { %v870_v20 = vadd.f32 %v7313_v10, %v602_v18  ;;  %v7323_v32 = vmul.f32 %v1034_v17, %v923_v16 }
  0xf3   : > { %v604_v21 = vpop.f32.mrf.mxu0 }
  0xf4   : > { %v924_v34 = vmax.f32 %v870_v20, 0.0  ;;  %v9697_v46 = vrot.slane %v7323_v32, 7  ;;  %v9696_v8 = vrot.slane %v7323_v32, 1 }
  0xf5   : > { %v607_v35 = vpop.f32.mrf.mxu0  ;;  %845 = vmatmul.mubr.bf16.gmra.mxu0 %v6825_v19 }
  0xf6   : > { %v7325_v38 = vmul.f32 %v1039_v26, %v924_v34  ;;  %v871_v40 = vadd.f32 %v7313_v10, %v607_v35  ;;  %853 = vmatprep.mubr.bf16.mxu0 %v6908_v2  ;;  %v1054_v35 = vpop.permute.xlu1 %1053 }
  0xf7   : > { %v609_v41 = vpop.f32.mrf.mxu0 }
  0xf8   : > { %v1521_v47 = vrot.slane %v7325_v38, 7  ;;  %v925_v49 = vmax.f32 %v871_v40, 0.0  ;;  %v1383_v52 = vrot.slane %v7325_v38, 1 }
  0xf9   : > { %v610_v56 = vpop.f32.mrf.mxu0 }
  0xfa   : > { %v1303_v63 = vmul.f32 %v1044_v43, %v925_v49  ;;  %v872_v4 = vadd.f32 %v7313_v10, %v610_v56  ;;  %v7342_v2 = vsel %vm1574_vm0, %v9697_v46, %v1521_v47  ;;  %v7351_v18 = vsel %vm1438_vm1, %v9696_v8, %v1383_v52 }
  0xfb   : > { %9801 = vst [vmem:[#allocation2_spill] sm:$0xff] %v7342_v2  ;;  %v7345_v11 = vpop.f32.mrf.mxu0  ;;  %9803 = vst [vmem:[#allocation4_spill] sm:$0xff] %v7351_v18 }
  0xfc   : > { %9802 = vst [vmem:[#allocation3_spill] sm:$0xff] %v7345_v11  ;;  %v1384_v14 = vrot.slane %v1303_v63, 1  ;;  %v1522_v15 = vrot.slane %v1303_v63, 7  ;;  %v926_v16 = vmax.f32 %v872_v4, 0.0 }
  0xfd   : > { %v616_v17 = vpop.f32.mrf.mxu0  ;;  %854 = vmatmul.mubr.bf16.gmra.mxu0 %v6826_v60 }
  0xfe   : > { %v1626_v19 = vsel %vm1574_vm0, %v1521_v47, %v1522_v15  ;;  %v1304_v20 = vmul.f32 %v1049_v13, %v926_v16  ;;  %v873_v21 = vadd.f32 %v7313_v10, %v616_v17  ;;  %v7358_v26 = vsel %vm1438_vm1, %v1383_v52, %v1384_v14  ;;  %v7369_v47 = vld [vmem:[%s9691_s2 + $0x78] sm:$0xff]  }
  0xff   : > { %9804 = vst [vmem:[#allocation5_spill] sm:$0xff] %v7358_v26  ;;  %v7360_v34 = vpop.f32.mrf.mxu0  ;;  %6235 = vmatprep.subr.bf16.mxu1 %v7369_v47 }
 0x100   : > { %9805 = vst [vmem:[#allocation6_spill] sm:$0xff] %v7360_v34  ;;  %v7364_v41 = vpack.c.bf16 %v1304_v20, %v1303_v63  ;;  %v1385_v43 = vrot.slane %v1304_v20, 1  ;;  %v1523_v49 = vrot.slane %v1304_v20, 7  ;;  %v927_v56 = vmax.f32 %v873_v21, 0.0  ;;  %v1059_v20 = vpop.permute.xlu0 %1058 }
 0x101   : > { %v620_v60 = vpop.f32.mrf.mxu0 }
 0x102   : > { %9806 = vst [vmem:[#allocation7_spill] sm:$0xff] %v7364_v41  ;;  %v1489_v52 = vsel %vm1438_vm1, %v1384_v14, %v1385_v43  ;;  %v1625_v4 = vsel %vm1574_vm0, %v1522_v15, %v1523_v49  ;;  %v1305_v13 = vmul.f32 %v1054_v35, %v927_v56  ;;  %v874_v16 = vadd.f32 %v7313_v10, %v620_v60  ;;  %v1064_v60 = vpop.permute.xlu1 %1063 }
 0x103   : > { %v7377_v63 = vpack.c.bf16 %v1625_v4, %v1626_v19  ;;  %v7379_v17 = vpop.f32.mrf.mxu0 }
 0x104   : > { %9808 = vst [vmem:[#allocation9_spill] sm:$0xff] %v7379_v17  ;;  %v1386_v21 = vrot.slane %v1305_v13, 1  ;;  %v1524_v40 = vrot.slane %v1305_v13, 7  ;;  %v928_v8 = vmax.f32 %v874_v16, 0.0 }
 0x105   : > { %9807 = vst [vmem:[#allocation8_spill] sm:$0xff] %v7377_v63  ;;  %v626_v46 = vpop.f32.mrf.mxu0 }
 0x106   : > { %v1488_v14 = vsel %vm1438_vm1, %v1385_v43, %v1386_v21  ;;  %v1306_v51 = vmul.f32 %v1059_v20, %v928_v8  ;;  %v875_v15 = vadd.f32 %v7313_v10, %v626_v46  ;;  %v1624_v35 = vsel %vm1574_vm0, %v1523_v49, %v1524_v40  ;;  %v1069_v49 = vpop.permute.xlu0 %1068 }
 0x107   : > { %v7386_v56 = vpack.c.bf16 %v1488_v14, %v1489_v52  ;;  %v7388_v19 = vpop.f32.mrf.mxu0 }
 0x108   : > { %9810 = vst [vmem:[#allocation11_spill] sm:$0xff] %v7388_v19  ;;  %v1387_v4 = vrot.slane %v1306_v51, 1  ;;  %v1525_v34 = vrot.slane %v1306_v51, 7  ;;  %v929_v11 = vmax.f32 %v875_v15, 0.0  ;;  %v7390_v17 = vpack.c.bf16 %v1306_v51, %v1305_v13 }
 0x109   : > { %9809 = vst [vmem:[#allocation10_spill] sm:$0xff] %v7386_v56  ;;  %v630_v16 = vpop.f32.mrf.mxu0 }
 0x10a   : > { %v1307_v18 = vmul.f32 %v1064_v60, %v929_v11  ;;  %v876_v43 = vadd.f32 %v7313_v10, %v630_v16  ;;  %v1623_v46 = vsel %vm1574_vm0, %v1524_v40, %v1525_v34  ;;  %v1487_v20 = vsel %vm1438_vm1, %v1386_v21, %v1387_v4  ;;  %v1074_v21 = vpop.permute.xlu1 %1073 }
 0x10b   : > { %v7395_v8 = vpop.f32.mrf.mxu0  ;;  %v7397_v52 = vpack.c.bf16 %v1623_v46, %v1624_v35  ;;  %v2712_v11 = vrot.slane %v7377_v63, 4 }
 0x10c   : > { %9811 = vst [vmem:[#allocation12_spill] sm:$0xff] %v7395_v8  ;;  %v1388_v14 = vrot.slane %v1307_v18, 1  ;;  %v1526_v19 = vrot.slane %v1307_v18, 7  ;;  %v930_v15 = vmax.f32 %v876_v43, 0.0 }
 0x10d   : > { %9812 = vst [vmem:[#allocation13_spill] sm:$0xff] %v7397_v52  ;;  %v636_v51 = vpop.f32.mrf.mxu0  ;;  %v9703_v13 = vrot.slane %v7397_v52, 4 }
 0x10e   : > { %v1308_v60 = vmul.f32 %v1069_v49, %v930_v15  ;;  %v877_v40 = vadd.f32 %v7313_v10, %v636_v51  ;;  %v1622_v16 = vsel %vm1574_vm0, %v1525_v34, %v1526_v19  ;;  %v1486_v35 = vsel %vm1438_vm1, %v1387_v4, %v1388_v14 }
 0x10f   : > { %v7408_v46 = vpop.f32.mrf.mxu0  ;;  %v7413_v43 = vsel %vm2711_vm2, %v2712_v11, %v9703_v13  ;;  %v7415_v8 = vpack.c.bf16 %v1486_v35, %v1487_v20  ;;  %v3584_v4 = vrot.slane %v7386_v56, 4  ;;  %v1079_v20 = vpop.permute.xlu0 %1078 }
 0x110   : > { %9813 = vst [vmem:[#allocation14_spill] sm:$0xff] %v7408_v46  ;;  %9814 = vst [vmem:[#allocation15_spill] sm:$0xff] %v7413_v43  ;;  %v1389_v26 = vrot.slane %v1308_v60, 1  ;;  %v1527_v49 = vrot.slane %v1308_v60, 7  ;;  %v931_v15 = vmax.f32 %v877_v40, 0.0  ;;  %v7417_v51 = vpack.c.bf16 %v1308_v60, %v1307_v18 }
 0x111   : > { %9815 = vst [vmem:[#allocation16_spill] sm:$0xff] %v7415_v8  ;;  %v640_v63 = vpop.f32.mrf.mxu0  ;;  %v9706_v34 = vrot.slane %v7415_v8, 4 }
 0x112   : > { %v1309_v2 = vmul.f32 %v1074_v21, %v931_v15  ;;  %v878_v46 = vadd.f32 %v7313_v10, %v640_v63  ;;  %v1621_v52 = vsel %vm1574_vm0, %v1526_v19, %v1527_v49  ;;  %v1485_v18 = vsel %vm1438_vm1, %v1388_v14, %v1389_v26  ;;  %v1084_v14 = vpop.permute.xlu1 %1083 }
 0x113   : > { %v7424_v11 = vpop.f32.mrf.mxu0  ;;  %v7426_v35 = vpack.c.bf16 %v1621_v52, %v1622_v16  ;;  %v7433_v60 = vsel %vm2711_vm2, %v3584_v4, %v9706_v34 }
 0x114   : > { %9816 = vst [vmem:[#allocation17_spill] sm:$0xff] %v7424_v11  ;;  %9818 = vst [vmem:[#allocation19_spill] sm:$0xff] %v7433_v60  ;;  %v1390_v40 = vrot.slane %v1309_v2, 1  ;;  %v1528_v21 = vrot.slane %v1309_v2, 7  ;;  %v932_v15 = vmax.f32 %v878_v46, 0.0 }
 0x115   : > { %9817 = vst [vmem:[#allocation18_spill] sm:$0xff] %v7426_v35  ;;  %v646_v63 = vpop.f32.mrf.mxu0 }
 0x116   : > { %v1310_v13 = vmul.f32 %v1079_v20, %v932_v15  ;;  %v879_v19 = vadd.f32 %v7313_v10, %v646_v63  ;;  %v1620_v11 = vsel %vm1574_vm0, %v1527_v49, %v1528_v21  ;;  %v1484_v52 = vsel %vm1438_vm1, %v1389_v26, %v1390_v40 }
 0x117   : > { %v7440_v16 = vpop.f32.mrf.mxu0  ;;  %v7442_v8 = vpack.c.bf16 %v1484_v52, %v1485_v18 }
 0x118   : > { %9819 = vst [vmem:[#allocation20_spill] sm:$0xff] %v7440_v16  ;;  %v1391_v4 = vrot.slane %v1310_v13, 1  ;;  %v1529_v34 = vrot.slane %v1310_v13, 7  ;;  %v933_v60 = vmax.f32 %v879_v19, 0.0  ;;  %v7444_v56 = vpack.c.bf16 %v1310_v13, %v1309_v2  ;;  %v1089_v16 = vpop.permute.xlu0 %1088 }
 0x119   : > { %9820 = vst [vmem:[#allocation21_spill] sm:$0xff] %v7442_v8  ;;  %v650_v46 = vpop.f32.mrf.mxu0 }
 0x11a   : > { %v1311_v20 = vmul.f32 %v1084_v14, %v933_v60  ;;  %v880_v15 = vadd.f32 %v7313_v10, %v650_v46  ;;  %v1619_v49 = vsel %vm1574_vm0, %v1528_v21, %v1529_v34  ;;  %v1483_v26 = vsel %vm1438_vm1, %v1390_v40, %v1391_v4  ;;  %v1094_v40 = vpop.permute.xlu1 %1093 }
 0x11b   : > { %v7451_v63 = vpop.f32.mrf.mxu0  ;;  %v7453_v18 = vpack.c.bf16 %v1619_v49, %v1620_v11 }
 0x11c   : > { %9821 = vst [vmem:[#allocation22_spill] sm:$0xff] %v7451_v63  ;;  %v1392_v52 = vrot.slane %v1311_v20, 1  ;;  %v1530_v8 = vrot.slane %v1311_v20, 7  ;;  %v934_v19 = vmax.f32 %v880_v15, 0.0 }
 0x11d   : > { %9822 = vst [vmem:[#allocation23_spill] sm:$0xff] %v7453_v18  ;;  %v656_v2 = vpop.f32.mrf.mxu0 }
 0x11e   : > { %v1312_v13 = vmul.f32 %v1089_v16, %v934_v19  ;;  %v881_v60 = vadd.f32 %v7313_v10, %v656_v2  ;;  %v1618_v14 = vsel %vm1574_vm0, %v1529_v34, %v1530_v8  ;;  %v1482_v21 = vsel %vm1438_vm1, %v1391_v4, %v1392_v52 }
 0x11f   : > { %v7460_v46 = vpop.f32.mrf.mxu0  ;;  %v7462_v63 = vpack.c.bf16 %v1482_v21, %v1483_v26 }
 0x120   : > { %9823 = vst [vmem:[#allocation24_spill] sm:$0xff] %v7460_v46  ;;  %v1393_v11 = vrot.slane %v1312_v13, 1  ;;  %v1531_v49 = vrot.slane %v1312_v13, 7  ;;  %v935_v43 = vmax.f32 %v881_v60, 0.0  ;;  %v7464_v18 = vpack.c.bf16 %v1312_v13, %v1311_v20  ;;  %v1099_v46 = vpop.permute.xlu0 %1098 }
 0x121   : > { %9824 = vst [vmem:[#allocation25_spill] sm:$0xff] %v7462_v63  ;;  %v660_v15 = vpop.f32.mrf.mxu0 }
 0x122   : > { %v1313_v16 = vmul.f32 %v1094_v40, %v935_v43  ;;  %v882_v19 = vadd.f32 %v7313_v10, %v660_v15  ;;  %v1617_v34 = vsel %vm1574_vm0, %v1530_v8, %v1531_v49  ;;  %v1481_v4 = vsel %vm1438_vm1, %v1392_v52, %v1393_v11  ;;  %v1104_v52 = vpop.permute.xlu1 %1103 }
 0x123   : > { %v7471_v2 = vpop.f32.mrf.mxu0  ;;  %v7473_v26 = vpack.c.bf16 %v1617_v34, %v1618_v14 }
 0x124   : > { %9825 = vst [vmem:[#allocation26_spill] sm:$0xff] %v7471_v2  ;;  %v1394_v21 = vrot.slane %v1313_v16, 1  ;;  %v1532_v63 = vrot.slane %v1313_v16, 7  ;;  %v936_v60 = vmax.f32 %v882_v19, 0.0 }
 0x125   : > { %9826 = vst [vmem:[#allocation27_spill] sm:$0xff] %v7473_v26  ;;  %v666_v20 = vpop.f32.mrf.mxu0 }
 0x126   : > { %v1314_v13 = vmul.f32 %v1099_v46, %v936_v60  ;;  %v883_v43 = vadd.f32 %v7313_v10, %v666_v20  ;;  %v1616_v40 = vsel %vm1574_vm0, %v1531_v49, %v1532_v63  ;;  %v1480_v8 = vsel %vm1438_vm1, %v1393_v11, %v1394_v21 }
 0x127   : > { %v7480_v15 = vpop.f32.mrf.mxu0  ;;  %v7482_v2 = vpack.c.bf16 %v1480_v8, %v1481_v4 }
 0x128   : > { %9827 = vst [vmem:[#allocation28_spill] sm:$0xff] %v7480_v15  ;;  %v1395_v14 = vrot.slane %v1314_v13, 1  ;;  %v1533_v34 = vrot.slane %v1314_v13, 7  ;;  %v937_v26 = vmax.f32 %v883_v43, 0.0  ;;  %v7484_v35 = vpack.c.bf16 %v1314_v13, %v1313_v16 }
 0x129   : > { %9828 = vst [vmem:[#allocation29_spill] sm:$0xff] %v7482_v2  ;;  %v670_v19 = vpop.f32.mrf.mxu0 }
 0x12a   : > { %v1315_v46 = vmul.f32 %v1104_v52, %v937_v26  ;;  %v884_v60 = vadd.f32 %v7313_v10, %v670_v19  ;;  %v1615_v49 = vsel %vm1574_vm0, %v1532_v63, %v1533_v34  ;;  %v1479_v11 = vsel %vm1438_vm1, %v1394_v21, %v1395_v14 }
 0x12b   : > { %v7491_v20 = vpop.f32.mrf.mxu0  ;;  %v7493_v15 = vpack.c.bf16 %v1615_v49, %v1616_v40 }
 0x12c   : > { %9829 = vst [vmem:[#allocation30_spill] sm:$0xff] %v7491_v20  ;;  %v1396_v4 = vrot.slane %v1315_v46, 1  ;;  %v1534_v8 = vrot.slane %v1315_v46, 7  ;;  %v938_v2 = vmax.f32 %v884_v60, 0.0 }
 0x12d   : > { %9830 = vst [vmem:[#allocation31_spill] sm:$0xff] %v7493_v15  ;;  %v676_v43 = vpop.f32.mrf.mxu0 }
 0x12e   : > { %v1316_v16 = vmul.f32 %v7202_v23, %v938_v2  ;;  %v885_v26 = vadd.f32 %v7313_v10, %v676_v43  ;;  %v1614_v13 = vsel %vm1574_vm0, %v1533_v34, %v1534_v8  ;;  %v1478_v63 = vsel %vm1438_vm1, %v1395_v14, %v1396_v4 }
 0x12f   : > { %v7501_v52 = vpop.f32.mrf.mxu0  ;;  %v7503_v21 = vpack.c.bf16 %v1478_v63, %v1479_v11 }
 0x130   : > { %9831 = vst [vmem:[#allocation32_spill] sm:$0xff] %v7501_v52  ;;  %v1397_v40 = vrot.slane %v1316_v16, 1  ;;  %v1535_v19 = vrot.slane %v1316_v16, 7  ;;  %v939_v49 = vmax.f32 %v885_v26, 0.0  ;;  %v7505_v20 = vpack.c.bf16 %v1316_v16, %v1315_v46 }
 0x131   : > { %9832 = vst [vmem:[#allocation33_spill] sm:$0xff] %v7503_v21  ;;  %v680_v60 = vpop.f32.mrf.mxu0 }
 0x132   : > { %v1317_v23 = vmul.f32 %v7207_v25, %v939_v49  ;;  %v886_v2 = vadd.f32 %v7313_v10, %v680_v60  ;;  %v1613_v34 = vsel %vm1574_vm0, %v1534_v8, %v1535_v19  ;;  %v1477_v14 = vsel %vm1438_vm1, %v1396_v4, %v1397_v40 }
 0x133   : > { %v7513_v43 = vpop.f32.mrf.mxu0  ;;  %v7515_v11 = vpack.c.bf16 %v1613_v34, %v1614_v13 }
 0x134   : > { %9833 = vst [vmem:[#allocation34_spill] sm:$0xff] %v7513_v43  ;;  %v1398_v63 = vrot.slane %v1317_v23, 1  ;;  %v940_v52 = vmax.f32 %v886_v2, 0.0  ;;  %v1536_v26 = vrot.slane %v1317_v23, 7 }
 0x135   : > { %9834 = vst [vmem:[#allocation35_spill] sm:$0xff] %v7515_v11  ;;  %v686_v46 = vpop.f32.mrf.mxu0 }
 0x136   : > { %v1318_v16 = vmul.f32 %v7200_v22, %v940_v52  ;;  %v887_v25 = vadd.f32 %v7313_v10, %v686_v46  ;;  %v1476_v49 = vsel %vm1438_vm1, %v1397_v40, %v1398_v63  ;;  %v1612_v2 = vsel %vm1574_vm0, %v1535_v19, %v1536_v26 }
 0x137   : > { %v7521_v60 = vpop.f32.mrf.mxu0  ;;  %v7523_v8 = vpack.c.bf16 %v1476_v49, %v1477_v14 }
 0x138   : > { %9835 = vst [vmem:[#allocation36_spill] sm:$0xff] %v7521_v60  ;;  %v1399_v4 = vrot.slane %v1318_v16, 1  ;;  %v1537_v21 = vrot.slane %v1318_v16, 7  ;;  %v941_v43 = vmax.f32 %v887_v25, 0.0  ;;  %v7525_v13 = vpack.c.bf16 %v1318_v16, %v1317_v23 }
 0x139   : > { %9836 = vst [vmem:[#allocation37_spill] sm:$0xff] %v7523_v8  ;;  %v690_v34 = vpop.f32.mrf.mxu0 }
 0x13a   : > { %9837 = vst [vmem:[#allocation38_spill] sm:$0xff] %v7525_v13  ;;  %v1319_v22 = vmul.f32 %v7205_v24, %v941_v43  ;;  %v888_v52 = vadd.f32 %v7313_v10, %v690_v34  ;;  %v1611_v40 = vsel %vm1574_vm0, %v1536_v26, %v1537_v21  ;;  %v1475_v14 = vsel %vm1438_vm1, %v1398_v63, %v1399_v4 }
 0x13b   : > { %v7535_v46 = vpop.f32.mrf.mxu0  ;;  %v7537_v49 = vpack.c.bf16 %v1611_v40, %v1612_v2 }
 0x13c   : > { %9838 = vst [vmem:[#allocation39_spill] sm:$0xff] %v7535_v46  ;;  %v1400_v23 = vrot.slane %v1319_v22, 1  ;;  %v942_v16 = vmax.f32 %v888_v52, 0.0  ;;  %v1538_v25 = vrot.slane %v1319_v22, 7 }
 0x13d   : > { %9839 = vst [vmem:[#allocation40_spill] sm:$0xff] %v7537_v49  ;;  %v696_v60 = vpop.f32.mrf.mxu0  ;;  %6203 = vmatprep.mubr.bf16.mxu1 %v7537_v49 }
 0x13e   : > { %v1320_v24 = vmul.f32 %v7210_v27, %v942_v16  ;;  %v889_v19 = vadd.f32 %v7313_v10, %v696_v60  ;;  %v1474_v43 = vsel %vm1438_vm1, %v1399_v4, %v1400_v23  ;;  %v1610_v8 = vsel %vm1574_vm0, %v1537_v21, %v1538_v25 }
 0x13f   : > { %v7544_v26 = vpop.f32.mrf.mxu0  ;;  %v7546_v63 = vpack.c.bf16 %v1474_v43, %v1475_v14 }
 0x140   : > { %9840 = vst [vmem:[#allocation41_spill] sm:$0xff] %v7544_v26  ;;  %v1401_v34 = vrot.slane %v1320_v24, 1  ;;  %v1539_v2 = vrot.slane %v1320_v24, 7  ;;  %v943_v40 = vmax.f32 %v889_v19, 0.0  ;;  %v7548_v46 = vpack.c.bf16 %v1320_v24, %v1319_v22  ;;  %v6836_v22 = vld [vmem:[%s9691_s2 + $0x70] sm:$0xff]  }
 0x141   : > { %9841 = vst [vmem:[#allocation42_spill] sm:$0xff] %v7546_v63  ;;  %v700_v52 = vpop.f32.mrf.mxu0 }
 0x142   : > { %v1321_v27 = vmul.f32 %v7212_v28, %v943_v40  ;;  %v890_v60 = vadd.f32 %v7313_v10, %v700_v52  ;;  %v1609_v4 = vsel %vm1574_vm0, %v1538_v25, %v1539_v2  ;;  %v1473_v14 = vsel %vm1438_vm1, %v1400_v23, %v1401_v34  ;;  %v6837_v52 = vld [vmem:[%s9691_s2 + $0x68] sm:$0xff]  }
 0x143   : > { %v7558_v16 = vpop.f32.mrf.mxu0  ;;  %v7560_v43 = vpack.c.bf16 %v1609_v4, %v1610_v8 }
 0x144   : > { %9842 = vst [vmem:[#allocation43_spill] sm:$0xff] %v7558_v16  ;;  %v1402_v24 = vrot.slane %v1321_v27, 1  ;;  %v944_v21 = vmax.f32 %v890_v60, 0.0  ;;  %v1540_v19 = vrot.slane %v1321_v27, 7 }
 0x145   : > { %9843 = vst [vmem:[#allocation44_spill] sm:$0xff] %v7560_v43  ;;  %v706_v28 = vpop.f32.mrf.mxu0  ;;  %6204 = vmatmul.mubr.bf16.vlgmr.msra.gmra.mxu1 %v7560_v43 }
 0x146   : > { %v1322_v40 = vmul.f32 %v7215_v29, %v944_v21  ;;  %v891_v25 = vadd.f32 %v7313_v10, %v706_v28  ;;  %6236 = vmatpush3.bf16.msra.mxu1 %v7369_v47  ;;  %v1472_v8 = vsel %vm1438_vm1, %v1401_v34, %v1402_v24  ;;  %v1608_v47 = vsel %vm1574_vm0, %v1539_v2, %v1540_v19  ;;  %v6838_v2 = vld [vmem:[%s9691_s2 + $0x60] sm:$0xff]  }
 0x147   : > { %v7571_v23 = vpop.f32.mrf.mxu0  ;;  %6237 = vmatprep.subr.bf16.mxu1 %v6836_v22  ;;  %v7576_v60 = vpack.c.bf16 %v1472_v8, %v1473_v14 }
 0x148   : > { %9844 = vst [vmem:[#allocation45_spill] sm:$0xff] %v7571_v23  ;;  %v1403_v4 = vrot.slane %v1322_v40, 1  ;;  %v1541_v26 = vrot.slane %v1322_v40, 7  ;;  %v945_v16 = vmax.f32 %v891_v25, 0.0  ;;  %v7578_v29 = vpack.c.bf16 %v1322_v40, %v1321_v27 }
 0x149   : > { %9845 = vst [vmem:[#allocation46_spill] sm:$0xff] %v7576_v60  ;;  %v710_v21 = vpop.f32.mrf.mxu0 }
 0x14a   : > { %9846 = vst [vmem:[#allocation47_spill] sm:$0xff] %v7578_v29  ;;  %v1323_v34 = vmul.f32 %v7218_v31, %v945_v16  ;;  %v892_v28 = vadd.f32 %v7313_v10, %v710_v21  ;;  %v1607_v23 = vsel %vm1574_vm0, %v1540_v19, %v1541_v26  ;;  %6238 = vmatpush3.bf16.msra.mxu1 %v6836_v22  ;;  %v7598_v16 = vld [vmem:[%s9691_s2 + $0xf8] sm:$0xff]  }
 0x14b   : > { %v1471_v14 = vsel %vm1438_vm1, %v1402_v24, %v1403_v4  ;;  %v7588_v8 = vpop.f32.mrf.mxu0  ;;  %v7590_v25 = vpack.c.bf16 %v1607_v23, %v1608_v47  ;;  %6239 = vmatprep.subr.bf16.mxu1 %v6837_v52  ;;  %6363 = vmatprep.subr.bf16.mxu0 %v7598_v16  ;;  %v6839_v21 = vld [vmem:[%s9691_s2 + $0x58] sm:$0xff]  }
 0x14c   : > { %9847 = vst [vmem:[#allocation48_spill] sm:$0xff] %v7588_v8  ;;  %v1404_v27 = vrot.slane %v1323_v34, 1  ;;  %v946_v31 = vmax.f32 %v892_v28, 0.0  ;;  %v1542_v22 = vrot.slane %v1323_v34, 7 }
 0x14d   : > { %9848 = vst [vmem:[#allocation49_spill] sm:$0xff] %v7590_v25  ;;  %v716_v19 = vpop.f32.mrf.mxu0  ;;  %6207 = vmatprep.mubr.bf16.mxu1 %v7590_v25 }
 0x14e   : > { %v1324_v24 = vmul.f32 %v7223_v33, %v946_v31  ;;  %v893_v40 = vadd.f32 %v7313_v10, %v716_v19  ;;  %6240 = vmatpush3.bf16.msra.mxu1 %v6837_v52  ;;  %v1470_v47 = vsel %vm1438_vm1, %v1403_v4, %v1404_v27  ;;  %v1606_v52 = vsel %vm1574_vm0, %v1541_v26, %v1542_v22  ;;  %v6840_v26 = vld [vmem:[%s9691_s2 + $0x50] sm:$0xff]  }
 0x14f   : > { %v7604_v23 = vpop.f32.mrf.mxu0  ;;  %6241 = vmatprep.subr.bf16.mxu1 %v6838_v2  ;;  %v7615_v31 = vpack.c.bf16 %v1470_v47, %v1471_v14  ;;  %v6841_v47 = vld [vmem:[%s9691_s2 + $0x48] sm:$0xff]  }
 0x150   : > { %9849 = vst [vmem:[#allocation50_spill] sm:$0xff] %v7604_v23  ;;  %v1405_v28 = vrot.slane %v1324_v24, 1  ;;  %v1543_v8 = vrot.slane %v1324_v24, 7  ;;  %v947_v60 = vmax.f32 %v893_v40, 0.0  ;;  %v7611_v63 = vpack.c.bf16 %v1324_v24, %v1323_v34 }
 0x151   : > { %v720_v33 = vpop.f32.mrf.mxu0  ;;  %9850 = vst [vmem:[#allocation51_spill] sm:$0xff] %v7615_v31 }
 0x152   : > { %v1325_v19 = vmul.f32 %v7230_v36, %v947_v60  ;;  %v894_v23 = vadd.f32 %v7313_v10, %v720_v33  ;;  %v1605_v25 = vsel %vm1574_vm0, %v1542_v22, %v1543_v8  ;;  %6242 = vmatpush3.bf16.msra.mxu1 %v6838_v2  ;;  %v1469_v4 = vsel %vm1438_vm1, %v1404_v27, %v1405_v28 }
 0x153   : > { %v7623_v40 = vpop.f32.mrf.mxu0  ;;  %v7625_v34 = vpack.c.bf16 %v1605_v25, %v1606_v52  ;;  %6243 = vmatprep.subr.bf16.mxu1 %v6839_v21 }
 0x154   : > { %9851 = vst [vmem:[#allocation52_spill] sm:$0xff] %v7623_v40  ;;  %v1406_v14 = vrot.slane %v1325_v19, 1  ;;  %v948_v36 = vmax.f32 %v894_v23, 0.0  ;;  %v1544_v60 = vrot.slane %v1325_v19, 7 }
 0x155   : > { %9852 = vst [vmem:[#allocation53_spill] sm:$0xff] %v7625_v34  ;;  %v726_v24 = vpop.f32.mrf.mxu0  ;;  %6208 = vmatmul.mubr.bf16.gmra.mxu1 %v7625_v34 }
 0x156   : > { %v1326_v2 = vmul.f32 %v7232_v37, %v948_v36  ;;  %v895_v22 = vadd.f32 %v7313_v10, %v726_v24  ;;  %6244 = vmatpush3.bf16.msra.mxu1 %v6839_v21  ;;  %v1468_v25 = vsel %vm1438_vm1, %v1405_v28, %v1406_v14  ;;  %v1604_v21 = vsel %vm1574_vm0, %v1543_v8, %v1544_v60  ;;  %v6842_v8 = vld [vmem:[%s9691_s2 + $0x40] sm:$0xff]  }
 0x157   : > { %v7635_v27 = vpop.f32.mrf.mxu0  ;;  %6245 = vmatprep.subr.bf16.mxu1 %v6840_v26  ;;  %v7640_v23 = vpack.c.bf16 %v1468_v25, %v1469_v4 }
 0x158   : > { %9853 = vst [vmem:[#allocation54_spill] sm:$0xff] %v7635_v27  ;;  %v1407_v33 = vrot.slane %v1326_v2, 1  ;;  %v1545_v52 = vrot.slane %v1326_v2, 7  ;;  %v949_v40 = vmax.f32 %v895_v22, 0.0  ;;  %v7642_v31 = vpack.c.bf16 %v1326_v2, %v1325_v19 }
 0x159   : > { %9854 = vst [vmem:[#allocation55_spill] sm:$0xff] %v7640_v23  ;;  %v730_v37 = vpop.f32.mrf.mxu0 }
 0x15a   : > { %v1327_v28 = vmul.f32 %v7238_v39, %v949_v40  ;;  %v896_v36 = vadd.f32 %v7313_v10, %v730_v37  ;;  %v1603_v24 = vsel %vm1574_vm0, %v1544_v60, %v1545_v52  ;;  %6246 = vmatpush3.bf16.msra.mxu1 %v6840_v26  ;;  %v1467_v4 = vsel %vm1438_vm1, %v1406_v14, %v1407_v33 }
 0x15b   : > { %v7652_v25 = vpop.f32.mrf.mxu0  ;;  %v7654_v22 = vpack.c.bf16 %v1603_v24, %v1604_v21  ;;  %6247 = vmatprep.subr.bf16.mxu1 %v6841_v47  ;;  %v7669_v21 = vld [vmem:[%s9691_s2 + $0xb8] sm:$0xff]  }
 0x15c   : > { %9855 = vst [vmem:[#allocation56_spill] sm:$0xff] %v7652_v25  ;;  %v1408_v19 = vrot.slane %v1327_v28, 1  ;;  %v950_v39 = vmax.f32 %v896_v36, 0.0  ;;  %v1546_v40 = vrot.slane %v1327_v28, 7 }
 0x15d   : > { %9856 = vst [vmem:[#allocation57_spill] sm:$0xff] %v7654_v22  ;;  %v736_v2 = vpop.f32.mrf.mxu0  ;;  %6211 = vmatprep.mubr.bf16.mxu1 %v7654_v22 }
 0x15e   : > { %v1328_v26 = vmul.f32 %v7244_v42, %v950_v39  ;;  %v897_v60 = vadd.f32 %v7313_v10, %v736_v2  ;;  %6248 = vmatpush3.bf16.msra.mxu1 %v6841_v47  ;;  %v1466_v14 = vsel %vm1438_vm1, %v1407_v33, %v1408_v19  ;;  %v1602_v47 = vsel %vm1574_vm0, %v1545_v52, %v1546_v40 }
 0x15f   : > { %v7664_v37 = vpop.f32.mrf.mxu0  ;;  %6249 = vmatprep.subr.bf16.mxu1 %v6842_v8  ;;  %v7671_v36 = vpack.c.bf16 %v1466_v14, %v1467_v4 }
 0x160   : > { %9857 = vst [vmem:[#allocation58_spill] sm:$0xff] %v7664_v37  ;;  %v1409_v24 = vrot.slane %v1328_v26, 1  ;;  %v1547_v25 = vrot.slane %v1328_v26, 7  ;;  %v951_v27 = vmax.f32 %v897_v60, 0.0  ;;  %v7673_v42 = vpack.c.bf16 %v1328_v26, %v1327_v28 }
 0x161   : > { %9858 = vst [vmem:[#allocation59_spill] sm:$0xff] %v7671_v36  ;;  %v740_v39 = vpop.f32.mrf.mxu0 }
 0x162   : > { %v1329_v33 = vmul.f32 %v7249_v44, %v951_v27  ;;  %v898_v2 = vadd.f32 %v7313_v10, %v740_v39  ;;  %v1601_v37 = vsel %vm1574_vm0, %v1546_v40, %v1547_v25  ;;  %6250 = vmatpush3.bf16.msra.mxu1 %v6842_v8  ;;  %v1465_v4 = vsel %vm1438_vm1, %v1408_v19, %v1409_v24 }
 0x163   : > { %v7683_v14 = vpop.f32.mrf.mxu0  ;;  %v7685_v60 = vpack.c.bf16 %v1601_v37, %v1602_v47  ;;  %6299 = vmatprep.subr.bf16.mxu1 %v7669_v21 }
 0x164   : > { %9859 = vst [vmem:[#allocation60_spill] sm:$0xff] %v7683_v14  ;;  %v1410_v28 = vrot.slane %v1329_v33, 1  ;;  %v952_v26 = vmax.f32 %v898_v2, 0.0  ;;  %v1548_v52 = vrot.slane %v1329_v33, 7 }
 0x165   : > { %9860 = vst [vmem:[#allocation61_spill] sm:$0xff] %v7685_v60  ;;  %v746_v36 = vpop.f32.mrf.mxu0  ;;  %6212 = vmatmul.mubr.bf16.gmra.mxu1 %v7685_v60 }
 0x166   : > { %v1330_v44 = vmul.f32 %v7252_v45, %v952_v26  ;;  %v899_v27 = vadd.f32 %v7313_v10, %v746_v36  ;;  %v1464_v8 = vsel %vm1438_vm1, %v1409_v24, %v1410_v28  ;;  %v1600_v23 = vsel %vm1574_vm0, %v1547_v25, %v1548_v52 }
 0x167   : > { %v7693_v19 = vpop.f32.mrf.mxu0  ;;  %v7695_v40 = vpack.c.bf16 %v1464_v8, %v1465_v4 }
 0x168   : > { %9861 = vst [vmem:[#allocation62_spill] sm:$0xff] %v7693_v19  ;;  %v1411_v37 = vrot.slane %v1330_v44, 1  ;;  %v1549_v39 = vrot.slane %v1330_v44, 7  ;;  %v953_v47 = vmax.f32 %v899_v27, 0.0  ;;  %v7697_v14 = vpack.c.bf16 %v1330_v44, %v1329_v33 }
 0x169   : > { %9862 = vst [vmem:[#allocation63_spill] sm:$0xff] %v7695_v40  ;;  %v750_v2 = vpop.f32.mrf.mxu0 }
 0x16a   : > { %v1331_v45 = vmul.f32 %v7258_v48, %v953_v47  ;;  %v900_v36 = vadd.f32 %v7313_v10, %v750_v2  ;;  %v1599_v24 = vsel %vm1574_vm0, %v1548_v52, %v1549_v39  ;;  %v1463_v4 = vsel %vm1438_vm1, %v1410_v28, %v1411_v37 }
 0x16b   : > { %v7707_v26 = vpop.f32.mrf.mxu0  ;;  %v7709_v8 = vpack.c.bf16 %v1599_v24, %v1600_v23 }
 0x16c   : > { %9863 = vst [vmem:[#allocation64_spill] sm:$0xff] %v7707_v26  ;;  %v1412_v33 = vrot.slane %v1331_v45, 1  ;;  %v954_v44 = vmax.f32 %v900_v36, 0.0  ;;  %v1550_v27 = vrot.slane %v1331_v45, 7 }
 0x16d   : > { %9864 = vst [vmem:[#allocation65_spill] sm:$0xff] %v7709_v8  ;;  %v756_v19 = vpop.f32.mrf.mxu0  ;;  %6215 = vmatprep.mubr.bf16.mxu1 %v7709_v8 }
 0x16e   : > { %v1332_v48 = vmul.f32 %v7263_v50, %v954_v44  ;;  %v901_v25 = vadd.f32 %v7313_v10, %v756_v19  ;;  %v1462_v52 = vsel %vm1438_vm1, %v1411_v37, %v1412_v33  ;;  %v1598_v40 = vsel %vm1574_vm0, %v1549_v39, %v1550_v27 }
 0x16f   : > { %v7716_v47 = vpop.f32.mrf.mxu0  ;;  %v7718_v28 = vpack.c.bf16 %v1462_v52, %v1463_v4 }
 0x170   : > { %9865 = vst [vmem:[#allocation66_spill] sm:$0xff] %v7716_v47  ;;  %v1413_v2 = vrot.slane %v1332_v48, 1  ;;  %v1551_v23 = vrot.slane %v1332_v48, 7  ;;  %v955_v24 = vmax.f32 %v901_v25, 0.0  ;;  %v7720_v26 = vpack.c.bf16 %v1332_v48, %v1331_v45 }
 0x171   : > { %9866 = vst [vmem:[#allocation67_spill] sm:$0xff] %v7718_v28  ;;  %v760_v36 = vpop.f32.mrf.mxu0 }
 0x172   : > { %v1333_v50 = vmul.f32 %v7270_v53, %v955_v24  ;;  %v902_v19 = vadd.f32 %v7313_v10, %v760_v36  ;;  %v1597_v37 = vsel %vm1574_vm0, %v1550_v27, %v1551_v23  ;;  %v1461_v4 = vsel %vm1438_vm1, %v1412_v33, %v1413_v2 }
 0x173   : > { %v7730_v44 = vpop.f32.mrf.mxu0  ;;  %v7732_v52 = vpack.c.bf16 %v1597_v37, %v1598_v40 }
 0x174   : > { %9867 = vst [vmem:[#allocation68_spill] sm:$0xff] %v7730_v44  ;;  %v1414_v45 = vrot.slane %v1333_v50, 1  ;;  %v956_v48 = vmax.f32 %v902_v19, 0.0  ;;  %v1552_v25 = vrot.slane %v1333_v50, 7 }
 0x175   : > { %9868 = vst [vmem:[#allocation69_spill] sm:$0xff] %v7732_v52  ;;  %v766_v47 = vpop.f32.mrf.mxu0  ;;  %6216 = vmatmul.mubr.bf16.gmra.mxu1 %v7732_v52 }
 0x176   : > { %v1334_v53 = vmul.f32 %v7272_v54, %v956_v48  ;;  %v903_v39 = vadd.f32 %v7313_v10, %v766_v47  ;;  %v1460_v27 = vsel %vm1438_vm1, %v1413_v2, %v1414_v45  ;;  %v1596_v28 = vsel %vm1574_vm0, %v1551_v23, %v1552_v25 }
 0x177   : > { %v7739_v24 = vpop.f32.mrf.mxu0  ;;  %v7741_v33 = vpack.c.bf16 %v1460_v27, %v1461_v4 }
 0x178   : > { %9869 = vst [vmem:[#allocation70_spill] sm:$0xff] %v7739_v24  ;;  %v1415_v36 = vrot.slane %v1334_v53, 1  ;;  %v1553_v40 = vrot.slane %v1334_v53, 7  ;;  %v957_v37 = vmax.f32 %v903_v39, 0.0  ;;  %v7743_v44 = vpack.c.bf16 %v1334_v53, %v1333_v50 }
 0x179   : > { %9870 = vst [vmem:[#allocation71_spill] sm:$0xff] %v7741_v33  ;;  %v770_v19 = vpop.f32.mrf.mxu0 }
 0x17a   : > { %v1335_v54 = vmul.f32 %v7275_v55, %v957_v37  ;;  %v904_v47 = vadd.f32 %v7313_v10, %v770_v19  ;;  %v1595_v2 = vsel %vm1574_vm0, %v1552_v25, %v1553_v40  ;;  %v1459_v4 = vsel %vm1438_vm1, %v1414_v45, %v1415_v36 }
 0x17b   : > { %v7753_v48 = vpop.f32.mrf.mxu0  ;;  %v7755_v27 = vpack.c.bf16 %v1595_v2, %v1596_v28 }
 0x17c   : > { %9871 = vst [vmem:[#allocation72_spill] sm:$0xff] %v7753_v48  ;;  %v1416_v50 = vrot.slane %v1335_v54, 1  ;;  %v958_v53 = vmax.f32 %v904_v47, 0.0  ;;  %v1554_v39 = vrot.slane %v1335_v54, 7 }
 0x17d   : > { %9872 = vst [vmem:[#allocation73_spill] sm:$0xff] %v7755_v27  ;;  %v776_v24 = vpop.f32.mrf.mxu0  ;;  %6219 = vmatprep.mubr.bf16.mxu1 %v7755_v27 }
 0x17e   : > { %v1336_v55 = vmul.f32 %v7278_v57, %v958_v53  ;;  %v905_v23 = vadd.f32 %v7313_v10, %v776_v24  ;;  %v1458_v25 = vsel %vm1438_vm1, %v1415_v36, %v1416_v50  ;;  %v1594_v33 = vsel %vm1574_vm0, %v1553_v40, %v1554_v39 }
 0x17f   : > { %v7762_v37 = vpop.f32.mrf.mxu0  ;;  %v7764_v45 = vpack.c.bf16 %v1458_v25, %v1459_v4 }
 0x180   : > { %9873 = vst [vmem:[#allocation74_spill] sm:$0xff] %v7762_v37  ;;  %v1417_v19 = vrot.slane %v1336_v55, 1  ;;  %v1555_v28 = vrot.slane %v1336_v55, 7  ;;  %v959_v2 = vmax.f32 %v905_v23, 0.0  ;;  %v7766_v48 = vpack.c.bf16 %v1336_v55, %v1335_v54 }
 0x181   : > { %9874 = vst [vmem:[#allocation75_spill] sm:$0xff] %v7764_v45  ;;  %v780_v47 = vpop.f32.mrf.mxu0 }
 0x182   : > { %v1337_v57 = vmul.f32 %v7280_v58, %v959_v2  ;;  %v906_v24 = vadd.f32 %v7313_v10, %v780_v47  ;;  %v1593_v36 = vsel %vm1574_vm0, %v1554_v39, %v1555_v28  ;;  %v1457_v4 = vsel %vm1438_vm1, %v1416_v50, %v1417_v19 }
 0x183   : > { %v7776_v53 = vpop.f32.mrf.mxu0  ;;  %v7778_v25 = vpack.c.bf16 %v1593_v36, %v1594_v33 }
 0x184   : > { %9875 = vst [vmem:[#allocation76_spill] sm:$0xff] %v7776_v53  ;;  %v1418_v54 = vrot.slane %v1337_v57, 1  ;;  %v960_v55 = vmax.f32 %v906_v24, 0.0  ;;  %v1556_v23 = vrot.slane %v1337_v57, 7 }
 0x185   : > { %9876 = vst [vmem:[#allocation77_spill] sm:$0xff] %v7778_v25  ;;  %v786_v37 = vpop.f32.mrf.mxu0  ;;  %6220 = vmatmul.mubr.bf16.gmra.mxu1 %v7778_v25 }
 0x186   : > { %v1338_v58 = vmul.f32 %v7283_v59, %v960_v55  ;;  %v907_v40 = vadd.f32 %v7313_v10, %v786_v37  ;;  %v1456_v39 = vsel %vm1438_vm1, %v1417_v19, %v1418_v54  ;;  %v1592_v45 = vsel %vm1574_vm0, %v1555_v28, %v1556_v23 }
 0x187   : > { %v7785_v2 = vpop.f32.mrf.mxu0  ;;  %v7787_v50 = vpack.c.bf16 %v1456_v39, %v1457_v4 }
 0x188   : > { %9877 = vst [vmem:[#allocation78_spill] sm:$0xff] %v7785_v2  ;;  %v1419_v47 = vrot.slane %v1338_v58, 1  ;;  %v1557_v33 = vrot.slane %v1338_v58, 7  ;;  %v961_v36 = vmax.f32 %v907_v40, 0.0  ;;  %v7789_v53 = vpack.c.bf16 %v1338_v58, %v1337_v57 }
 0x189   : > { %9878 = vst [vmem:[#allocation79_spill] sm:$0xff] %v7787_v50  ;;  %v790_v24 = vpop.f32.mrf.mxu0 }
 0x18a   : > { %v1339_v59 = vmul.f32 %v7286_v61, %v961_v36  ;;  %v908_v37 = vadd.f32 %v7313_v10, %v790_v24  ;;  %v1591_v19 = vsel %vm1574_vm0, %v1556_v23, %v1557_v33  ;;  %v1455_v4 = vsel %vm1438_vm1, %v1418_v54, %v1419_v47 }
 0x18b   : > { %v7799_v55 = vpop.f32.mrf.mxu0  ;;  %v7801_v39 = vpack.c.bf16 %v1591_v19, %v1592_v45 }
 0x18c   : > { %9879 = vst [vmem:[#allocation80_spill] sm:$0xff] %v7799_v55  ;;  %v1420_v57 = vrot.slane %v1339_v59, 1  ;;  %v962_v58 = vmax.f32 %v908_v37, 0.0  ;;  %v1558_v40 = vrot.slane %v1339_v59, 7 }
 0x18d   : > { %9880 = vst [vmem:[#allocation81_spill] sm:$0xff] %v7801_v39  ;;  %v796_v2 = vpop.f32.mrf.mxu0  ;;  %6223 = vmatprep.mubr.bf16.mxu1 %v7801_v39 }
 0x18e   : > { %v1340_v61 = vmul.f32 %v7288_v62, %v962_v58  ;;  %v909_v28 = vadd.f32 %v7313_v10, %v796_v2  ;;  %v1454_v23 = vsel %vm1438_vm1, %v1419_v47, %v1420_v57  ;;  %v1590_v50 = vsel %vm1574_vm0, %v1557_v33, %v1558_v40 }
 0x18f   : > { %v7808_v36 = vpop.f32.mrf.mxu0  ;;  %v7810_v54 = vpack.c.bf16 %v1454_v23, %v1455_v4 }
 0x190   : > { %9881 = vst [vmem:[#allocation82_spill] sm:$0xff] %v7808_v36  ;;  %v1421_v24 = vrot.slane %v1340_v61, 1  ;;  %v1559_v45 = vrot.slane %v1340_v61, 7  ;;  %v963_v19 = vmax.f32 %v909_v28, 0.0  ;;  %v7812_v55 = vpack.c.bf16 %v1340_v61, %v1339_v59 }
 0x191   : > { %9882 = vst [vmem:[#allocation83_spill] sm:$0xff] %v7810_v54  ;;  %v800_v37 = vpop.f32.mrf.mxu0 }
 0x192   : > { %v1341_v62 = vmul.f32 %v7292_v0, %v963_v19  ;;  %v910_v2 = vadd.f32 %v7313_v10, %v800_v37  ;;  %v1589_v47 = vsel %vm1574_vm0, %v1558_v40, %v1559_v45  ;;  %v1453_v4 = vsel %vm1438_vm1, %v1420_v57, %v1421_v24 }
 0x193   : > { %v7822_v58 = vpop.f32.mrf.mxu0  ;;  %v7824_v23 = vpack.c.bf16 %v1589_v47, %v1590_v50 }
 0x194   : > { %9883 = vst [vmem:[#allocation84_spill] sm:$0xff] %v7822_v58  ;;  %v1422_v59 = vrot.slane %v1341_v62, 1  ;;  %v964_v61 = vmax.f32 %v910_v2, 0.0  ;;  %v1560_v28 = vrot.slane %v1341_v62, 7 }
 0x195   : > { %9884 = vst [vmem:[#allocation85_spill] sm:$0xff] %v7824_v23  ;;  %v806_v36 = vpop.f32.mrf.mxu0  ;;  %6224 = vmatmul.mubr.bf16.gmra.mxu1 %v7824_v23 }
 0x196   : > { %v1342_v0 = vmul.f32 %v7294_v1, %v964_v61  ;;  %v911_v33 = vadd.f32 %v7313_v10, %v806_v36  ;;  %v1452_v40 = vsel %vm1438_vm1, %v1421_v24, %v1422_v59  ;;  %v1588_v54 = vsel %vm1574_vm0, %v1559_v45, %v1560_v28  ;;  %v7843_v10 = vld [vmem:[%s9692_s3] ss:$0 sm:$0xff] }
 0x197   : > { %v7831_v19 = vpop.f32.mrf.mxu0  ;;  %v7833_v57 = vpack.c.bf16 %v1452_v40, %v1453_v4 }
 0x198   : > { %9885 = vst [vmem:[#allocation86_spill] sm:$0xff] %v7831_v19  ;;  %v1423_v37 = vrot.slane %v1342_v0, 1  ;;  %v1561_v50 = vrot.slane %v1342_v0, 7  ;;  %v965_v47 = vmax.f32 %v911_v33, 0.0  ;;  %v7835_v58 = vpack.c.bf16 %v1342_v0, %v1341_v62 }
 0x199   : > { %9886 = vst [vmem:[#allocation87_spill] sm:$0xff] %v7833_v57  ;;  %v810_v2 = vpop.f32.mrf.mxu0 }
 0x19a   : > { %v1343_v1 = vmul.f32 %v7297_v3, %v965_v47  ;;  %v912_v36 = vadd.f32 %v7843_v10, %v810_v2  ;;  %v1587_v24 = vsel %vm1574_vm0, %v1560_v28, %v1561_v50  ;;  %v1451_v62 = vsel %vm1438_vm1, %v1422_v59, %v1423_v37 }
 0x19b   : > { %v7850_v4 = vpop.f32.mrf.mxu0  ;;  %v7852_v61 = vpack.c.bf16 %v1587_v24, %v1588_v54 }
 0x19c   : > { %9887 = vst [vmem:[#allocation88_spill] sm:$0xff] %v7850_v4  ;;  %v1424_v45 = vrot.slane %v1343_v1, 1  ;;  %v966_v0 = vmax.f32 %v912_v36, 0.0  ;;  %v1562_v3 = vrot.slane %v1343_v1, 7 }
 0x19d   : > { %9888 = vst [vmem:[#allocation89_spill] sm:$0xff] %v7852_v61  ;;  %v816_v33 = vpop.f32.mrf.mxu0  ;;  %6227 = vmatprep.mubr.bf16.mxu1 %v7852_v61 }
 0x19e   : > { %v1344_v40 = vmul.f32 %v7300_v5, %v966_v0  ;;  %v913_v47 = vadd.f32 %v7843_v10, %v816_v33  ;;  %v1450_v28 = vsel %vm1438_vm1, %v1423_v37, %v1424_v45  ;;  %v1586_v57 = vsel %vm1574_vm0, %v1561_v50, %v1562_v3 }
 0x19f   : > { %v7859_v2 = vpop.f32.mrf.mxu0  ;;  %v7861_v59 = vpack.c.bf16 %v1450_v28, %v1451_v62 }
 0x1a0   : > { %9889 = vst [vmem:[#allocation90_spill] sm:$0xff] %v7859_v2  ;;  %v1425_v4 = vrot.slane %v1344_v40, 1  ;;  %v1563_v54 = vrot.slane %v1344_v40, 7  ;;  %v967_v24 = vmax.f32 %v913_v47, 0.0  ;;  %v7863_v19 = vpack.c.bf16 %v1344_v40, %v1343_v1 }
 0x1a1   : > { %9890 = vst [vmem:[#allocation91_spill] sm:$0xff] %v7861_v59  ;;  %v820_v36 = vpop.f32.mrf.mxu0 }
 0x1a2   : > { %9891 = vst [vmem:[#allocation92_spill] sm:$0xff] %v7863_v19  ;;  %v1345_v5 = vmul.f32 %v7302_v6, %v967_v24  ;;  %v914_v0 = vadd.f32 %v7843_v10, %v820_v36  ;;  %v1585_v37 = vsel %vm1574_vm0, %v1562_v3, %v1563_v54  ;;  %v1449_v62 = vsel %vm1438_vm1, %v1424_v45, %v1425_v4 }
 0x1a3   : > { %v7873_v33 = vpop.f32.mrf.mxu0  ;;  %v7875_v28 = vpack.c.bf16 %v1585_v37, %v1586_v57 }
 0x1a4   : > { %9892 = vst [vmem:[#allocation93_spill] sm:$0xff] %v7873_v33  ;;  %v1426_v1 = vrot.slane %v1345_v5, 1  ;;  %v968_v40 = vmax.f32 %v914_v0, 0.0  ;;  %v1564_v47 = vrot.slane %v1345_v5, 7 }
 0x1a5   : > { %9893 = vst [vmem:[#allocation94_spill] sm:$0xff] %v7875_v28  ;;  %v826_v2 = vpop.f32.mrf.mxu0  ;;  %6228 = vmatmul.mubr.bf16.gmra.mxu1 %v7875_v28 }
 0x1a6   : > { %v1346_v6 = vmul.f32 %v7305_v7, %v968_v40  ;;  %v915_v50 = vadd.f32 %v7843_v10, %v826_v2  ;;  %v1448_v3 = vsel %vm1438_vm1, %v1425_v4, %v1426_v1  ;;  %v1584_v59 = vsel %vm1574_vm0, %v1563_v54, %v1564_v47 }
 0x1a7   : > { %v7882_v24 = vpop.f32.mrf.mxu0  ;;  %v7884_v45 = vpack.c.bf16 %v1448_v3, %v1449_v62 }
 0x1a8   : > { %9894 = vst [vmem:[#allocation95_spill] sm:$0xff] %v7882_v24  ;;  %v1427_v36 = vrot.slane %v1346_v6, 1  ;;  %v1565_v57 = vrot.slane %v1346_v6, 7  ;;  %v969_v37 = vmax.f32 %v915_v50, 0.0  ;;  %v7886_v33 = vpack.c.bf16 %v1346_v6, %v1345_v5 }
 0x1a9   : > { %9895 = vst [vmem:[#allocation96_spill] sm:$0xff] %v7884_v45  ;;  %v830_v0 = vpop.f32.mrf.mxu0  ;;  %v1274_v45 = vpop.permute.xlu1 %1273 }
 0x1aa   : > { %9896 = vst [vmem:[#allocation97_spill] sm:$0xff] %v7886_v33  ;;  %v1347_v7 = vmul.f32 %v7308_v9, %v969_v37  ;;  %v916_v2 = vadd.f32 %v7843_v10, %v830_v0  ;;  %v1583_v4 = vsel %vm1574_vm0, %v1564_v47, %v1565_v57  ;;  %v1447_v62 = vsel %vm1438_vm1, %v1426_v1, %v1427_v36  ;;  %v7905_v37 = vpop.permute.xlu0 %1298 }
 0x1ab   : > { %v7896_v40 = vpop.f32.mrf.mxu0  ;;  %v7898_v3 = vpack.c.bf16 %v1583_v4, %v1584_v59 }
 0x1ac   : > { %9897 = vst [vmem:[#allocation98_spill] sm:$0xff] %v7896_v40  ;;  %v1428_v5 = vrot.slane %v1347_v7, 1  ;;  %v970_v6 = vmax.f32 %v916_v2, 0.0  ;;  %v1566_v50 = vrot.slane %v1347_v7, 7 }
 0x1ad   : > { %9898 = vst [vmem:[#allocation99_spill] sm:$0xff] %v7898_v3  ;;  %v836_v24 = vpop.f32.mrf.mxu0  ;;  %6231 = vmatprep.mubr.bf16.mxu1 %v7898_v3 }
 0x1ae   : > { %v1348_v9 = vmul.f32 %v7315_v12, %v970_v6  ;;  %v917_v54 = vadd.f32 %v7843_v10, %v836_v24  ;;  %v1446_v47 = vsel %vm1438_vm1, %v1427_v36, %v1428_v5  ;;  %v1582_v12 = vsel %vm1574_vm0, %v1565_v57, %v1566_v50 }
 0x1af   : > { %v7907_v1 = vpop.f32.mrf.mxu0  ;;  %v7909_v0 = vpack.c.bf16 %v1446_v47, %v1447_v62 }
 0x1b0   : > { %9899 = vst [vmem:[#allocation100_spill] sm:$0xff] %v7907_v1  ;;  %v1429_v59 = vrot.slane %v1348_v9, 1  ;;  %v1567_v4 = vrot.slane %v1348_v9, 7  ;;  %v971_v2 = vmax.f32 %v917_v54, 0.0  ;;  %v7911_v40 = vpack.c.bf16 %v1348_v9, %v1347_v7 }
 0x1b1   : > { %9900 = vst [vmem:[#allocation101_spill] sm:$0xff] %v7909_v0  ;;  %v840_v3 = vpop.f32.mrf.mxu0  ;;  %v1279_v0 = vpop.permute.xlu0 %1278 }
 0x1b2   : > { %9901 = vst [vmem:[#allocation102_spill] sm:$0xff] %v7911_v40  ;;  %v1349_v24 = vmul.f32 %v1274_v45, %v971_v2  ;;  %v918_v6 = vadd.f32 %v7843_v10, %v840_v3  ;;  %v1581_v36 = vsel %vm1574_vm0, %v1566_v50, %v1567_v4  ;;  %v1445_v62 = vsel %vm1438_vm1, %v1428_v5, %v1429_v59 }
 0x1b3   : > { %v7920_v47 = vpop.f32.mrf.mxu0  ;;  %v7922_v1 = vpack.c.bf16 %v1581_v36, %v1582_v12  ;;  %v9904_v3 = vpack.c.bf16 %v7325_v38, %v7323_v32 }
 0x1b4   : > { %9902 = vst [vmem:[#allocation103_spill] sm:$0xff] %v7920_v47  ;;  %v1430_v7 = vrot.slane %v1349_v24, 1  ;;  %v1568_v9 = vrot.slane %v1349_v24, 7  ;;  %v972_v54 = vmax.f32 %v918_v6, 0.0 }
 0x1b5   : > { %9903 = vst [vmem:[#allocation104_spill] sm:$0xff] %v7922_v1  ;;  %v846_v28 = vpop.f32.mrf.mxu0  ;;  %6232 = vmatmul.mubr.bf16.gmra.mxu1 %v7922_v1 }
 0x1b6   : > { %v1350_v45 = vmul.f32 %v1279_v0, %v972_v54  ;;  %v919_v57 = vadd.f32 %v7843_v10, %v846_v28  ;;  %6251 = vmatprep.mubr.bf16.mxu1 %v9904_v3  ;;  %v1580_v5 = vsel %vm1574_vm0, %v1567_v4, %v1568_v9  ;;  %v1444_v50 = vsel %vm1438_vm1, %v1429_v59, %v1430_v7  ;;  %v1284_v28 = vpop.permute.xlu1 %1283 }
 0x1b7   : > { %v7933_v2 = vpop.f32.mrf.mxu0  ;;  %v7935_v12 = vpack.c.bf16 %v1444_v50, %v1445_v62 }
 0x1b8   : > { %9905 = vst [vmem:[#allocation105_spill] sm:$0xff] %v7933_v2  ;;  %v7937_v6 = vpack.c.bf16 %v1350_v45, %v1349_v24  ;;  %v1431_v36 = vrot.slane %v1350_v45, 1  ;;  %v1569_v0 = vrot.slane %v1350_v45, 7  ;;  %v973_v54 = vmax.f32 %v919_v57, 0.0  ;;  %v6844_v24 = vld [vmem:[%s9691_s2 + $0xb0] sm:$0xff]   ;;  %v1289_v2 = vpop.permute.xlu0 %1288 }
 0x1b9   : > { %9906 = vst [vmem:[#allocation106_spill] sm:$0xff] %v7935_v12  ;;  %v850_v47 = vpop.f32.mrf.mxu0 }
 0x1ba   : > { %9907 = vst [vmem:[#allocation107_spill] sm:$0xff] %v7937_v6  ;;  %v1351_v1 = vmul.f32 %v1284_v28, %v973_v54  ;;  %v920_v38 = vadd.f32 %v7843_v10, %v850_v47  ;;  %v1579_v4 = vsel %vm1574_vm0, %v1568_v9, %v1569_v0  ;;  %v1443_v59 = vsel %vm1438_vm1, %v1430_v7, %v1431_v36 }
 0x1bb   : > { %v852_v3 = vpop.f32.mrf.mxu0  ;;  %v7947_v62 = vpack.c.bf16 %v1579_v4, %v1580_v5  ;;  %v6847_v5 = vld [vmem:[%s9691_s2 + $0xa8] sm:$0xff]  }
 0x1bc   : > { %v1432_v45 = vrot.slane %v1351_v1, 1  ;;  %v1570_v57 = vrot.slane %v1351_v1, 7  ;;  %v974_v50 = vmax.f32 %v920_v38, 0.0 }
 0x1bd   : > { %9908 = vst [vmem:[#allocation108_spill] sm:$0xff] %v7947_v62  ;;  %v855_v54 = vpop.f32.mrf.mxu0  ;;  %6252 = vmatmul.mubr.bf16.vlgmr.msra.gmra.mxu1 %v7364_v41 }
 0x1be   : > { %v1352_v47 = vmul.f32 %v1289_v2, %v974_v50  ;;  %v921_v9 = vadd.f32 %v7843_v10, %v855_v54  ;;  %6300 = vmatpush3.bf16.msra.mxu1 %v7669_v21  ;;  %6255 = vmatprep.mubr.bf16.mxu1 %v7390_v17  ;;  %v1578_v7 = vsel %vm1574_vm0, %v1569_v0, %v1570_v57  ;;  %v1294_v21 = vpop.permute.xlu1 %1293 }
 0x1bf   : > { %v857_v28 = vpop.f32.mrf.mxu0  ;;  %6301 = vmatprep.subr.bf16.mxu1 %v6844_v24  ;;  %v1442_v38 = vsel %vm1438_vm1, %v1431_v36, %v1432_v45 }
 0x1c0   : > { %v7960_v4 = vpack.c.bf16 %v1352_v47, %v1351_v1  ;;  %v1433_v2 = vrot.slane %v1352_v47, 1  ;;  %v1571_v3 = vrot.slane %v1352_v47, 7  ;;  %v975_v50 = vmax.f32 %v921_v9, 0.0  ;;  %v6851_v1 = vld [vmem:[%s9691_s2 + $0xa0] sm:$0xff]  }
 0x1c1   : > { %v858_v54 = vpop.f32.mrf.mxu0  ;;  %v7962_v12 = vpack.c.bf16 %v1442_v38, %v1443_v59  ;;  %v9741_v9 = vrot.slane %v7937_v6, 4  ;;  %v9963_v6 = vld [vmem:[#allocation79_spill] sm:$0xff] }
 0x1c2   : > { %9909 = vst [vmem:[#allocation109_spill] sm:$0xff] %v7960_v4  ;;  %v7964_v41 = vmul.f32 %v1294_v21, %v975_v50  ;;  %v922_v0 = vadd.f32 %v7843_v10, %v858_v54  ;;  %6302 = vmatpush3.bf16.msra.mxu1 %v6844_v24  ;;  %v1577_v28 = vsel %vm1574_vm0, %v1570_v57, %v1571_v3  ;;  %v3195_v38 = vrot.slane %v7960_v4, 4  ;;  %v6855_v54 = vld [vmem:[%s9691_s2 + $0x98] sm:$0xff]  }
 0x1c3   : > { %9910 = vst [vmem:[#allocation110_spill] sm:$0xff] %v7962_v12  ;;  %v1441_v36 = vsel %vm1438_vm1, %v1432_v45, %v1433_v2  ;;  %6303 = vmatprep.subr.bf16.mxu1 %v6847_v5  ;;  %v7974_v47 = vpack.c.bf16 %v1577_v28, %v1578_v7  ;;  %v860_v59 = vpop.f32.mrf.mxu0 }
 0x1c4   : > { %9911 = vst [vmem:[#allocation111_spill] sm:$0xff] %v7964_v41  ;;  %v1434_v10 = vrot.slane %v7964_v41, 1  ;;  %v1572_v24 = vrot.slane %v7964_v41, 7  ;;  %v976_v57 = vmax.f32 %v922_v0, 0.0  ;;  %v7984_v45 = vsel %vm2711_vm2, %v9741_v9, %v3195_v38  ;;  %v9934_v41 = vld [vmem:[#allocation10_spill] sm:$0xff] }
 0x1c5   : > { %9912 = vst [vmem:[#allocation112_spill] sm:$0xff] %v7974_v47  ;;  %6256 = vmatmul.mubr.bf16.gmra.mxu1 %v7417_v51  ;;  %9913 = vst [vmem:[#allocation113_spill] sm:$0xff] %v7984_v45  ;;  %v9920_v38 = vrot.slane %v7323_v32, 1  ;;  %v2721_v9 = vrot.slane %v7493_v15, 4 }
 0x1c6   : > { %v7987_v7 = vmul.f32 %v7905_v37, %v976_v57  ;;  %6259 = vmatprep.mubr.bf16.mxu1 %v7444_v56  ;;  %6304 = vmatpush3.bf16.msra.mxu1 %v6847_v5  ;;  %v1440_v50 = vsel %vm1438_vm1, %v1433_v2, %v1434_v10  ;;  %v7994_v21 = vsel %vm1574_vm0, %v1571_v3, %v1572_v24  ;;  %v9917_v2 = vrot.slane %v7323_v32, 7  ;;  %v9923_v32 = vld [vmem:[#allocation8_spill] sm:$0xff] }
 0x1c7   : > { %9915 = vst [vmem:[#allocation115_spill] sm:$0xff] %v7994_v21  ;;  %6305 = vmatprep.subr.bf16.mxu1 %v6851_v1  ;;  %v7999_v0 = vpack.c.bf16 %v1440_v50, %v1441_v36  ;;  %v9922_v50 = vld [vmem:[#allocation2_spill] sm:$0xff] }
 0x1c8   : > { %9914 = vst [vmem:[#allocation114_spill] sm:$0xff] %v7987_v7  ;;  %v1435_v37 = vrot.slane %v7987_v7, 1  ;;  %v1573_v28 = vrot.slane %v7987_v7, 7  ;;  %v2747_v7 = vrot.slane %v7824_v23, 4  ;;  %v9942_v23 = vld [vmem:[#allocation94_spill] sm:$0xff] }
 0x1c9   : > { %9916 = vst [vmem:[#allocation116_spill] sm:$0xff] %v7999_v0 }
 0x1ca   : > { %v1628_v3 = vsel %vm1574_vm0, %v1573_v28, %v9917_v2  ;;  %6306 = vmatpush3.bf16.msra.mxu1 %v6851_v1  ;;  %v8011_v59 = vsel %vm1574_vm0, %v1572_v24, %v1573_v28  ;;  %v8015_v36 = vsel %vm1438_vm1, %v1434_v10, %v1435_v37  ;;  %v8021_v57 = vsel %vm1438_vm1, %v1435_v37, %v9920_v38  ;;  %v6846_v10 = vld [vmem:[%s9691_s2 + $0xf0] sm:$0xff]   ;;  %v9924_v37 = vld [vmem:[#allocation13_spill] sm:$0xff]  ;;  %v6848_v28 = vld [vmem:[%s9691_s2 + $0xe8] sm:$0xff]  }
 0x1cb   : > { %9918 = vst [vmem:[#allocation117_spill] sm:$0xff] %v8011_v59  ;;  %9919 = vst [vmem:[#allocation118_spill] sm:$0xff] %v8015_v36  ;;  %v1629_v5 = vpack.c.bf16 %v9922_v50, %v1628_v3  ;;  %6307 = vmatprep.subr.bf16.mxu1 %v6855_v54  ;;  %v6849_v2 = vld [vmem:[%s9691_s2 + $0xe0] sm:$0xff]   ;;  %v9926_v3 = vld [vmem:[#allocation23_spill] sm:$0xff]  ;;  %v2741_v59 = vrot.slane %v7755_v27, 4 }
 0x1cc   : > { %9921 = vst [vmem:[#allocation119_spill] sm:$0xff] %v8021_v57  ;;  %v6850_v38 = vld [vmem:[%s9691_s2 + $0xd8] sm:$0xff]   ;;  %v2739_v57 = vrot.slane %v7732_v52, 4  ;;  %v2749_v52 = vrot.slane %v7852_v61, 4  ;;  %v6873_v61 = vld [vmem:[%s9691_s2 + $0x108] sm:$0xff]  }
 0x1cd   : > { %6187 = vmatprep.mubr.bf16.mxu0 %v1629_v5  ;;  %6260 = vmatmul.mubr.bf16.gmra.mxu1 %v7464_v18  ;;  %v6857_v5 = vld [vmem:[%s9691_s2 + $0x88] sm:$0xff]   ;;  %v8061_v50 = vld [vmem:[%s9691_s2 + $0x138] sm:$0xff]  }
 0x1ce   : > { %6188 = vmatmul.mubr.bf16.vlgmr.msra.gmra.mxu0 %v9923_v32  ;;  %6263 = vmatprep.mubr.bf16.mxu1 %v7484_v35  ;;  %v6853_v32 = vld [vmem:[%s9691_s2 + $0xc8] sm:$0xff]   ;;  %v9938_v27 = vld [vmem:[#allocation25_spill] sm:$0xff] }
 0x1cf   : > { %6191 = vmatprep.mubr.bf16.mxu0 %v9924_v37  ;;  %6364 = vmatpush3.bf16.msra.mxu0 %v7598_v16  ;;  %v6858_v16 = vld [vmem:[%s9691_s2 + $0x80] sm:$0xff]  }
 0x1d0   : > { %6365 = vmatprep.subr.bf16.mxu0 %v6846_v10  ;;  %6308 = vmatpush3.bf16.msra.mxu1 %v6855_v54  ;;  %v9925_v54 = vld [vmem:[#allocation18_spill] sm:$0xff] }
 0x1d1   : > { %6309 = vmatprep.subr.bf16.mxu1 %v6856_v30 }
 0x1d3   : > { %6366 = vmatpush3.bf16.msra.mxu0 %v6846_v10  ;;  %v6852_v10 = vld [vmem:[%s9691_s2 + $0xd0] sm:$0xff]  }
 0x1d4   : > { %6367 = vmatprep.subr.bf16.mxu0 %v6848_v28  ;;  %6310 = vmatpush3.bf16.msra.mxu1 %v6856_v30  ;;  %v9927_v30 = vld [vmem:[#allocation27_spill] sm:$0xff] }
 0x1d5   : > { %6264 = vmatmul.mubr.bf16.gmra.mxu1 %v7505_v20  ;;  %6311 = vmatprep.subr.bf16.mxu1 %v6857_v5  ;;  %v2719_v1 = vrot.slane %v9927_v30, 4 }
 0x1d6   : > { %6192 = vmatmul.mubr.bf16.gmra.mxu0 %v9925_v54  ;;  %6267 = vmatprep.mubr.bf16.mxu1 %v7525_v13 }
 0x1d7   : > { %6195 = vmatprep.mubr.bf16.mxu0 %v9926_v3  ;;  %6368 = vmatpush3.bf16.msra.mxu0 %v6848_v28  ;;  %v6854_v28 = vld [vmem:[%s9691_s2 + $0xc0] sm:$0xff]  }
 0x1d8   : > { %6369 = vmatprep.subr.bf16.mxu0 %v6849_v2  ;;  %6312 = vmatpush3.bf16.msra.mxu1 %v6857_v5  ;;  %v9928_v5 = vld [vmem:[#allocation15_spill] sm:$0xff] }
 0x1d9   : > { %6313 = vmatprep.subr.bf16.mxu1 %v6858_v16 }
 0x1db   : > { %6370 = vmatpush3.bf16.msra.mxu0 %v6849_v2  ;;  %v6861_v2 = vld [vmem:[%s9691_s2 + $0x178] sm:$0xff]  }
 0x1dc   : > { %6371 = vmatprep.subr.bf16.mxu0 %v6850_v38  ;;  %6314 = vmatpush3.bf16.msra.mxu1 %v6858_v16  ;;  %v2715_v16 = vrot.slane %v9925_v54, 4 }
 0x1dd   : > { %6268 = vmatmul.mubr.bf16.gmra.mxu1 %v7548_v46  ;;  %6427 = vmatprep.subr.bf16.mxu1 %v8061_v50 }
 0x1de   : > { %6196 = vmatmul.mubr.bf16.gmra.mxu0 %v9927_v30  ;;  %6271 = vmatprep.mubr.bf16.mxu1 %v7578_v29  ;;  %v9954_v30 = vld [vmem:[#allocation67_spill] sm:$0xff] }
 0x1df   : > { %6199 = vmatprep.mubr.bf16.mxu0 %v7493_v15  ;;  %6372 = vmatpush3.bf16.msra.mxu0 %v6850_v38  ;;  %v2717_v38 = vrot.slane %v9926_v3, 4  ;;  %v6878_v15 = vld [vmem:[%s9691_s2 + $0x1f0] sm:$0xff]  }
 0x1e0   : > { %6373 = vmatprep.subr.bf16.mxu0 %v6852_v10 }
 0x1e1   : > { %v2718_v24 = vsel %vm2711_vm2, %v2715_v16, %v2717_v38 }
 0x1e3   : > { %6374 = vmatpush3.bf16.msra.mxu0 %v6852_v10  ;;  %v6862_v10 = vld [vmem:[%s9691_s2 + $0x170] sm:$0xff]  }
 0x1e4   : > { %6375 = vmatprep.subr.bf16.mxu0 %v6853_v32 }
 0x1e5   : > { %6272 = vmatmul.mubr.bf16.gmra.mxu1 %v7611_v63 }
 0x1e6   : > { %6200 = vmatmul.mubr.bf16.gmra.mxu0 %v7515_v11  ;;  %6275 = vmatprep.mubr.bf16.mxu1 %v7642_v31 }
 0x1e7   : > { %6376 = vmatpush3.bf16.msra.mxu0 %v6853_v32  ;;  %6379 = vmatprep.mubr.bf16.mxu0 %v9928_v5  ;;  %v9929_v32 = vrot.slane %v9924_v37, 4  ;;  %v6865_v37 = vld [vmem:[%s9691_s2 + $0x160] sm:$0xff]  }
 0x1e8   : > { %6377 = vmatprep.subr.bf16.mxu0 %v6854_v28 }
 0x1e9   : > { %v2716_v5 = vsel %vm2711_vm2, %v9929_v32, %v2715_v16  ;;  %v6866_v16 = vld [vmem:[%s9691_s2 + $0x158] sm:$0xff]   ;;  %v2725_v32 = vrot.slane %v7537_v49, 4 }
 0x1eb   : > { %6378 = vmatpush3.bf16.msra.mxu0 %v6854_v28  ;;  %v6864_v28 = vld [vmem:[%s9691_s2 + $0x168] sm:$0xff]  }
 0x1ec   : > { %6491 = vmatprep.subr.bf16.mxu0 %v6861_v2 }
 0x1ed   : > { %6276 = vmatmul.mubr.bf16.gmra.mxu1 %v7673_v42 }
 0x1ee   : > { %6279 = vmatprep.mubr.bf16.mxu1 %v7697_v14  ;;  %6380 = vmatmul.mubr.bf16.vlgmr.msra.gmra.mxu0 %v2716_v5 }
 0x1ef   : > { %6383 = vmatprep.mubr.bf16.mxu0 %v2718_v24  ;;  %6492 = vmatpush3.bf16.msra.mxu0 %v6861_v2  ;;  %v2720_v24 = vsel %vm2711_vm2, %v2717_v38, %v2719_v1  ;;  %v2722_v2 = vsel %vm2711_vm2, %v2719_v1, %v2721_v9  ;;  %v6868_v38 = vld [vmem:[%s9691_s2 + $0x150] sm:$0xff]  }
 0x1f0   : > { %6493 = vmatprep.subr.bf16.mxu0 %v6862_v10 }
 0x1f3   : > { %6494 = vmatpush3.bf16.msra.mxu0 %v6862_v10  ;;  %v2723_v10 = vrot.slane %v7515_v11, 4  ;;  %v9952_v11 = vld [vmem:[#allocation19_spill] sm:$0xff] }
 0x1f4   : > { %6495 = vmatprep.subr.bf16.mxu0 %v6864_v28 }
 0x1f5   : > { %6280 = vmatmul.mubr.bf16.gmra.mxu1 %v7720_v26  ;;  %v2724_v1 = vsel %vm2711_vm2, %v2721_v9, %v2723_v10  ;;  %v2726_v5 = vsel %vm2711_vm2, %v2723_v10, %v2725_v32  ;;  %v6870_v9 = vld [vmem:[%s9691_s2 + $0x140] sm:$0xff]  }
 0x1f6   : > { %6283 = vmatprep.mubr.bf16.mxu1 %v7743_v44  ;;  %6384 = vmatmul.mubr.bf16.gmra.mxu0 %v2720_v24  ;;  %v9930_v24 = vld [vmem:[#allocation49_spill] sm:$0xff] }
 0x1f7   : > { %6387 = vmatprep.mubr.bf16.mxu0 %v2722_v2  ;;  %6496 = vmatpush3.bf16.msra.mxu0 %v6864_v28  ;;  %v6869_v28 = vld [vmem:[%s9691_s2 + $0x148] sm:$0xff]   ;;  %v2729_v2 = vrot.slane %v9930_v24, 4 }
 0x1f8   : > { %6497 = vmatprep.subr.bf16.mxu0 %v6865_v37 }
 0x1fb   : > { %6498 = vmatpush3.bf16.msra.mxu0 %v6865_v37  ;;  %v2727_v37 = vrot.slane %v7560_v43, 4  ;;  %v9951_v43 = vld [vmem:[#allocation59_spill] sm:$0xff] }
 0x1fc   : > { %6499 = vmatprep.subr.bf16.mxu0 %v6866_v16 }
 0x1fd   : > { %6284 = vmatmul.mubr.bf16.gmra.mxu1 %v7766_v48  ;;  %v2728_v10 = vsel %vm2711_vm2, %v2725_v32, %v2727_v37 }
 0x1fe   : > { %6287 = vmatprep.mubr.bf16.mxu1 %v7789_v53  ;;  %6388 = vmatmul.mubr.bf16.gmra.mxu0 %v2724_v1  ;;  %v2731_v1 = vrot.slane %v7625_v34, 4 }
 0x1ff   : > { %6391 = vmatprep.mubr.bf16.mxu0 %v2726_v5  ;;  %6500 = vmatpush3.bf16.msra.mxu0 %v6866_v16  ;;  %v2730_v16 = vsel %vm2711_vm2, %v2727_v37, %v2729_v2  ;;  %v8140_v37 = vld [vmem:[%s9691_s2 + $0x1f8] sm:$0xff]  }
 0x200   : > { %6501 = vmatprep.subr.bf16.mxu0 %v6868_v38  ;;  %v2732_v5 = vsel %vm2711_vm2, %v2729_v2, %v2731_v1 }
 0x203   : > { %6502 = vmatpush3.bf16.msra.mxu0 %v6868_v38  ;;  %v2733_v38 = vrot.slane %v7654_v22, 4 }
 0x204   : > { %6503 = vmatprep.subr.bf16.mxu0 %v6869_v28 }
 0x205   : > { %6288 = vmatmul.mubr.bf16.gmra.mxu1 %v7812_v55  ;;  %v2734_v32 = vsel %vm2711_vm2, %v2731_v1, %v2733_v38  ;;  %v9932_v1 = vld [vmem:[#allocation4_spill] sm:$0xff] }
 0x206   : > { %6291 = vmatprep.mubr.bf16.mxu1 %v7835_v58  ;;  %6392 = vmatmul.mubr.bf16.gmra.mxu0 %v2728_v10  ;;  %v8145_v10 = vpop.f32.mrf.mxu1 }
 0x207   : > { %6395 = vmatprep.mubr.bf16.mxu0 %v2730_v16  ;;  %6504 = vmatpush3.bf16.msra.mxu0 %v6869_v28  ;;  %v2735_v28 = vrot.slane %v7685_v60, 4  ;;  %v9931_v16 = vld [vmem:[#allocation5_spill] sm:$0xff] }
 0x208   : > { %6505 = vmatprep.subr.bf16.mxu0 %v6870_v9 }
 0x209   : > { %v2736_v2 = vsel %vm2711_vm2, %v2733_v38, %v2735_v28  ;;  %v6860_v38 = vld [vmem:[%s9691_s2 + $0x130] sm:$0xff]  }
 0x20b   : > { %6506 = vmatpush3.bf16.msra.mxu0 %v6870_v9  ;;  %v2737_v9 = vrot.slane %v7709_v8, 4 }
 0x20c   : > { %6619 = vmatprep.subr.bf16.mxu0 %v8140_v37 }
 0x20d   : > { %6292 = vmatmul.mubr.bf16.gmra.mxu1 %v7863_v19  ;;  %v2738_v36 = vsel %vm2711_vm2, %v2735_v28, %v2737_v9  ;;  %v2740_v28 = vsel %vm2711_vm2, %v2737_v9, %v2739_v57  ;;  %v6867_v9 = vld [vmem:[%s9691_s2 + $0x120] sm:$0xff]  }
 0x20e   : > { %6295 = vmatprep.mubr.bf16.mxu1 %v7886_v33  ;;  %6396 = vmatmul.mubr.bf16.gmra.mxu0 %v2732_v5  ;;  %v9933_v5 = vpack.c.bf16 %v9931_v16, %v9932_v1  ;;  %v6863_v1 = vld [vmem:[%s9691_s2 + $0x128] sm:$0xff]  }
 0x20f   : > { %6399 = vmatprep.mubr.bf16.mxu0 %v2734_v32  ;;  %v8153_v32 = vpop.f32.mrf.mxu1 }
 0x211   : > { %v8156_v21 = vpop.f32.mrf.mxu1 }
 0x213   : > { %v8166_v16 = vpop.f32.mrf.mxu1 }
 0x214   : > { %9936 = vst [vmem:[#allocation2_spill] sm:$0xff] %v8166_v16  ;;  %v9943_v16 = vld [vmem:[#allocation99_spill] sm:$0xff] }
 0x215   : > { %6296 = vmatmul.mubr.bf16.gmra.mxu1 %v7911_v40  ;;  %v2753_v60 = vrot.slane %v9943_v16, 4  ;;  %v8222_v16 = vld [vmem:[%s9691_s2 + $0x1b8] sm:$0xff]  }
 0x216   : > { %6315 = vmatprep.mubr.bf16.mxu1 %v9933_v5  ;;  %6400 = vmatmul.mubr.bf16.gmra.mxu0 %v2736_v2  ;;  %v9935_v2 = vld [vmem:[#allocation16_spill] sm:$0xff]  ;;  %v8172_v5 = vpop.f32.mrf.mxu1 }
 0x217   : > { %6403 = vmatprep.mubr.bf16.mxu0 %v2738_v36  ;;  %v2742_v36 = vsel %vm2711_vm2, %v2739_v57, %v2741_v59  ;;  %v9937_v57 = vld [vmem:[#allocation21_spill] sm:$0xff] }
 0x21d   : > { %6316 = vmatmul.mubr.bf16.vlgmr.msra.gmra.mxu1 %v9934_v41  ;;  %v2743_v41 = vrot.slane %v7778_v25, 4 }
 0x21e   : > { %6428 = vmatpush3.bf16.msra.mxu1 %v8061_v50  ;;  %6319 = vmatprep.mubr.bf16.mxu1 %v9935_v2  ;;  %v2745_v50 = vrot.slane %v7801_v39, 4 }
 0x21f   : > { %6404 = vmatmul.mubr.bf16.gmra.mxu0 %v2740_v28  ;;  %6429 = vmatprep.subr.bf16.mxu1 %v6860_v38  ;;  %v8179_v28 = vpop.f32.mrf.mxu1 }
 0x220   : > { %6407 = vmatprep.mubr.bf16.mxu0 %v2742_v36  ;;  %v2744_v36 = vsel %vm2711_vm2, %v2741_v59, %v2743_v41  ;;  %v2746_v25 = vsel %vm2711_vm2, %v2743_v41, %v2745_v50  ;;  %v6872_v59 = vld [vmem:[%s9691_s2 + $0x110] sm:$0xff]   ;;  %v9940_v41 = vld [vmem:[#allocation29_spill] sm:$0xff] }
 0x221   : > { %v8188_v39 = vpop.f32.mrf.mxu1 }
 0x222   : > { %6430 = vmatpush3.bf16.msra.mxu1 %v6860_v38  ;;  %v6871_v38 = vld [vmem:[%s9691_s2 + $0x118] sm:$0xff]  }
 0x223   : > { %6431 = vmatprep.subr.bf16.mxu1 %v6863_v1 }
 0x225   : > { %6320 = vmatmul.mubr.bf16.gmra.mxu1 %v9937_v57 }
 0x226   : > { %6323 = vmatprep.mubr.bf16.mxu1 %v9938_v27  ;;  %6432 = vmatpush3.bf16.msra.mxu1 %v6863_v1  ;;  %v8195_v1 = vpop.f32.mrf.mxu1 }
 0x227   : > { %6408 = vmatmul.mubr.bf16.gmra.mxu0 %v2744_v36  ;;  %6433 = vmatprep.subr.bf16.mxu1 %v6867_v9  ;;  %9939 = vst [vmem:[#allocation8_spill] sm:$0xff] %v8195_v1  ;;  %v9941_v36 = vld [vmem:[#allocation33_spill] sm:$0xff]  ;;  %v2751_v1 = vrot.slane %v9942_v23, 4  ;;  %v9946_v23 = vld [vmem:[#allocation104_spill] sm:$0xff] }
 0x228   : > { %6411 = vmatprep.mubr.bf16.mxu0 %v2746_v25  ;;  %v2748_v25 = vsel %vm2711_vm2, %v2745_v50, %v2747_v7  ;;  %v8200_v8 = vpop.f32.mrf.mxu1  ;;  %v6874_v50 = vld [vmem:[%s9691_s2 + $0x100] sm:$0xff]   ;;  %v2755_v22 = vrot.slane %v9946_v23, 4 }
 0x22a   : > { %6434 = vmatpush3.bf16.msra.mxu1 %v6867_v9  ;;  %v2750_v9 = vsel %vm2711_vm2, %v2747_v7, %v2749_v52  ;;  %v8207_v4 = vpop.f32.mrf.mxu1  ;;  %v9945_v7 = vld [vmem:[#allocation42_spill] sm:$0xff]  ;;  %v2756_v24 = vsel %vm2711_vm2, %v2753_v60, %v2755_v22 }
 0x22b   : > { %6435 = vmatprep.subr.bf16.mxu1 %v6871_v38  ;;  %v3597_v45 = vrot.slane %v9945_v7, 4 }
 0x22d   : > { %6324 = vmatmul.mubr.bf16.gmra.mxu1 %v9940_v41 }
 0x22e   : > { %6327 = vmatprep.mubr.bf16.mxu1 %v9941_v36  ;;  %6436 = vmatpush3.bf16.msra.mxu1 %v6871_v38  ;;  %v9944_v38 = vld [vmem:[#allocation37_spill] sm:$0xff] }
 0x22f   : > { %6412 = vmatmul.mubr.bf16.gmra.mxu0 %v2748_v25  ;;  %6437 = vmatprep.subr.bf16.mxu1 %v6872_v59  ;;  %v2752_v25 = vsel %vm2711_vm2, %v2749_v52, %v2751_v1  ;;  %v2757_v52 = vrot.slane %v7947_v62, 4  ;;  %v9950_v62 = vld [vmem:[#allocation55_spill] sm:$0xff]  ;;  %v3595_v54 = vrot.slane %v9944_v38, 4 }
 0x230   : > { %6415 = vmatprep.mubr.bf16.mxu0 %v2750_v9  ;;  %v8216_v9 = vpop.f32.mrf.mxu1 }
 0x232   : > { %6438 = vmatpush3.bf16.msra.mxu1 %v6872_v59  ;;  %v2754_v59 = vsel %vm2711_vm2, %v2751_v1, %v2753_v60  ;;  %v8225_v34 = vpop.f32.mrf.mxu1  ;;  %v9949_v1 = vld [vmem:[#allocation51_spill] sm:$0xff] }
 0x233   : > { %6439 = vmatprep.subr.bf16.mxu1 %v6873_v61  ;;  %9947 = vst [vmem:[#allocation13_spill] sm:$0xff] %v8225_v34  ;;  %v3601_v40 = vrot.slane %v9949_v1, 4 }
 0x235   : > { %6328 = vmatmul.mubr.bf16.gmra.mxu1 %v9944_v38 }
 0x236   : > { %6331 = vmatprep.mubr.bf16.mxu1 %v9945_v7  ;;  %6440 = vmatpush3.bf16.msra.mxu1 %v6873_v61  ;;  %v8229_v61 = vpop.f32.mrf.mxu1 }
 0x237   : > { %6416 = vmatmul.mubr.bf16.gmra.mxu0 %v2752_v25  ;;  %6441 = vmatprep.subr.bf16.mxu1 %v6874_v50  ;;  %v9948_v25 = vld [vmem:[#allocation46_spill] sm:$0xff] }
 0x238   : > { %6419 = vmatprep.mubr.bf16.mxu0 %v2754_v59  ;;  %v2758_v59 = vsel %vm2711_vm2, %v2755_v22, %v2757_v52  ;;  %v8235_v23 = vpop.f32.mrf.mxu1  ;;  %v3587_v22 = vrot.slane %v9937_v57, 4  ;;  %v3591_v57 = vrot.slane %v9940_v41, 4  ;;  %v3599_v38 = vrot.slane %v9948_v25, 4 }
 0x23a   : > { %6442 = vmatpush3.bf16.msra.mxu1 %v6874_v50  ;;  %v2759_v50 = vrot.slane %v7974_v47, 4  ;;  %v8238_v34 = vpop.f32.mrf.mxu1  ;;  %v9953_v47 = vld [vmem:[#allocation63_spill] sm:$0xff] }
 0x23b   : > { %6555 = vmatprep.subr.bf16.mxu1 %v8222_v16 }
 0x23c   : > { %v2760_v49 = vsel %vm2711_vm2, %v2757_v52, %v2759_v50  ;;  %v8244_v60 = vpop.f32.mrf.mxu1 }
 0x23d   : > { %6332 = vmatmul.mubr.bf16.gmra.mxu1 %v9948_v25  ;;  %v3602_v25 = vsel %vm2711_vm2, %v3599_v38, %v3601_v40 }
 0x23e   : > { %6335 = vmatprep.mubr.bf16.mxu1 %v9949_v1 }
 0x23f   : > { %6420 = vmatmul.mubr.bf16.gmra.mxu0 %v2756_v24 }
 0x240   : > { %6423 = vmatprep.mubr.bf16.mxu0 %v2758_v59  ;;  %v3589_v59 = vrot.slane %v9938_v27, 4  ;;  %v6880_v27 = vld [vmem:[%s9691_s2 + $0x1e8] sm:$0xff]  }
 0x242   : > { %v3590_v50 = vsel %vm2711_vm2, %v3587_v22, %v3589_v59 }
 0x245   : > { %6336 = vmatmul.mubr.bf16.gmra.mxu1 %v9950_v62  ;;  %v8247_v24 = vpop.f32.mrf.mxu1 }
 0x246   : > { %6339 = vmatprep.mubr.bf16.mxu1 %v9951_v43 }
 0x247   : > { %6424 = vmatmul.mubr.bf16.gmra.mxu0 %v2760_v49  ;;  %v9955_v49 = vrot.slane %v9935_v2, 4  ;;  %v8258_v52 = vpop.f32.mrf.mxu1  ;;  %v3593_v2 = vrot.slane %v9941_v36, 4 }
 0x248   : > { %6507 = vmatprep.mubr.bf16.mxu0 %v9952_v11  ;;  %9956 = vst [vmem:[#allocation15_spill] sm:$0xff] %v8258_v52 }
 0x249   : > { %v3588_v11 = vsel %vm2711_vm2, %v9955_v49, %v3587_v22  ;;  %v8266_v3 = vpop.f32.mrf.mxu1  ;;  %v9958_v49 = vld [vmem:[#allocation71_spill] sm:$0xff]  ;;  %v6881_v22 = vld [vmem:[%s9691_s2 + $0x1e0] sm:$0xff]   ;;  %v3594_v41 = vsel %vm2711_vm2, %v3591_v57, %v3593_v2 }
 0x24a   : > { %9957 = vst [vmem:[#allocation5_spill] sm:$0xff] %v8266_v3 }
 0x24d   : > { %6340 = vmatmul.mubr.bf16.gmra.mxu1 %v9953_v47 }
 0x24e   : > { %6343 = vmatprep.mubr.bf16.mxu1 %v9954_v30 }
 0x24f   : > { %6508 = vmatmul.mubr.bf16.vlgmr.msra.gmra.mxu0 %v3588_v11  ;;  %v3592_v11 = vsel %vm2711_vm2, %v3589_v59, %v3591_v57  ;;  %v9964_v57 = vld [vmem:[#allocation83_spill] sm:$0xff] }
 0x250   : > { %6511 = vmatprep.mubr.bf16.mxu0 %v3590_v50  ;;  %6620 = vmatpush3.bf16.msra.mxu0 %v8140_v37  ;;  %v9959_v37 = vld [vmem:[#allocation75_spill] sm:$0xff]  ;;  %v8275_v50 = vpop.f32.mrf.mxu1 }
 0x251   : > { %6621 = vmatprep.subr.bf16.mxu0 %v6878_v15  ;;  %9960 = vst [vmem:[#allocation4_spill] sm:$0xff] %v8275_v50  ;;  %v9977_v50 = vld [vmem:[#allocation106_spill] sm:$0xff] }
 0x254   : > { %6622 = vmatpush3.bf16.msra.mxu0 %v6878_v15  ;;  %v6882_v15 = vld [vmem:[%s9691_s2 + $0x1d8] sm:$0xff]  }
 0x255   : > { %6344 = vmatmul.mubr.bf16.gmra.mxu1 %v9958_v49  ;;  %6623 = vmatprep.subr.bf16.mxu0 %v6880_v27  ;;  %v8278_v36 = vpop.f32.mrf.mxu1 }
 0x256   : > { %6347 = vmatprep.mubr.bf16.mxu1 %v9959_v37  ;;  %9961 = vst [vmem:[#allocation10_spill] sm:$0xff] %v8278_v36  ;;  %v9972_v36 = vld [vmem:[#allocation101_spill] sm:$0xff] }
 0x257   : > { %6512 = vmatmul.mubr.bf16.gmra.mxu0 %v3592_v11  ;;  %v8285_v59 = vpop.f32.mrf.mxu1  ;;  %v3598_v11 = vsel %vm2711_vm2, %v3595_v54, %v3597_v45 }
 0x258   : > { %6515 = vmatprep.mubr.bf16.mxu0 %v3594_v41  ;;  %6624 = vmatpush3.bf16.msra.mxu0 %v6880_v27  ;;  %9962 = vst [vmem:[#allocation16_spill] sm:$0xff] %v8285_v59  ;;  %v6884_v27 = vld [vmem:[%s9691_s2 + $0x1d0] sm:$0xff]   ;;  %v3596_v41 = vsel %vm2711_vm2, %v3593_v2, %v3595_v54  ;;  %v9967_v2 = vld [vmem:[#allocation87_spill] sm:$0xff]  ;;  %v6886_v54 = vld [vmem:[%s9691_s2 + $0x1c0] sm:$0xff]  }
 0x259   : > { %6625 = vmatprep.subr.bf16.mxu0 %v6881_v22  ;;  %v8294_v7 = vpop.f32.mrf.mxu1 }
 0x25a   : > { %9965 = vst [vmem:[#allocation19_spill] sm:$0xff] %v8294_v7  ;;  %v9971_v7 = vld [vmem:[#allocation96_spill] sm:$0xff] }
 0x25b   : > { %v8301_v59 = vpop.f32.mrf.mxu1 }
 0x25c   : > { %6626 = vmatpush3.bf16.msra.mxu0 %v6881_v22  ;;  %v6885_v22 = vld [vmem:[%s9691_s2 + $0x1c8] sm:$0xff]   ;;  %9966 = vst [vmem:[#allocation120_spill] sm:$0xff] %v8301_v59  ;;  %v3605_v59 = vrot.slane %v9951_v43, 4 }
 0x25d   : > { %6348 = vmatmul.mubr.bf16.gmra.mxu1 %v9963_v6  ;;  %6627 = vmatprep.subr.bf16.mxu0 %v6882_v15  ;;  %v9975_v43 = vld [vmem:[#allocation7_spill] sm:$0xff] }
 0x25e   : > { %6351 = vmatprep.mubr.bf16.mxu1 %v9964_v57 }
 0x25f   : > { %6516 = vmatmul.mubr.bf16.gmra.mxu0 %v3596_v41  ;;  %v3600_v41 = vsel %vm2711_vm2, %v3597_v45, %v3599_v38 }
 0x260   : > { %6519 = vmatprep.mubr.bf16.mxu0 %v3598_v11  ;;  %6628 = vmatpush3.bf16.msra.mxu0 %v6882_v15  ;;  %v9968_v15 = vld [vmem:[#allocation91_spill] sm:$0xff] }
 0x261   : > { %6629 = vmatprep.subr.bf16.mxu0 %v6884_v27 }
 0x264   : > { %6630 = vmatpush3.bf16.msra.mxu0 %v6884_v27  ;;  %v3603_v27 = vrot.slane %v9950_v62, 4  ;;  %v3609_v62 = vrot.slane %v9954_v30, 4  ;;  %v3153_v30 = vrot.slane %v7444_v56, 4 }
 0x265   : > { %6352 = vmatmul.mubr.bf16.gmra.mxu1 %v9967_v2  ;;  %6631 = vmatprep.subr.bf16.mxu0 %v6885_v22  ;;  %v8309_v11 = vpop.f32.mrf.mxu1 }
 0x266   : > { %6355 = vmatprep.mubr.bf16.mxu1 %v9968_v15  ;;  %9969 = vst [vmem:[#allocation121_spill] sm:$0xff] %v8309_v11  ;;  %v3604_v45 = vsel %vm2711_vm2, %v3601_v40, %v3603_v27  ;;  %v3606_v38 = vsel %vm2711_vm2, %v3603_v27, %v3605_v59 }
 0x267   : > { %6520 = vmatmul.mubr.bf16.gmra.mxu0 %v3600_v41  ;;  %v8313_v1 = vpop.f32.mrf.mxu1 }
 0x268   : > { %6523 = vmatprep.mubr.bf16.mxu0 %v3602_v25  ;;  %6632 = vmatpush3.bf16.msra.mxu0 %v6885_v22  ;;  %9970 = vst [vmem:[#allocation122_spill] sm:$0xff] %v8313_v1  ;;  %v3149_v25 = vrot.slane %v7390_v17, 4  ;;  %v3607_v22 = vrot.slane %v9953_v47, 4  ;;  %v3611_v47 = vrot.slane %v9958_v49, 4 }
 0x269   : > { %6633 = vmatprep.subr.bf16.mxu0 %v6886_v54  ;;  %v8319_v11 = vpop.f32.mrf.mxu1 }
 0x26a   : > { %9973 = vst [vmem:[#allocation123_spill] sm:$0xff] %v8319_v11  ;;  %v3608_v27 = vsel %vm2711_vm2, %v3605_v59, %v3607_v22  ;;  %v3610_v17 = vsel %vm2711_vm2, %v3607_v22, %v3609_v62  ;;  %v6876_v59 = vld [vmem:[%s9691_s2 + $0x1b0] sm:$0xff]  }
 0x26b   : > { %v8324_v41 = vpop.f32.mrf.mxu1 }
 0x26c   : > { %6634 = vmatpush3.bf16.msra.mxu0 %v6886_v54  ;;  %9974 = vst [vmem:[#allocation124_spill] sm:$0xff] %v8324_v41  ;;  %v3148_v54 = vrot.slane %v9975_v43, 4 }
 0x26d   : > { %6356 = vmatmul.mubr.bf16.gmra.mxu1 %v9971_v7 }
 0x26e   : > { %6359 = vmatprep.mubr.bf16.mxu1 %v9972_v36  ;;  %v3150_v40 = vsel %vm2711_vm2, %v3148_v54, %v3149_v25  ;;  %v3613_v54 = vrot.slane %v9959_v37, 4 }
 0x26f   : > { %6524 = vmatmul.mubr.bf16.gmra.mxu0 %v3604_v45 }
 0x270   : > { %6527 = vmatprep.mubr.bf16.mxu0 %v3606_v38  ;;  %v3151_v38 = vrot.slane %v7417_v51, 4  ;;  %v3614_v37 = vsel %vm2711_vm2, %v3611_v47, %v3613_v54 }
 0x275   : > { %v8328_v1 = vpop.f32.mrf.mxu1  ;;  %6360 = vmatmul.mubr.bf16.gmra.mxu1 %v9977_v50 }
 0x276   : > { %9976 = vst [vmem:[#allocation7_spill] sm:$0xff] %v8328_v1  ;;  %6443 = vmatprep.mubr.bf16.mxu1 %v3150_v40  ;;  %v3152_v40 = vsel %vm2711_vm2, %v3149_v25, %v3151_v38  ;;  %v6879_v25 = vld [vmem:[%s9691_s2 + $0x1a8] sm:$0xff]  }
 0x277   : > { %6528 = vmatmul.mubr.bf16.gmra.mxu0 %v3608_v27  ;;  %v8333_v45 = vpop.f32.mrf.mxu1  ;;  %v3154_v27 = vsel %vm2711_vm2, %v3151_v38, %v3153_v30  ;;  %v3615_v38 = vrot.slane %v9963_v6, 4 }
 0x278   : > { %9978 = vst [vmem:[#allocation125_spill] sm:$0xff] %v8333_v45  ;;  %6531 = vmatprep.mubr.bf16.mxu0 %v3610_v17  ;;  %v3612_v17 = vsel %vm2711_vm2, %v3609_v62, %v3611_v47  ;;  %v6883_v47 = vld [vmem:[%s9691_s2 + $0x1a0] sm:$0xff]   ;;  %v6887_v45 = vld [vmem:[%s9691_s2 + $0x198] sm:$0xff]  }
 0x279   : > { %v8337_v43 = vpop.f32.mrf.mxu1  ;;  %v3616_v6 = vsel %vm2711_vm2, %v3613_v54, %v3615_v38  ;;  %v3619_v54 = vrot.slane %v9967_v2, 4  ;;  %v9981_v2 = vld [vmem:[#allocation9_spill] sm:$0xff] }
 0x27a   : > { %9979 = vst [vmem:[#allocation126_spill] sm:$0xff] %v8337_v43 }
 0x27b   : > { %v8341_v1 = vpop.f32.mrf.mxu1 }
 0x27c   : > { %9980 = vst [vmem:[#allocation127_spill] sm:$0xff] %v8341_v1 }
 0x27d   : > { %v8348_v22 = vpop.f32.mrf.mxu1  ;;  %6444 = vmatmul.mubr.bf16.vlgmr.msra.gmra.mxu1 %v3152_v40  ;;  %v3155_v40 = vrot.slane %v7464_v18, 4 }
 0x27e   : > { %6556 = vmatpush3.bf16.msra.mxu1 %v8222_v16  ;;  %6447 = vmatprep.mubr.bf16.mxu1 %v3154_v27  ;;  %v3157_v16 = vrot.slane %v7484_v35, 4  ;;  %v3617_v27 = vrot.slane %v9964_v57, 4 }
 0x27f   : > { %6532 = vmatmul.mubr.bf16.gmra.mxu0 %v3612_v17  ;;  %v8353_v49 = vpop.f32.mrf.mxu1  ;;  %6557 = vmatprep.subr.bf16.mxu1 %v6876_v59 }
 0x280   : > { %6535 = vmatprep.mubr.bf16.mxu0 %v3614_v37  ;;  %v3156_v37 = vsel %vm2711_vm2, %v3153_v30, %v3155_v40  ;;  %v3158_v43 = vsel %vm2711_vm2, %v3155_v40, %v3157_v16  ;;  %v3618_v57 = vsel %vm2711_vm2, %v3615_v38, %v3617_v27  ;;  %v3159_v30 = vrot.slane %v7505_v20, 4  ;;  %v6888_v40 = vld [vmem:[%s9691_s2 + $0x190] sm:$0xff]  }
 0x281   : > { %v8360_v1 = vpop.f32.mrf.mxu1 }
 0x282   : > { %6558 = vmatpush3.bf16.msra.mxu1 %v6876_v59 }
 0x283   : > { %v8364_v62 = vpop.f32.mrf.mxu1  ;;  %6559 = vmatprep.subr.bf16.mxu1 %v6879_v25 }
 0x285   : > { %v8371_v17 = vpop.f32.mrf.mxu1  ;;  %6448 = vmatmul.mubr.bf16.gmra.mxu1 %v3156_v37 }
 0x286   : > { %6451 = vmatprep.mubr.bf16.mxu1 %v3158_v43  ;;  %6560 = vmatpush3.bf16.msra.mxu1 %v6879_v25  ;;  %v3161_v43 = vrot.slane %v7525_v13, 4  ;;  %v3621_v25 = vrot.slane %v9968_v15, 4 }
 0x287   : > { %6536 = vmatmul.mubr.bf16.gmra.mxu0 %v3616_v6  ;;  %v8375_v59 = vpop.f32.mrf.mxu1  ;;  %6561 = vmatprep.subr.bf16.mxu1 %v6883_v47 }
 0x288   : > { %6539 = vmatprep.mubr.bf16.mxu0 %v3618_v57  ;;  %v3160_v57 = vsel %vm2711_vm2, %v3157_v16, %v3159_v30  ;;  %v3162_v41 = vsel %vm2711_vm2, %v3159_v30, %v3161_v43  ;;  %v3622_v19 = vsel %vm2711_vm2, %v3619_v54, %v3621_v25  ;;  %v6889_v16 = vld [vmem:[%s9691_s2 + $0x188] sm:$0xff]   ;;  %v3163_v30 = vrot.slane %v7548_v46, 4 }
 0x289   : > { %v8382_v37 = vpop.f32.mrf.mxu1 }
 0x28a   : > { %6562 = vmatpush3.bf16.msra.mxu1 %v6883_v47  ;;  %v3620_v47 = vsel %vm2711_vm2, %v3617_v27, %v3619_v54  ;;  %v3623_v54 = vrot.slane %v9971_v7, 4 }
 0x28b   : > { %v8386_v6 = vpop.f32.mrf.mxu1  ;;  %6563 = vmatprep.subr.bf16.mxu1 %v6887_v45 }
 0x28d   : > { %v8393_v38 = vpop.f32.mrf.mxu1  ;;  %6452 = vmatmul.mubr.bf16.gmra.mxu1 %v3160_v57 }
 0x28e   : > { %v6189_v11 = vpop.f32.mrf.mxu0  ;;  %6455 = vmatprep.mubr.bf16.mxu1 %v3162_v41  ;;  %6564 = vmatpush3.bf16.msra.mxu1 %v6887_v45  ;;  %v9982_v41 = vld [vmem:[#allocation3_spill] sm:$0xff] }
 0x28f   : > { %v1947_v33 = vadd.f32 %v6189_v11, %v9981_v2  ;;  %6540 = vmatmul.mubr.bf16.gmra.mxu0 %v3620_v47  ;;  %v8398_v15 = vpop.f32.mrf.mxu1  ;;  %6565 = vmatprep.subr.bf16.mxu1 %v6888_v40  ;;  %v3165_v2 = vrot.slane %v7578_v29, 4  ;;  %v9984_v47 = vld [vmem:[#allocation11_spill] sm:$0xff]  ;;  %v3624_v29 = vsel %vm2711_vm2, %v3621_v25, %v3623_v54  ;;  %v3167_v25 = vrot.slane %v7611_v63, 4 }
 0x290   : > { %6543 = vmatprep.mubr.bf16.mxu0 %v3622_v19  ;;  %v1754_v57 = vpop.f32.mrf.mxu0  ;;  %v3625_v19 = vrot.slane %v9972_v36, 4 }
 0x291   : > { %v1945_v3 = vadd.f32 %v1754_v57, %v9982_v41  ;;  %v8406_v27 = vpop.f32.mrf.mxu1  ;;  %v8410_v11 = vadd.f32 %v8348_v22, %v1947_v33  ;;  %v6890_v57 = vld [vmem:[%s9691_s2 + $0x180] sm:$0xff]   ;;  %v3164_v22 = vsel %vm2711_vm2, %v3161_v43, %v3163_v30 }
 0x292   : > { %v6190_v45 = vpop.f32.mrf.mxu0  ;;  %6566 = vmatpush3.bf16.msra.mxu1 %v6888_v40  ;;  %v3626_v43 = vsel %vm2711_vm2, %v3623_v54, %v3625_v19 }
 0x293   : > { %9983 = vst [vmem:[#allocation9_spill] sm:$0xff] %v8410_v11  ;;  %v1948_v13 = vadd.f32 %v6190_v45, %v9984_v47  ;;  %v8414_v52 = vpop.f32.mrf.mxu1  ;;  %6567 = vmatprep.subr.bf16.mxu1 %v6889_v16  ;;  %v8421_v41 = vadd.f32 %v8353_v49, %v1945_v3  ;;  %v9986_v11 = vld [vmem:[#allocation6_spill] sm:$0xff]  ;;  %v3166_v45 = vsel %vm2711_vm2, %v3163_v30, %v3165_v2  ;;  %v9987_v3 = vld [vmem:[#allocation17_spill] sm:$0xff] }
 0x294   : > { %v1757_v33 = vpop.f32.mrf.mxu0  ;;  %v8439_v30 = vld [vmem:[%s9691_s2 + $0x238] sm:$0xff]  }
 0x295   : > { %9985 = vst [vmem:[#allocation3_spill] sm:$0xff] %v8421_v41  ;;  %v1946_v7 = vadd.f32 %v1757_v33, %v9986_v11  ;;  %v8425_v40 = vpop.f32.mrf.mxu1  ;;  %6456 = vmatmul.mubr.bf16.gmra.mxu1 %v3164_v22  ;;  %v8429_v47 = vadd.f32 %v8360_v1, %v1948_v13  ;;  %v3169_v11 = vrot.slane %v7642_v31, 4  ;;  %v3627_v22 = vrot.slane %v9977_v50, 4 }
 0x296   : > { %v6193_v36 = vpop.f32.mrf.mxu0  ;;  %6459 = vmatprep.mubr.bf16.mxu1 %v3166_v45  ;;  %6568 = vmatpush3.bf16.msra.mxu1 %v6889_v16  ;;  %v9989_v16 = vld [vmem:[#allocation12_spill] sm:$0xff] }
 0x297   : > { %v1951_v49 = vadd.f32 %v6193_v36, %v9987_v3  ;;  %6544 = vmatmul.mubr.bf16.gmra.mxu0 %v3624_v29  ;;  %v8433_v41 = vpop.f32.mrf.mxu1  ;;  %6569 = vmatprep.subr.bf16.mxu1 %v6890_v57  ;;  %v8442_v13 = vadd.f32 %v8364_v62, %v1946_v7  ;;  %v9991_v45 = vld [vmem:[#allocation20_spill] sm:$0xff]  ;;  %v3629_v3 = vrot.slane %v7962_v12, 4  ;;  %v9994_v12 = vld [vmem:[#allocation39_spill] sm:$0xff] }
 0x298   : > { %6547 = vmatprep.mubr.bf16.mxu0 %v3626_v43  ;;  %v1770_v1 = vpop.f32.mrf.mxu0 }
 0x299   : > { %9988 = vst [vmem:[#allocation11_spill] sm:$0xff] %v8442_v13  ;;  %v1949_v36 = vadd.f32 %v1770_v1, %v9989_v16  ;;  %v8446_v29 = vpop.f32.mrf.mxu1  ;;  %v8450_v54 = vadd.f32 %v8371_v17, %v1951_v49  ;;  %v9992_v1 = vld [vmem:[#allocation43_spill] sm:$0xff]  ;;  %v3168_v49 = vsel %vm2711_vm2, %v3165_v2, %v3167_v25  ;;  %v1961_v13 = vadd.f32 %v8153_v32, %v9994_v12 }
 0x29a   : > { %v6194_v33 = vpop.f32.mrf.mxu0  ;;  %6570 = vmatpush3.bf16.msra.mxu1 %v6890_v57  ;;  %v1963_v16 = vadd.f32 %v8145_v10, %v9992_v1  ;;  %v3628_v10 = vsel %vm2711_vm2, %v3625_v19, %v3627_v22  ;;  %v9995_v1 = vld [vmem:[#allocation26_spill] sm:$0xff]  ;;  %v3171_v32 = vrot.slane %v7673_v42, 4 }
 0x29b   : > { %9990 = vst [vmem:[#allocation6_spill] sm:$0xff] %v8450_v54  ;;  %v1952_v7 = vadd.f32 %v6194_v33, %v9991_v45  ;;  %v8454_v62 = vpop.f32.mrf.mxu1  ;;  %6683 = vmatprep.subr.bf16.mxu1 %v8439_v30  ;;  %v8459_v43 = vadd.f32 %v8375_v59, %v1949_v36  ;;  %v9993_v54 = vld [vmem:[#allocation14_spill] sm:$0xff]  ;;  %v3170_v33 = vsel %vm2711_vm2, %v3167_v25, %v3169_v11 }
 0x29c   : > { %v1773_v17 = vpop.f32.mrf.mxu0 }
 0x29d   : > { %v1950_v50 = vadd.f32 %v1773_v17, %v9993_v54  ;;  %v6269_v57 = vpop.f32.mrf.mxu1  ;;  %6460 = vmatmul.mubr.bf16.gmra.mxu1 %v3168_v49  ;;  %v8467_v45 = vadd.f32 %v8382_v37, %v1952_v7  ;;  %v3630_v17 = vsel %vm2711_vm2, %v3627_v22, %v3629_v3  ;;  %v9996_v37 = vld [vmem:[#allocation45_spill] sm:$0xff] }
 0x29e   : > { %v8471_v59 = vadd.f32 %v6269_v57, %v1963_v16  ;;  %v6197_v36 = vpop.f32.mrf.mxu0  ;;  %6463 = vmatprep.mubr.bf16.mxu1 %v3170_v33  ;;  %v1964_v7 = vadd.f32 %v8156_v21, %v9996_v37  ;;  %v9997_v16 = vld [vmem:[#allocation22_spill] sm:$0xff]  ;;  %v3173_v33 = vrot.slane %v7697_v14, 4  ;;  %v9998_v21 = vld [vmem:[#allocation28_spill] sm:$0xff] }
 0x29f   : > { %v1955_v2 = vadd.f32 %v6197_v36, %v9995_v1  ;;  %6548 = vmatmul.mubr.bf16.gmra.mxu0 %v3628_v10  ;;  %v2156_v54 = vpop.f32.mrf.mxu1  ;;  %v8477_v25 = vadd.f32 %v8386_v6, %v1950_v50  ;;  %v3631_v6 = vrot.slane %v7999_v0, 4  ;;  %v10027_v0 = vld [vmem:[#allocation72_spill] sm:$0xff] }
 0x2a0   : > { %v8481_v49 = vadd.f32 %v2156_v54, %v1961_v13  ;;  %6551 = vmatprep.mubr.bf16.mxu0 %v3630_v17  ;;  %v1786_v12 = vpop.f32.mrf.mxu0  ;;  %v9999_v54 = vld [vmem:[#allocation52_spill] sm:$0xff] }
 0x2a1   : > { %v1953_v19 = vadd.f32 %v1786_v12, %v9997_v16  ;;  %v6270_v57 = vpop.f32.mrf.mxu1  ;;  %v8487_v36 = vadd.f32 %v8393_v38, %v1955_v2  ;;  %v1967_v17 = vadd.f32 %v8172_v5, %v9999_v54  ;;  %v3172_v12 = vsel %vm2711_vm2, %v3169_v11, %v3171_v32  ;;  %v10000_v38 = vld [vmem:[#allocation24_spill] sm:$0xff]  ;;  %v10003_v54 = vld [vmem:[#allocation34_spill] sm:$0xff] }
 0x2a2   : > { %v8489_v22 = vadd.f32 %v6270_v57, %v1964_v7  ;;  %v6198_v50 = vpop.f32.mrf.mxu0  ;;  %v3174_v16 = vsel %vm2711_vm2, %v3171_v32, %v3173_v33  ;;  %v3632_v5 = vsel %vm2711_vm2, %v3629_v3, %v3631_v6  ;;  %v10004_v32 = vld [vmem:[#allocation54_spill] sm:$0xff]  ;;  %v3177_v6 = vrot.slane %v7743_v44, 4 }
 0x2a3   : > { %v1956_v13 = vadd.f32 %v6198_v50, %v9998_v21  ;;  %v8493_v10 = vpop.f32.mrf.mxu1  ;;  %v8496_v1 = vadd.f32 %v8398_v15, %v1953_v19  ;;  %v10001_v50 = vld [vmem:[#allocation48_spill] sm:$0xff] }
 0x2a4   : > { %v1789_v37 = vpop.f32.mrf.mxu0  ;;  %v1965_v21 = vadd.f32 %v8179_v28, %v10001_v50  ;;  %v10008_v50 = vld [vmem:[#allocation36_spill] sm:$0xff] }
 0x2a5   : > { %v1954_v2 = vadd.f32 %v1789_v37, %v10000_v38  ;;  %v6273_v7 = vpop.f32.mrf.mxu1  ;;  %6464 = vmatmul.mubr.bf16.gmra.mxu1 %v3172_v12  ;;  %v8504_v57 = vadd.f32 %v8406_v27, %v1956_v13  ;;  %v1968_v27 = vadd.f32 %v8188_v39, %v10004_v32  ;;  %v10006_v38 = vld [vmem:[#allocation30_spill] sm:$0xff]  ;;  %v10011_v32 = vld [vmem:[#allocation32_spill] sm:$0xff] }
 0x2a6   : > { %v8508_v15 = vadd.f32 %v6273_v7, %v1967_v17  ;;  %v6201_v19 = vpop.f32.mrf.mxu0  ;;  %6467 = vmatprep.mubr.bf16.mxu1 %v3174_v16  ;;  %v3175_v17 = vrot.slane %v7720_v26, 4 }
 0x2a7   : > { %v1959_v11 = vadd.f32 %v6201_v19, %v10003_v54  ;;  %6552 = vmatmul.mubr.bf16.gmra.mxu0 %v3632_v5  ;;  %v2172_v37 = vpop.f32.mrf.mxu1  ;;  %v8513_v12 = vadd.f32 %v8414_v52, %v1954_v2  ;;  %v10010_v19 = vld [vmem:[#allocation60_spill] sm:$0xff] }
 0x2a8   : > { %10002 = vst [vmem:[#allocation17_spill] sm:$0xff] %v8508_v15  ;;  %v8517_v13 = vadd.f32 %v2172_v37, %v1965_v21  ;;  %6635 = vmatprep.mubr.bf16.mxu0 %v7417_v51  ;;  %v1802_v28 = vpop.f32.mrf.mxu0  ;;  %v1971_v5 = vadd.f32 %v8200_v8, %v10010_v19  ;;  %v3176_v37 = vsel %vm2711_vm2, %v3173_v33, %v3175_v17  ;;  %v3181_v19 = vrot.slane %v7789_v53, 4 }
 0x2a9   : > { %v1957_v7 = vadd.f32 %v1802_v28, %v10006_v38  ;;  %v6274_v3 = vpop.f32.mrf.mxu1  ;;  %v8524_v16 = vadd.f32 %v8425_v40, %v1959_v11  ;;  %v3178_v11 = vsel %vm2711_vm2, %v3175_v17, %v3177_v6  ;;  %v10012_v38 = vld [vmem:[#allocation56_spill] sm:$0xff] }
 0x2aa   : > { %10005 = vst [vmem:[#allocation12_spill] sm:$0xff] %v8517_v13  ;;  %v8526_v52 = vadd.f32 %v6274_v3, %v1968_v27  ;;  %v6202_v2 = vpop.f32.mrf.mxu0  ;;  %v1969_v3 = vadd.f32 %v8207_v4, %v10012_v38  ;;  %v3179_v4 = vrot.slane %v7766_v48, 4 }
 0x2ab   : > { %v1960_v39 = vadd.f32 %v6202_v2, %v10008_v50  ;;  %v8529_v21 = vpop.f32.mrf.mxu1  ;;  %v8532_v51 = vadd.f32 %v8433_v41, %v1957_v7  ;;  %v10014_v2 = vld [vmem:[#allocation62_spill] sm:$0xff] }
 0x2ac   : > { %10007 = vst [vmem:[#allocation20_spill] sm:$0xff] %v8526_v52  ;;  %10009 = vst [vmem:[#allocation43_spill] sm:$0xff] %v8529_v21  ;;  %v1805_v54 = vpop.f32.mrf.mxu0  ;;  %v1972_v17 = vadd.f32 %v8216_v9, %v10014_v2  ;;  %v10054_v52 = vld [vmem:[#allocation121_spill] sm:$0xff] }
 0x2ad   : > { %v1958_v28 = vadd.f32 %v1805_v54, %v10011_v32  ;;  %v6277_v40 = vpop.f32.mrf.mxu1  ;;  %6468 = vmatmul.mubr.bf16.gmra.mxu1 %v3176_v37  ;;  %v8540_v27 = vadd.f32 %v8446_v29, %v1960_v39  ;;  %v10018_v54 = vld [vmem:[#allocation68_spill] sm:$0xff] }
 0x2ae   : > { %v8544_v41 = vadd.f32 %v6277_v40, %v1971_v5  ;;  %v8546_v7 = vpop.f32.mrf.mxu0  ;;  %6471 = vmatprep.mubr.bf16.mxu1 %v3178_v11  ;;  %v1975_v9 = vadd.f32 %v8229_v61, %v10018_v54  ;;  %v10019_v40 = vld [vmem:[#allocation64_spill] sm:$0xff]  ;;  %v10021_v61 = vld [vmem:[#allocation70_spill] sm:$0xff] }
 0x2af   : > { %6636 = vmatmul.mubr.bf16.vlgmr.msra.gmra.mxu0 %v7444_v56  ;;  %v2188_v8 = vpop.f32.mrf.mxu1  ;;  %v8550_v33 = vadd.f32 %v8454_v62, %v1958_v28  ;;  %v3182_v28 = vsel %vm2711_vm2, %v3179_v4, %v3181_v19  ;;  %v1973_v11 = vadd.f32 %v8235_v23, %v10019_v40  ;;  %v1976_v2 = vadd.f32 %v8238_v34, %v10021_v61  ;;  %v10023_v54 = vld [vmem:[#allocation66_spill] sm:$0xff]  ;;  %v10025_v34 = vld [vmem:[#allocation76_spill] sm:$0xff] }
 0x2b0   : > { %10013 = vst [vmem:[#allocation14_spill] sm:$0xff] %v8544_v41  ;;  %v8554_v50 = vadd.f32 %v2188_v8, %v1969_v3  ;;  %6639 = vmatprep.mubr.bf16.mxu0 %v7464_v18  ;;  %v8557_v29 = vpop.f32.mrf.mxu0  ;;  %v3180_v18 = vsel %vm2711_vm2, %v3177_v6, %v3179_v4  ;;  %v3183_v4 = vrot.slane %v7812_v55, 4  ;;  %v10053_v41 = vld [vmem:[#allocation93_spill] sm:$0xff] }
 0x2b1   : > { %v6278_v39 = vpop.f32.mrf.mxu1 }
 0x2b2   : > { %10015 = vst [vmem:[#allocation39_spill] sm:$0xff] %v8554_v50  ;;  %v8561_v5 = vadd.f32 %v6278_v39, %v1972_v17  ;;  %v8563_v56 = vpop.f32.mrf.mxu0  ;;  %v3185_v39 = vrot.slane %v7835_v58, 4  ;;  %v10042_v50 = vld [vmem:[#allocation80_spill] sm:$0xff] }
 0x2b3   : > { %v8565_v62 = vpop.f32.mrf.mxu1 }
 0x2b4   : > { %10016 = vst [vmem:[#allocation26_spill] sm:$0xff] %v8561_v5  ;;  %10017 = vst [vmem:[#allocation45_spill] sm:$0xff] %v8565_v62  ;;  %v8569_v37 = vpop.f32.mrf.mxu0  ;;  %v3186_v61 = vsel %vm2711_vm2, %v3183_v4, %v3185_v39 }
 0x2b5   : > { %v6281_v32 = vpop.f32.mrf.mxu1  ;;  %6472 = vmatmul.mubr.bf16.gmra.mxu1 %v3180_v18 }
 0x2b6   : > { %v8575_v38 = vadd.f32 %v6281_v32, %v1975_v9  ;;  %v8577_v3 = vpop.f32.mrf.mxu0  ;;  %6475 = vmatprep.mubr.bf16.mxu1 %v3182_v28  ;;  %v1974_v9 = vadd.f32 %v8244_v60, %v10023_v54  ;;  %v1979_v28 = vadd.f32 %v8247_v24, %v10025_v34  ;;  %v10028_v60 = vld [vmem:[#allocation15_spill] sm:$0xff] }
 0x2b7   : > { %6640 = vmatmul.mubr.bf16.gmra.mxu0 %v7484_v35  ;;  %v2204_v8 = vpop.f32.mrf.mxu1 }
 0x2b8   : > { %10020 = vst [vmem:[#allocation22_spill] sm:$0xff] %v8575_v38  ;;  %v8582_v17 = vadd.f32 %v2204_v8, %v1973_v11  ;;  %6643 = vmatprep.mubr.bf16.mxu0 %v7505_v20  ;;  %v8585_v6 = vpop.f32.mrf.mxu0  ;;  %v3184_v11 = vsel %vm2711_vm2, %v3181_v19, %v3183_v4  ;;  %v10034_v4 = vld [vmem:[#allocation92_spill] sm:$0xff] }
 0x2b9   : > { %v6282_v23 = vpop.f32.mrf.mxu1 }
 0x2ba   : > { %10022 = vst [vmem:[#allocation28_spill] sm:$0xff] %v8582_v17  ;;  %v8591_v18 = vadd.f32 %v6282_v23, %v1976_v2  ;;  %v8593_v35 = vpop.f32.mrf.mxu0  ;;  %v1977_v2 = vadd.f32 %v10028_v60, %v10027_v0  ;;  %v10036_v60 = vld [vmem:[#allocation74_spill] sm:$0xff] }
 0x2bb   : > { %v2207_v32 = vpop.f32.mrf.mxu1 }
 0x2bc   : > { %10024 = vst [vmem:[#allocation52_spill] sm:$0xff] %v8591_v18  ;;  %v8597_v40 = vadd.f32 %v2207_v32, %v1974_v9  ;;  %v8599_v20 = vpop.f32.mrf.mxu0  ;;  %v10030_v18 = vld [vmem:[#allocation38_spill] sm:$0xff]  ;;  %v10032_v32 = vld [vmem:[#allocation5_spill] sm:$0xff] }
 0x2bd   : > { %v6285_v8 = vpop.f32.mrf.mxu1  ;;  %6476 = vmatmul.mubr.bf16.gmra.mxu1 %v3184_v11  ;;  %v10031_v9 = vld [vmem:[#allocation78_spill] sm:$0xff]  ;;  %v3187_v11 = vrot.slane %v10034_v4, 4 }
 0x2be   : > { %10026 = vst [vmem:[#allocation24_spill] sm:$0xff] %v8597_v40  ;;  %v8605_v23 = vadd.f32 %v6285_v8, %v1979_v28  ;;  %v8607_v54 = vpop.f32.mrf.mxu0  ;;  %6479 = vmatprep.mubr.bf16.mxu1 %v3186_v61  ;;  %v1980_v34 = vadd.f32 %v10032_v32, %v10031_v9  ;;  %v10035_v28 = vld [vmem:[#allocation97_spill] sm:$0xff]  ;;  %v10039_v9 = vld [vmem:[#allocation84_spill] sm:$0xff] }
 0x2bf   : > { %6644 = vmatmul.mubr.bf16.gmra.mxu0 %v10030_v18  ;;  %v2220_v24 = vpop.f32.mrf.mxu1  ;;  %v3189_v8 = vrot.slane %v10035_v28, 4 }
 0x2c0   : > { %10029 = vst [vmem:[#allocation48_spill] sm:$0xff] %v8605_v23  ;;  %v8612_v40 = vadd.f32 %v2220_v24, %v1977_v2  ;;  %6647 = vmatprep.mubr.bf16.mxu0 %v7548_v46  ;;  %v8615_v19 = vpop.f32.mrf.mxu0  ;;  %v10037_v23 = vld [vmem:[#allocation4_spill] sm:$0xff]  ;;  %v10040_v2 = vld [vmem:[#allocation10_spill] sm:$0xff] }
 0x2c1   : > { %v6286_v0 = vpop.f32.mrf.mxu1  ;;  %v1978_v61 = vadd.f32 %v10037_v23, %v10036_v60  ;;  %v1983_v24 = vadd.f32 %v10040_v2, %v10039_v9  ;;  %v3190_v62 = vsel %vm2711_vm2, %v3187_v11, %v3189_v8  ;;  %v10043_v23 = vld [vmem:[#allocation16_spill] sm:$0xff]  ;;  %v10047_v9 = vld [vmem:[#allocation19_spill] sm:$0xff] }
 0x2c2   : > { %10033 = vst [vmem:[#allocation34_spill] sm:$0xff] %v8612_v40  ;;  %v8621_v17 = vadd.f32 %v6286_v0, %v1980_v34  ;;  %v8623_v18 = vpop.f32.mrf.mxu0  ;;  %v3188_v40 = vsel %vm2711_vm2, %v3185_v39, %v3187_v11  ;;  %v1981_v34 = vadd.f32 %v10043_v23, %v10042_v50 }
 0x2c3   : > { %v2223_v38 = vpop.f32.mrf.mxu1 }
 0x2c4   : > { %10038 = vst [vmem:[#allocation54_spill] sm:$0xff] %v8621_v17  ;;  %v8627_v32 = vadd.f32 %v2223_v38, %v1978_v61  ;;  %v8629_v46 = vpop.f32.mrf.mxu0  ;;  %v10045_v17 = vld [vmem:[#allocation47_spill] sm:$0xff]  ;;  %v10046_v61 = vld [vmem:[#allocation86_spill] sm:$0xff] }
 0x2c5   : > { %v6289_v5 = vpop.f32.mrf.mxu1  ;;  %6480 = vmatmul.mubr.bf16.gmra.mxu1 %v3188_v40  ;;  %v1984_v2 = vadd.f32 %v10047_v9, %v10046_v61  ;;  %v10049_v40 = vld [vmem:[#allocation102_spill] sm:$0xff]  ;;  %v1987_v61 = vadd.f32 %v10054_v52, %v10053_v41  ;;  %v10061_v41 = vld [vmem:[#allocation95_spill] sm:$0xff] }
 0x2c6   : > { %10041 = vst [vmem:[#allocation30_spill] sm:$0xff] %v8627_v32  ;;  %v8635_v0 = vadd.f32 %v6289_v5, %v1983_v24  ;;  %v8637_v60 = vpop.f32.mrf.mxu0  ;;  %6483 = vmatprep.mubr.bf16.mxu1 %v3190_v62  ;;  %v3191_v11 = vrot.slane %v10049_v40, 4  ;;  %v10050_v5 = vld [vmem:[#allocation82_spill] sm:$0xff]  ;;  %v10051_v24 = vld [vmem:[#allocation120_spill] sm:$0xff] }
 0x2c7   : > { %6648 = vmatmul.mubr.bf16.gmra.mxu0 %v10045_v17  ;;  %v2236_v38 = vpop.f32.mrf.mxu1  ;;  %v1982_v23 = vadd.f32 %v10051_v24, %v10050_v5 }
 0x2c8   : > { %10044 = vst [vmem:[#allocation36_spill] sm:$0xff] %v8635_v0  ;;  %v8642_v32 = vadd.f32 %v2236_v38, %v1981_v34  ;;  %6651 = vmatprep.mubr.bf16.mxu0 %v7611_v63  ;;  %v8645_v39 = vpop.f32.mrf.mxu0  ;;  %v3192_v63 = vsel %vm2711_vm2, %v3189_v8, %v3191_v11 }
 0x2c9   : > { %v6290_v50 = vpop.f32.mrf.mxu1 }
 0x2ca   : > { %10048 = vst [vmem:[#allocation60_spill] sm:$0xff] %v8642_v32  ;;  %v8650_v0 = vadd.f32 %v6290_v50, %v1984_v2  ;;  %v8652_v62 = vpop.f32.mrf.mxu0  ;;  %v10056_v32 = vld [vmem:[#allocation107_spill] sm:$0xff]  ;;  %v10058_v2 = vld [vmem:[#allocation88_spill] sm:$0xff]  ;;  %v10059_v50 = vld [vmem:[#allocation122_spill] sm:$0xff] }
 0x2cb   : > { %v2239_v17 = vpop.f32.mrf.mxu1  ;;  %v10057_v21 = vrot.slane %v10056_v32, 4  ;;  %v1985_v24 = vadd.f32 %v10059_v50, %v10058_v2  ;;  %v10066_v2 = vld [vmem:[#allocation124_spill] sm:$0xff] }
 0x2cc   : > { %10052 = vst [vmem:[#allocation32_spill] sm:$0xff] %v8650_v0  ;;  %v8656_v34 = vadd.f32 %v2239_v17, %v1982_v23  ;;  %v8658_v38 = vpop.f32.mrf.mxu0  ;;  %v10062_v23 = vld [vmem:[#allocation123_spill] sm:$0xff] }
 0x2cd   : > { %v6293_v9 = vpop.f32.mrf.mxu1  ;;  %6484 = vmatmul.mubr.bf16.gmra.mxu1 %v3192_v63  ;;  %v3194_v5 = vsel %vm2711_vm2, %v3191_v11, %v10057_v21  ;;  %v1988_v8 = vadd.f32 %v10062_v23, %v10061_v41  ;;  %v10065_v11 = vld [vmem:[#allocation90_spill] sm:$0xff]  ;;  %v10071_v23 = vld [vmem:[#allocation125_spill] sm:$0xff] }
 0x2ce   : > { %10055 = vst [vmem:[#allocation56_spill] sm:$0xff] %v8656_v34  ;;  %v8666_v0 = vadd.f32 %v6293_v9, %v1987_v61  ;;  %v8668_v13 = vpop.f32.mrf.mxu0  ;;  %6487 = vmatprep.mubr.bf16.mxu1 %v3194_v5  ;;  %v1986_v61 = vadd.f32 %v10066_v2, %v10065_v11  ;;  %v10070_v41 = vld [vmem:[#allocation98_spill] sm:$0xff] }
 0x2cf   : > { %6652 = vmatmul.mubr.bf16.gmra.mxu0 %v7642_v31  ;;  %v2252_v52 = vpop.f32.mrf.mxu1  ;;  %v10067_v31 = vld [vmem:[#allocation103_spill] sm:$0xff]  ;;  %v10075_v2 = vld [vmem:[#allocation126_spill] sm:$0xff] }
 0x2d0   : > { %10060 = vst [vmem:[#allocation62_spill] sm:$0xff] %v8666_v0  ;;  %v8673_v17 = vadd.f32 %v2252_v52, %v1985_v24  ;;  %6655 = vmatprep.mubr.bf16.mxu0 %v7673_v42  ;;  %v8676_v63 = vpop.f32.mrf.mxu0  ;;  %v10068_v0 = vld [vmem:[#allocation7_spill] sm:$0xff]  ;;  %v10069_v42 = vld [vmem:[#allocation113_spill] sm:$0xff] }
 0x2d1   : > { %10064 = vst [vmem:[#allocation64_spill] sm:$0xff] %v8676_v63  ;;  %v6294_v21 = vpop.f32.mrf.mxu1  ;;  %v1991_v34 = vadd.f32 %v10068_v0, %v10067_v31  ;;  %v10074_v0 = vld [vmem:[#allocation105_spill] sm:$0xff] }
 0x2d2   : > { %10063 = vst [vmem:[#allocation68_spill] sm:$0xff] %v8673_v17  ;;  %v8680_v9 = vadd.f32 %v6294_v21, %v1988_v8  ;;  %v8682_v50 = vpop.f32.mrf.mxu0  ;;  %v1989_v17 = vadd.f32 %v10071_v23, %v10070_v41  ;;  %v10073_v21 = vld [vmem:[#allocation18_spill] sm:$0xff]  ;;  %v10077_v41 = vld [vmem:[#allocation100_spill] sm:$0xff] }
 0x2d3   : > { %v2255_v5 = vpop.f32.mrf.mxu1 }
 0x2d4   : > { %v8686_v15 = vadd.f32 %v2255_v5, %v1986_v61  ;;  %v8688_v24 = vpop.f32.mrf.mxu0  ;;  %v1992_v61 = vadd.f32 %v10075_v2, %v10074_v0  ;;  %v10081_v2 = vld [vmem:[#allocation9_spill] sm:$0xff] }
 0x2d5   : > { %v6297_v52 = vpop.f32.mrf.mxu1  ;;  %6488 = vmatmul.mubr.bf16.gmra.mxu1 %v10069_v42 }
 0x2d6   : > { %v8693_v63 = vadd.f32 %v6297_v52, %v1991_v34  ;;  %v8695_v8 = vpop.f32.mrf.mxu0  ;;  %6571 = vmatprep.mubr.bf16.mxu1 %v10073_v21  ;;  %v10078_v34 = vld [vmem:[#allocation127_spill] sm:$0xff] }
 0x2d7   : > { %6656 = vmatmul.mubr.bf16.gmra.mxu0 %v7697_v14  ;;  %v2268_v11 = vpop.f32.mrf.mxu1  ;;  %v1990_v52 = vadd.f32 %v10078_v34, %v10077_v41  ;;  %v6892_v14 = vld [vmem:[%s9691_s2 + $0x230] sm:$0xff]   ;;  %v6893_v34 = vld [vmem:[%s9691_s2 + $0x228] sm:$0xff]  }
 0x2d8   : > { %10072 = vst [vmem:[#allocation70_spill] sm:$0xff] %v8693_v63  ;;  %v8701_v5 = vadd.f32 %v2268_v11, %v1989_v17  ;;  %6659 = vmatprep.mubr.bf16.mxu0 %v7720_v26  ;;  %v8704_v31 = vpop.f32.mrf.mxu0  ;;  %v10080_v11 = vld [vmem:[#allocation23_spill] sm:$0xff] }
 0x2d9   : > { %v6298_v42 = vpop.f32.mrf.mxu1 }
 0x2da   : > { %10076 = vst [vmem:[#allocation66_spill] sm:$0xff] %v8701_v5  ;;  %v8708_v23 = vadd.f32 %v6298_v42, %v1992_v61  ;;  %v8710_v63 = vpop.f32.mrf.mxu0  ;;  %v10082_v61 = vld [vmem:[#allocation27_spill] sm:$0xff] }
 0x2db   : > { %v2271_v21 = vpop.f32.mrf.mxu1 }
 0x2dc   : > { %v8715_v0 = vadd.f32 %v2271_v21, %v1990_v52  ;;  %v8717_v17 = vpop.f32.mrf.mxu0  ;;  %v10083_v52 = vld [vmem:[#allocation3_spill] sm:$0xff] }
 0x2dd   : > { %v6317_v26 = vpop.f32.mrf.mxu1  ;;  %6572 = vmatmul.mubr.bf16.vlgmr.msra.gmra.mxu1 %v10080_v11 }
 0x2de   : > { %10079 = vst [vmem:[#allocation76_spill] sm:$0xff] %v8715_v0  ;;  %v2623_v5 = vadd.f32 %v6317_v26, %v10081_v2  ;;  %6684 = vmatpush3.bf16.msra.mxu1 %v8439_v30  ;;  %6575 = vmatprep.mubr.bf16.mxu1 %v10082_v61 }
 0x2df   : > { %v8723_v42 = vpop.f32.mrf.mxu0  ;;  %6660 = vmatmul.mubr.bf16.gmra.mxu0 %v7743_v44  ;;  %v2430_v41 = vpop.f32.mrf.mxu1  ;;  %6685 = vmatprep.subr.bf16.mxu1 %v6892_v14 }
 0x2e0   : > { %v2621_v21 = vadd.f32 %v2430_v41, %v10083_v52  ;;  %6663 = vmatprep.mubr.bf16.mxu0 %v7766_v48  ;;  %v8732_v26 = vadd.f32 %v8546_v7, %v2623_v5  ;;  %v6894_v48 = vld [vmem:[%s9691_s2 + $0x220] sm:$0xff]   ;;  %v10086_v41 = vld [vmem:[#allocation11_spill] sm:$0xff] }
 0x2e1   : > { %v8734_v30 = vpop.f32.mrf.mxu0  ;;  %v6318_v11 = vpop.f32.mrf.mxu1 }
 0x2e2   : > { %10084 = vst [vmem:[#allocation72_spill] sm:$0xff] %v8732_v26  ;;  %v2624_v2 = vadd.f32 %v6318_v11, %v8429_v47  ;;  %6686 = vmatpush3.bf16.msra.mxu1 %v6892_v14  ;;  %v8738_v44 = vadd.f32 %v8557_v29, %v2621_v21  ;;  %v10087_v14 = vld [vmem:[#allocation31_spill] sm:$0xff]  ;;  %v10088_v29 = vld [vmem:[#allocation6_spill] sm:$0xff] }
 0x2e3   : > { %v8740_v61 = vpop.f32.mrf.mxu0  ;;  %v2433_v0 = vpop.f32.mrf.mxu1  ;;  %6687 = vmatprep.subr.bf16.mxu1 %v6893_v34  ;;  %v10089_v11 = vld [vmem:[#allocation35_spill] sm:$0xff] }
 0x2e4   : > { %10085 = vst [vmem:[#allocation15_spill] sm:$0xff] %v8738_v44  ;;  %v2622_v7 = vadd.f32 %v2433_v0, %v10086_v41  ;;  %v8747_v5 = vadd.f32 %v8563_v56, %v2624_v2  ;;  %v6895_v56 = vld [vmem:[%s9691_s2 + $0x218] sm:$0xff]  }
 0x2e5   : > { %v8749_v52 = vpop.f32.mrf.mxu0  ;;  %v6321_v47 = vpop.f32.mrf.mxu1  ;;  %6576 = vmatmul.mubr.bf16.gmra.mxu1 %v10087_v14 }
 0x2e6   : > { %v2627_v21 = vadd.f32 %v6321_v47, %v10088_v29  ;;  %6579 = vmatprep.mubr.bf16.mxu1 %v10089_v11  ;;  %6688 = vmatpush3.bf16.msra.mxu1 %v6893_v34  ;;  %v8755_v44 = vadd.f32 %v8569_v37, %v2622_v7 }
 0x2e7   : > { %v8757_v26 = vpop.f32.mrf.mxu0  ;;  %6664 = vmatmul.mubr.bf16.gmra.mxu0 %v7789_v53  ;;  %v2446_v0 = vpop.f32.mrf.mxu1  ;;  %6689 = vmatprep.subr.bf16.mxu1 %v6894_v48 }
 0x2e8   : > { %v2625_v2 = vadd.f32 %v2446_v0, %v8459_v43  ;;  %6667 = vmatprep.mubr.bf16.mxu0 %v7812_v55  ;;  %v8766_v41 = vadd.f32 %v8577_v3, %v2627_v21  ;;  %v6896_v55 = vld [vmem:[%s9691_s2 + $0x210] sm:$0xff]  }
 0x2e9   : > { %v8768_v34 = vpop.f32.mrf.mxu0  ;;  %v6322_v37 = vpop.f32.mrf.mxu1  ;;  %v10091_v21 = vld [vmem:[#allocation44_spill] sm:$0xff] }
 0x2ea   : > { %v2628_v7 = vadd.f32 %v6322_v37, %v8467_v45  ;;  %6690 = vmatpush3.bf16.msra.mxu1 %v6894_v48  ;;  %v8772_v53 = vadd.f32 %v8585_v6, %v2625_v2  ;;  %v10090_v48 = vld [vmem:[#allocation40_spill] sm:$0xff] }
 0x2eb   : > { %v8774_v47 = vpop.f32.mrf.mxu0  ;;  %v2449_v14 = vpop.f32.mrf.mxu1  ;;  %6691 = vmatprep.subr.bf16.mxu1 %v6895_v56 }
 0x2ec   : > { %v2626_v43 = vadd.f32 %v2449_v14, %v8477_v25  ;;  %v8781_v3 = vadd.f32 %v8593_v35, %v2628_v7  ;;  %v6897_v35 = vld [vmem:[%s9691_s2 + $0x208] sm:$0xff]  }
 0x2ed   : > { %v8783_v29 = vpop.f32.mrf.mxu0  ;;  %v6325_v45 = vpop.f32.mrf.mxu1  ;;  %6580 = vmatmul.mubr.bf16.gmra.mxu1 %v10090_v48 }
 0x2ee   : > { %v2631_v6 = vadd.f32 %v6325_v45, %v8487_v36  ;;  %6583 = vmatprep.mubr.bf16.mxu1 %v10091_v21  ;;  %6692 = vmatpush3.bf16.msra.mxu1 %v6895_v56  ;;  %v8789_v11 = vadd.f32 %v8599_v20, %v2626_v43  ;;  %v10093_v45 = vld [vmem:[#allocation53_spill] sm:$0xff] }
 0x2ef   : > { %v8791_v0 = vpop.f32.mrf.mxu0  ;;  %6668 = vmatmul.mubr.bf16.gmra.mxu0 %v7835_v58  ;;  %v2462_v25 = vpop.f32.mrf.mxu1  ;;  %6693 = vmatprep.subr.bf16.mxu1 %v6896_v55 }
 0x2f0   : > { %v2629_v2 = vadd.f32 %v2462_v25, %v8496_v1  ;;  %6671 = vmatprep.mubr.bf16.mxu0 %v10034_v4  ;;  %v8800_v36 = vadd.f32 %v8607_v54, %v2631_v6  ;;  %v6898_v1 = vld [vmem:[%s9691_s2 + $0x200] sm:$0xff]  }
 0x2f1   : > { %v8802_v56 = vpop.f32.mrf.mxu0  ;;  %v6326_v20 = vpop.f32.mrf.mxu1 }
 0x2f2   : > { %v2632_v37 = vadd.f32 %v6326_v20, %v8504_v57  ;;  %6694 = vmatpush3.bf16.msra.mxu1 %v6896_v55  ;;  %v8806_v58 = vadd.f32 %v8615_v19, %v2629_v2  ;;  %v10092_v55 = vld [vmem:[#allocation49_spill] sm:$0xff] }
 0x2f3   : > { %v8808_v7 = vpop.f32.mrf.mxu0  ;;  %v2465_v14 = vpop.f32.mrf.mxu1  ;;  %6695 = vmatprep.subr.bf16.mxu1 %v6897_v35 }
 0x2f4   : > { %v2630_v54 = vadd.f32 %v2465_v14, %v8513_v12  ;;  %v8815_v4 = vadd.f32 %v8623_v18, %v2632_v37  ;;  %v10094_v37 = vld [vmem:[#allocation57_spill] sm:$0xff] }
 0x2f5   : > { %v8817_v43 = vpop.f32.mrf.mxu0  ;;  %v6329_v57 = vpop.f32.mrf.mxu1  ;;  %6584 = vmatmul.mubr.bf16.gmra.mxu1 %v10092_v55 }
 0x2f6   : > { %v2635_v19 = vadd.f32 %v6329_v57, %v8524_v16  ;;  %6587 = vmatprep.mubr.bf16.mxu1 %v10093_v45  ;;  %6696 = vmatpush3.bf16.msra.mxu1 %v6897_v35  ;;  %v8823_v48 = vadd.f32 %v8629_v46, %v2630_v54  ;;  %v10096_v54 = vld [vmem:[#allocation41_spill] sm:$0xff] }
 0x2f7   : > { %v8825_v6 = vpop.f32.mrf.mxu0  ;;  %6672 = vmatmul.mubr.bf16.gmra.mxu0 %v10035_v28  ;;  %v2478_v12 = vpop.f32.mrf.mxu1  ;;  %6697 = vmatprep.subr.bf16.mxu1 %v6898_v1 }
 0x2f8   : > { %v2633_v18 = vadd.f32 %v2478_v12, %v8532_v51  ;;  %6675 = vmatprep.mubr.bf16.mxu0 %v10049_v40  ;;  %v8831_v21 = vadd.f32 %v8637_v60, %v2635_v19  ;;  %v10098_v19 = vld [vmem:[#allocation109_spill] sm:$0xff] }
 0x2f9   : > { %v8833_v16 = vpop.f32.mrf.mxu0  ;;  %v6330_v25 = vpop.f32.mrf.mxu1 }
 0x2fa   : > { %v2636_v35 = vadd.f32 %v6330_v25, %v8540_v27  ;;  %6698 = vmatpush3.bf16.msra.mxu1 %v6898_v1  ;;  %v8837_v46 = vadd.f32 %v8645_v39, %v2633_v18  ;;  %v10095_v27 = vld [vmem:[#allocation61_spill] sm:$0xff]  ;;  %v10099_v25 = vld [vmem:[#allocation64_spill] sm:$0xff] }
 0x2fb   : > { %v8839_v2 = vpop.f32.mrf.mxu0  ;;  %v2481_v28 = vpop.f32.mrf.mxu1 }
 0x2fc   : > { %v2634_v20 = vadd.f32 %v2481_v28, %v8550_v33  ;;  %v8843_v51 = vadd.f32 %v8652_v62, %v2636_v35  ;;  %v10097_v62 = vld [vmem:[#allocation2_spill] sm:$0xff] }
 0x2fd   : > { %v8845_v40 = vpop.f32.mrf.mxu0  ;;  %v6333_v60 = vpop.f32.mrf.mxu1  ;;  %6588 = vmatmul.mubr.bf16.gmra.mxu1 %v10094_v37  ;;  %v1962_v57 = vadd.f32 %v10097_v62, %v10096_v54  ;;  %v10100_v37 = vld [vmem:[#allocation65_spill] sm:$0xff]  ;;  %v10103_v54 = vld [vmem:[#allocation114_spill] sm:$0xff]  ;;  %v10104_v62 = vld [vmem:[#allocation111_spill] sm:$0xff] }
 0x2fe   : > { %v2639_v14 = vadd.f32 %v6333_v60, %v8471_v59  ;;  %6591 = vmatprep.mubr.bf16.mxu1 %v10095_v27  ;;  %v8851_v39 = vadd.f32 %v8658_v38, %v2634_v20 }
 0x2ff   : > { %v8853_v1 = vpop.f32.mrf.mxu0  ;;  %6676 = vmatmul.mubr.bf16.gmra.mxu0 %v10056_v32  ;;  %v2494_v33 = vpop.f32.mrf.mxu1  ;;  %v2300_v38 = vadd.f32 %v8493_v10, %v1962_v57  ;;  %v10102_v10 = vld [vmem:[#allocation69_spill] sm:$0xff]  ;;  %v10105_v57 = vpack.c.bf16 %v10103_v54, %v10104_v62 }
 0x300   : > { %v2637_v55 = vadd.f32 %v2494_v33, %v8481_v49  ;;  %6679 = vmatprep.mubr.bf16.mxu0 %v10098_v19  ;;  %v8861_v45 = vadd.f32 %v8668_v13, %v2639_v14  ;;  %v10101_v14 = vld [vmem:[#allocation17_spill] sm:$0xff]  ;;  %v10107_v19 = vld [vmem:[#allocation8_spill] sm:$0xff] }
 0x301   : > { %v8863_v59 = vpop.f32.mrf.mxu0  ;;  %v6334_v12 = vpop.f32.mrf.mxu1 }
 0x302   : > { %v2640_v18 = vadd.f32 %v6334_v12, %v8489_v22  ;;  %v8868_v32 = vadd.f32 %v10099_v25, %v2637_v55  ;;  %v10106_v55 = vld [vmem:[#allocation50_spill] sm:$0xff] }
 0x303   : > { %v8870_v35 = vpop.f32.mrf.mxu0  ;;  %v2497_v28 = vpop.f32.mrf.mxu1  ;;  %v1966_v12 = vadd.f32 %v10107_v19, %v10106_v55  ;;  %v10115_v19 = vld [vmem:[#allocation14_spill] sm:$0xff] }
 0x304   : > { %v2638_v20 = vadd.f32 %v2497_v28, %v2300_v38  ;;  %v8873_v49 = vadd.f32 %v8682_v50, %v2640_v18  ;;  %v10108_v38 = vld [vmem:[#allocation12_spill] sm:$0xff] }
 0x305   : > { %v8875_v60 = vpop.f32.mrf.mxu0  ;;  %v6337_v13 = vpop.f32.mrf.mxu1  ;;  %6592 = vmatmul.mubr.bf16.gmra.mxu1 %v10100_v37  ;;  %v10111_v37 = vld [vmem:[#allocation20_spill] sm:$0xff] }
 0x306   : > { %v2643_v27 = vadd.f32 %v6337_v13, %v10101_v14  ;;  %6595 = vmatprep.mubr.bf16.mxu1 %v10102_v10  ;;  %v8881_v22 = vadd.f32 %v8688_v24, %v2638_v20  ;;  %v10110_v24 = vld [vmem:[#allocation43_spill] sm:$0xff] }
 0x307   : > { %v8883_v33 = vpop.f32.mrf.mxu0  ;;  %6680 = vmatmul.mubr.bf16.gmra.mxu0 %v10105_v57  ;;  %v2510_v50 = vpop.f32.mrf.mxu1  ;;  %v2304_v20 = vadd.f32 %v10110_v24, %v1966_v12  ;;  %v10116_v12 = vld [vmem:[#allocation77_spill] sm:$0xff]  ;;  %v10118_v24 = vld [vmem:[#allocation58_spill] sm:$0xff] }
 0x308   : > { %v2641_v18 = vadd.f32 %v2510_v50, %v10108_v38  ;;  %v8892_v25 = vadd.f32 %v8695_v8, %v2643_v27  ;;  %v10114_v27 = vld [vmem:[#allocation73_spill] sm:$0xff] }
 0x309   : > { %v8894_v28 = vpop.f32.mrf.mxu0  ;;  %v6338_v13 = vpop.f32.mrf.mxu1 }
 0x30a   : > { %10109 = vst [vmem:[#allocation38_spill] sm:$0xff] %v8892_v25  ;;  %v2644_v14 = vadd.f32 %v6338_v13, %v10111_v37  ;;  %v8899_v10 = vadd.f32 %v8704_v31, %v2641_v18 }
 0x30b   : > { %v8901_v54 = vpop.f32.mrf.mxu0  ;;  %v2513_v62 = vpop.f32.mrf.mxu1 }
 0x30c   : > { %10112 = vst [vmem:[#allocation78_spill] sm:$0xff] %v8899_v10  ;;  %v2642_v57 = vadd.f32 %v2513_v62, %v2304_v20  ;;  %v8904_v55 = vadd.f32 %v8710_v63, %v2644_v14  ;;  %v10119_v20 = vld [vmem:[#allocation13_spill] sm:$0xff]  ;;  %v10120_v63 = vld [vmem:[#allocation39_spill] sm:$0xff] }
 0x30d   : > { %v8906_v50 = vpop.f32.mrf.mxu0  ;;  %v6341_v8 = vpop.f32.mrf.mxu1  ;;  %6596 = vmatmul.mubr.bf16.gmra.mxu1 %v10114_v27  ;;  %v1970_v37 = vadd.f32 %v10119_v20, %v10118_v24  ;;  %v10125_v20 = vld [vmem:[#allocation22_spill] sm:$0xff] }
 0x30e   : > { %10113 = vst [vmem:[#allocation5_spill] sm:$0xff] %v8904_v55  ;;  %v2647_v38 = vadd.f32 %v6341_v8, %v10115_v19  ;;  %6599 = vmatprep.mubr.bf16.mxu1 %v10116_v12  ;;  %v8912_v13 = vadd.f32 %v8717_v17, %v2642_v57  ;;  %v10121_v8 = vld [vmem:[#allocation45_spill] sm:$0xff]  ;;  %v10122_v12 = vld [vmem:[#allocation26_spill] sm:$0xff] }
 0x30f   : > { %v8914_v31 = vpop.f32.mrf.mxu0  ;;  %v2526_v18 = vpop.f32.mrf.mxu1  ;;  %v2308_v19 = vadd.f32 %v10121_v8, %v1970_v37  ;;  %v10126_v37 = vld [vmem:[#allocation85_spill] sm:$0xff]  ;;  %v10128_v8 = vld [vmem:[#allocation28_spill] sm:$0xff] }
 0x310   : > { %10117 = vst [vmem:[#allocation92_spill] sm:$0xff] %v8912_v13  ;;  %v2645_v14 = vadd.f32 %v2526_v18, %v10120_v63  ;;  %v8920_v62 = vadd.f32 %v8723_v42, %v2647_v38  ;;  %v10124_v38 = vld [vmem:[#allocation81_spill] sm:$0xff] }
 0x311   : > { %v8922_v55 = vpop.f32.mrf.mxu0  ;;  %v6342_v27 = vpop.f32.mrf.mxu1 }
 0x312   : > { %v2648_v10 = vadd.f32 %v6342_v27, %v10122_v12  ;;  %v8927_v17 = vadd.f32 %v8734_v30, %v2645_v14  ;;  %v10130_v12 = vld [vmem:[#allocation52_spill] sm:$0xff] }
 0x313   : > { %v8929_v57 = vpop.f32.mrf.mxu0  ;;  %v2529_v13 = vpop.f32.mrf.mxu1 }
 0x314   : > { %v2646_v25 = vadd.f32 %v2529_v13, %v2308_v19  ;;  %v8932_v24 = vadd.f32 %v8740_v61, %v2648_v10 }
 0x315   : > { %v8934_v18 = vpop.f32.mrf.mxu0  ;;  %v6345_v42 = vpop.f32.mrf.mxu1  ;;  %6600 = vmatmul.mubr.bf16.gmra.mxu1 %v10124_v38 }
 0x316   : > { %10123 = vst [vmem:[#allocation97_spill] sm:$0xff] %v8932_v24  ;;  %v2651_v63 = vadd.f32 %v6345_v42, %v10125_v20  ;;  %6603 = vmatprep.mubr.bf16.mxu1 %v10126_v37  ;;  %v8940_v27 = vadd.f32 %v8749_v52, %v2646_v25  ;;  %v10132_v25 = vld [vmem:[#allocation24_spill] sm:$0xff]  ;;  %v10136_v24 = vld [vmem:[#allocation94_spill] sm:$0xff] }
 0x317   : > { %v8942_v30 = vpop.f32.mrf.mxu0  ;;  %v2542_v14 = vpop.f32.mrf.mxu1 }
 0x318   : > { %10127 = vst [vmem:[#allocation74_spill] sm:$0xff] %v8940_v27  ;;  %v2649_v13 = vadd.f32 %v2542_v14, %v10128_v8  ;;  %v8946_v61 = vadd.f32 %v8757_v26, %v2651_v63  ;;  %v10134_v63 = vld [vmem:[#allocation89_spill] sm:$0xff]  ;;  %v10135_v8 = vld [vmem:[#allocation48_spill] sm:$0xff] }
 0x319   : > { %v8948_v10 = vpop.f32.mrf.mxu0  ;;  %v6346_v19 = vpop.f32.mrf.mxu1 }
 0x31a   : > { %10129 = vst [vmem:[#allocation4_spill] sm:$0xff] %v8946_v61  ;;  %v2652_v38 = vadd.f32 %v6346_v19, %v10130_v12  ;;  %v8952_v42 = vadd.f32 %v8768_v34, %v2649_v13  ;;  %v10138_v12 = vld [vmem:[#allocation34_spill] sm:$0xff] }
 0x31b   : > { %v8954_v20 = vpop.f32.mrf.mxu0  ;;  %v2545_v52 = vpop.f32.mrf.mxu1 }
 0x31c   : > { %10131 = vst [vmem:[#allocation84_spill] sm:$0xff] %v8952_v42  ;;  %v2650_v37 = vadd.f32 %v2545_v52, %v10132_v25  ;;  %v8958_v27 = vadd.f32 %v8774_v47, %v2652_v38  ;;  %v10146_v42 = vld [vmem:[#allocation104_spill] sm:$0xff] }
 0x31d   : > { %v8960_v14 = vpop.f32.mrf.mxu0  ;;  %v6349_v26 = vpop.f32.mrf.mxu1  ;;  %6604 = vmatmul.mubr.bf16.gmra.mxu1 %v10134_v63 }
 0x31e   : > { %10133 = vst [vmem:[#allocation10_spill] sm:$0xff] %v8958_v27  ;;  %v2655_v61 = vadd.f32 %v6349_v26, %v10135_v8  ;;  %6607 = vmatprep.mubr.bf16.mxu1 %v10136_v24  ;;  %v8966_v34 = vadd.f32 %v8783_v29, %v2650_v37  ;;  %v10140_v27 = vld [vmem:[#allocation54_spill] sm:$0xff] }
 0x31f   : > { %v8968_v13 = vpop.f32.mrf.mxu0  ;;  %v2558_v19 = vpop.f32.mrf.mxu1  ;;  %v10142_v37 = vld [vmem:[#allocation30_spill] sm:$0xff] }
 0x320   : > { %10137 = vst [vmem:[#allocation80_spill] sm:$0xff] %v8966_v34  ;;  %v2653_v52 = vadd.f32 %v2558_v19, %v10138_v12  ;;  %v8972_v47 = vadd.f32 %v8791_v0, %v2655_v61  ;;  %v10144_v61 = vld [vmem:[#allocation99_spill] sm:$0xff]  ;;  %v10145_v12 = vld [vmem:[#allocation36_spill] sm:$0xff] }
 0x321   : > { %v8974_v38 = vpop.f32.mrf.mxu0  ;;  %v6350_v25 = vpop.f32.mrf.mxu1 }
 0x322   : > { %10139 = vst [vmem:[#allocation16_spill] sm:$0xff] %v8972_v47  ;;  %v2656_v63 = vadd.f32 %v6350_v25, %v10140_v27  ;;  %v8978_v26 = vadd.f32 %v8802_v56, %v2653_v52  ;;  %v10148_v25 = vld [vmem:[#allocation60_spill] sm:$0xff] }
 0x323   : > { %v8980_v24 = vpop.f32.mrf.mxu0  ;;  %v2561_v29 = vpop.f32.mrf.mxu1 }
 0x324   : > { %10141 = vst [vmem:[#allocation47_spill] sm:$0xff] %v8978_v26  ;;  %v2654_v8 = vadd.f32 %v2561_v29, %v10142_v37  ;;  %v8984_v34 = vadd.f32 %v8808_v7, %v2656_v63  ;;  %v10154_v26 = vld [vmem:[#allocation112_spill] sm:$0xff] }
 0x325   : > { %v8986_v19 = vpop.f32.mrf.mxu0  ;;  %v6353_v0 = vpop.f32.mrf.mxu1  ;;  %6608 = vmatmul.mubr.bf16.gmra.mxu1 %v10144_v61 }
 0x326   : > { %10143 = vst [vmem:[#allocation86_spill] sm:$0xff] %v8984_v34  ;;  %v2659_v47 = vadd.f32 %v6353_v0, %v10145_v12  ;;  %6611 = vmatprep.mubr.bf16.mxu1 %v10146_v42  ;;  %v8992_v56 = vadd.f32 %v8817_v43, %v2654_v8  ;;  %v10150_v34 = vld [vmem:[#allocation32_spill] sm:$0xff] }
 0x327   : > { %v8994_v27 = vpop.f32.mrf.mxu0  ;;  %v2574_v52 = vpop.f32.mrf.mxu1  ;;  %v10151_v8 = vld [vmem:[#allocation56_spill] sm:$0xff] }
 0x328   : > { %10147 = vst [vmem:[#allocation19_spill] sm:$0xff] %v8992_v56  ;;  %v2657_v29 = vadd.f32 %v2574_v52, %v10148_v25  ;;  %v8998_v7 = vadd.f32 %v8825_v6, %v2659_v47  ;;  %v10152_v47 = vld [vmem:[#allocation108_spill] sm:$0xff]  ;;  %v10153_v25 = vld [vmem:[#allocation62_spill] sm:$0xff] }
 0x329   : > { %v9000_v63 = vpop.f32.mrf.mxu0  ;;  %v6354_v37 = vpop.f32.mrf.mxu1 }
 0x32a   : > { %10149 = vst [vmem:[#allocation102_spill] sm:$0xff] %v8998_v7  ;;  %v2660_v61 = vadd.f32 %v6354_v37, %v10150_v34  ;;  %v9004_v0 = vadd.f32 %v8833_v16, %v2657_v29  ;;  %v10156_v37 = vld [vmem:[#allocation68_spill] sm:$0xff] }
 0x32b   : > { %v9006_v42 = vpop.f32.mrf.mxu0  ;;  %v2577_v43 = vpop.f32.mrf.mxu1 }
 0x32c   : > { %v2658_v12 = vadd.f32 %v2577_v43, %v10151_v8  ;;  %v9010_v56 = vadd.f32 %v8839_v2, %v2660_v61 }
 0x32d   : > { %v9012_v52 = vpop.f32.mrf.mxu0  ;;  %v6357_v6 = vpop.f32.mrf.mxu1  ;;  %6612 = vmatmul.mubr.bf16.gmra.mxu1 %v10152_v47 }
 0x32e   : > { %v2663_v7 = vadd.f32 %v6357_v6, %v10153_v25  ;;  %6615 = vmatprep.mubr.bf16.mxu1 %v10154_v26  ;;  %v9018_v16 = vadd.f32 %v8845_v40, %v2658_v12 }
 0x32f   : > { %v9020_v34 = vpop.f32.mrf.mxu0  ;;  %v2590_v29 = vpop.f32.mrf.mxu1 }
 0x330   : > { %10155 = vst [vmem:[#allocation82_spill] sm:$0xff] %v9018_v16  ;;  %v2661_v43 = vadd.f32 %v2590_v29, %v10156_v37  ;;  %v9024_v2 = vadd.f32 %v8853_v1, %v2663_v7  ;;  %v10160_v7 = vld [vmem:[#allocation117_spill] sm:$0xff]  ;;  %v10161_v37 = vld [vmem:[#allocation115_spill] sm:$0xff]  ;;  %v10163_v16 = vld [vmem:[#allocation70_spill] sm:$0xff] }
 0x331   : > { %v9026_v61 = vpop.f32.mrf.mxu0  ;;  %v6358_v8 = vpop.f32.mrf.mxu1 }
 0x332   : > { %10157 = vst [vmem:[#allocation120_spill] sm:$0xff] %v9024_v2  ;;  %v2664_v47 = vadd.f32 %v6358_v8, %v8680_v9  ;;  %v9030_v6 = vadd.f32 %v8863_v59, %v2661_v43  ;;  %v10162_v2 = vpack.c.bf16 %v10160_v7, %v10161_v37  ;;  %v10164_v8 = vld [vmem:[#allocation21_spill] sm:$0xff] }
 0x333   : > { %v9032_v26 = vpop.f32.mrf.mxu0  ;;  %v2593_v40 = vpop.f32.mrf.mxu1 }
 0x334   : > { %10158 = vst [vmem:[#allocation93_spill] sm:$0xff] %v9030_v6  ;;  %v2662_v12 = vadd.f32 %v2593_v40, %v8686_v15  ;;  %v9036_v25 = vadd.f32 %v8870_v35, %v2664_v47  ;;  %v10165_v40 = vld [vmem:[#allocation66_spill] sm:$0xff] }
 0x335   : > { %v9038_v29 = vpop.f32.mrf.mxu0  ;;  %v6361_v1 = vpop.f32.mrf.mxu1  ;;  %6616 = vmatmul.mubr.bf16.gmra.mxu1 %v10162_v2 }
 0x336   : > { %10159 = vst [vmem:[#allocation121_spill] sm:$0xff] %v9036_v25  ;;  %v2667_v9 = vadd.f32 %v6361_v1, %v10163_v16  ;;  %6699 = vmatprep.mubr.bf16.mxu1 %v10164_v8  ;;  %v9046_v59 = vadd.f32 %v8875_v60, %v2662_v12  ;;  %v10167_v12 = vld [vmem:[#allocation76_spill] sm:$0xff] }
 0x337   : > { %v9048_v43 = vpop.f32.mrf.mxu0  ;;  %v2606_v15 = vpop.f32.mrf.mxu1 }
 0x338   : > { %v2665_v35 = vadd.f32 %v2606_v15, %v10165_v40  ;;  %v9052_v47 = vadd.f32 %v8883_v33, %v2667_v9  ;;  %v10168_v9 = vld [vmem:[#allocation25_spill] sm:$0xff]  ;;  %v10169_v15 = vld [vmem:[#allocation72_spill] sm:$0xff] }
 0x339   : > { %v9054_v25 = vpop.f32.mrf.mxu0  ;;  %v6362_v6 = vpop.f32.mrf.mxu1 }
 0x33a   : > { %10166 = vst [vmem:[#allocation107_spill] sm:$0xff] %v9052_v47  ;;  %v2668_v2 = vadd.f32 %v6362_v6, %v8708_v23  ;;  %v9058_v16 = vadd.f32 %v8894_v28, %v2665_v35  ;;  %v10170_v47 = vld [vmem:[#allocation29_spill] sm:$0xff]  ;;  %v10171_v35 = vld [vmem:[#allocation15_spill] sm:$0xff] }
 0x33b   : > { %v9060_v1 = vpop.f32.mrf.mxu0  ;;  %v2609_v60 = vpop.f32.mrf.mxu1 }
 0x33c   : > { %v2666_v7 = vadd.f32 %v2609_v60, %v10167_v12  ;;  %v9064_v37 = vadd.f32 %v8901_v54, %v2668_v2 }
 0x33d   : > { %v9066_v8 = vpop.f32.mrf.mxu0  ;;  %v6445_v33 = vpop.f32.mrf.mxu1  ;;  %6700 = vmatmul.mubr.bf16.vlgmr.msra.gmra.mxu1 %v10168_v9 }
 0x33e   : > { %v3496_v40 = vadd.f32 %v6445_v33, %v10169_v15  ;;  %6703 = vmatprep.mubr.bf16.mxu1 %v10170_v47  ;;  %v9072_v23 = vadd.f32 %v8906_v50, %v2666_v7 }
 0x33f   : > { %v9074_v28 = vpop.f32.mrf.mxu0  ;;  %v3303_v6 = vpop.f32.mrf.mxu1 }
 0x340   : > { %v3494_v60 = vadd.f32 %v3303_v6, %v10171_v35  ;;  %v9078_v54 = vadd.f32 %v8914_v31, %v3496_v40  ;;  %v10172_v35 = vld [vmem:[#allocation33_spill] sm:$0xff] }
 0x341   : > { %v9080_v2 = vpop.f32.mrf.mxu0  ;;  %v6446_v12 = vpop.f32.mrf.mxu1  ;;  %v10173_v40 = vld [vmem:[#allocation37_spill] sm:$0xff] }
 0x342   : > { %v3497_v9 = vadd.f32 %v6446_v12, %v8747_v5  ;;  %v9084_v33 = vadd.f32 %v8922_v55, %v3494_v60 }
 0x343   : > { %v3306_v47 = vpop.f32.mrf.mxu1  ;;  %v9090_v15 = vpop.f32.mrf.mxu0 }
 0x344   : > { %v3495_v50 = vadd.f32 %v3306_v47, %v8755_v44  ;;  %v9088_v7 = vadd.f32 %v8929_v57, %v3497_v9 }
 0x345   : > { %v6449_v6 = vpop.f32.mrf.mxu1  ;;  %6704 = vmatmul.mubr.bf16.gmra.mxu1 %v10172_v35  ;;  %v9102_v57 = vpop.f32.mrf.mxu0  ;;  %v10174_v35 = vld [vmem:[#allocation42_spill] sm:$0xff] }
 0x346   : > { %v3500_v31 = vadd.f32 %v6449_v6, %v8766_v41  ;;  %6707 = vmatprep.mubr.bf16.mxu1 %v10173_v40  ;;  %v9096_v5 = vadd.f32 %v8934_v18, %v3495_v50 }
 0x347   : > { %v3319_v55 = vpop.f32.mrf.mxu1  ;;  %v9112_v50 = vpop.f32.mrf.mxu0 }
 0x348   : > { %v3498_v60 = vadd.f32 %v3319_v55, %v8772_v53  ;;  %v9100_v44 = vadd.f32 %v8942_v30, %v3500_v31  ;;  %v10175_v31 = vld [vmem:[#allocation46_spill] sm:$0xff] }
 0x349   : > { %v6450_v12 = vpop.f32.mrf.mxu1 }
 0x34a   : > { %v3501_v9 = vadd.f32 %v6450_v12, %v8781_v3  ;;  %v9106_v47 = vadd.f32 %v8948_v10, %v3498_v60 }
 0x34b   : > { %v3322_v41 = vpop.f32.mrf.mxu1 }
 0x34c   : > { %v3499_v6 = vadd.f32 %v3322_v41, %v8789_v11  ;;  %v9110_v18 = vadd.f32 %v8954_v20, %v3501_v9  ;;  %v9124_v20 = vpop.f32.mrf.mxu0 }
 0x34d   : > { %v6453_v53 = vpop.f32.mrf.mxu1  ;;  %6708 = vmatmul.mubr.bf16.gmra.mxu1 %v10174_v35 }
 0x34e   : > { %v3504_v30 = vadd.f32 %v6453_v53, %v8800_v36  ;;  %6711 = vmatprep.mubr.bf16.mxu1 %v10175_v31  ;;  %v9118_v3 = vadd.f32 %v8960_v14, %v3499_v6  ;;  %v9134_v41 = vpop.f32.mrf.mxu0  ;;  %v10176_v6 = vld [vmem:[#allocation51_spill] sm:$0xff] }
 0x34f   : > { %v3335_v10 = vpop.f32.mrf.mxu1  ;;  %v10177_v53 = vld [vmem:[#allocation55_spill] sm:$0xff] }
 0x350   : > { %v3502_v40 = vadd.f32 %v3335_v10, %v8806_v58  ;;  %v9122_v11 = vadd.f32 %v8968_v13, %v3504_v30 }
 0x351   : > { %v6454_v55 = vpop.f32.mrf.mxu1 }
 0x352   : > { %v3505_v60 = vadd.f32 %v6454_v55, %v8815_v4  ;;  %v9128_v12 = vadd.f32 %v8974_v38, %v3502_v40 }
 0x353   : > { %v3338_v36 = vpop.f32.mrf.mxu1 }
 0x354   : > { %v3503_v9 = vadd.f32 %v3338_v36, %v8823_v48  ;;  %v9132_v14 = vadd.f32 %v8980_v24, %v3505_v60  ;;  %v9146_v24 = vpop.f32.mrf.mxu0  ;;  %v10178_v60 = vld [vmem:[#allocation59_spill] sm:$0xff] }
 0x355   : > { %v6457_v58 = vpop.f32.mrf.mxu1  ;;  %6712 = vmatmul.mubr.bf16.gmra.mxu1 %v10176_v6  ;;  %v10179_v36 = vld [vmem:[#allocation63_spill] sm:$0xff] }
 0x356   : > { %v3508_v13 = vadd.f32 %v6457_v58, %v8831_v21  ;;  %6715 = vmatprep.mubr.bf16.mxu1 %v10177_v53  ;;  %v9140_v4 = vadd.f32 %v8986_v19, %v3503_v9  ;;  %v9156_v55 = vpop.f32.mrf.mxu0 }
 0x357   : > { %v3351_v38 = vpop.f32.mrf.mxu1 }
 0x358   : > { %v3506_v35 = vadd.f32 %v3351_v38, %v8837_v46  ;;  %v9144_v48 = vadd.f32 %v8994_v27, %v3508_v13 }
 0x359   : > { %v6458_v30 = vpop.f32.mrf.mxu1 }
 0x35a   : > { %v3509_v31 = vadd.f32 %v6458_v30, %v8843_v51  ;;  %v9150_v10 = vadd.f32 %v9000_v63, %v3506_v35  ;;  %v10180_v35 = vld [vmem:[#allocation67_spill] sm:$0xff] }
 0x35b   : > { %v3354_v21 = vpop.f32.mrf.mxu1 }
 0x35c   : > { %v3507_v40 = vadd.f32 %v3354_v21, %v8851_v39  ;;  %v9154_v19 = vadd.f32 %v9006_v42, %v3509_v31  ;;  %v9168_v42 = vpop.f32.mrf.mxu0  ;;  %v10182_v31 = vld [vmem:[#allocation71_spill] sm:$0xff]  ;;  %v10183_v21 = vld [vmem:[#allocation78_spill] sm:$0xff] }
 0x35d   : > { %v6461_v46 = vpop.f32.mrf.mxu1  ;;  %6716 = vmatmul.mubr.bf16.gmra.mxu1 %v10178_v60  ;;  %v10184_v60 = vld [vmem:[#allocation5_spill] sm:$0xff] }
 0x35e   : > { %v3512_v27 = vadd.f32 %v6461_v46, %v8861_v45  ;;  %6719 = vmatprep.mubr.bf16.mxu1 %v10179_v36  ;;  %v9162_v51 = vadd.f32 %v9012_v52, %v3507_v40  ;;  %v9178_v38 = vpop.f32.mrf.mxu0 }
 0x35f   : > { %v3367_v63 = vpop.f32.mrf.mxu1 }
 0x360   : > { %v3510_v9 = vadd.f32 %v3367_v63, %v8868_v32  ;;  %v9166_v39 = vadd.f32 %v9020_v34, %v3512_v27  ;;  %v10181_v34 = vld [vmem:[#allocation38_spill] sm:$0xff] }
 0x361   : > { %v6462_v58 = vpop.f32.mrf.mxu1 }
 0x362   : > { %v3513_v6 = vadd.f32 %v6462_v58, %v8873_v49  ;;  %v9172_v13 = vadd.f32 %v9026_v61, %v3510_v9  ;;  %v10185_v9 = vld [vmem:[#allocation92_spill] sm:$0xff] }
 0x363   : > { %v3370_v45 = vpop.f32.mrf.mxu1 }
 0x364   : > { %v3511_v53 = vadd.f32 %v3370_v45, %v8881_v22  ;;  %v9176_v52 = vadd.f32 %v9032_v26, %v3513_v6  ;;  %v3870_v26 = vpop.f32.mrf.mxu0 }
 0x365   : > { %v6465_v32 = vpop.f32.mrf.mxu1  ;;  %6720 = vmatmul.mubr.bf16.gmra.mxu1 %v10180_v35 }
 0x366   : > { %v3516_v30 = vadd.f32 %v6465_v32, %v10181_v34  ;;  %6723 = vmatprep.mubr.bf16.mxu1 %v10182_v31  ;;  %v9184_v49 = vadd.f32 %v9038_v29, %v3511_v53  ;;  %v6545_v29 = vpop.f32.mrf.mxu0  ;;  %v10186_v53 = vld [vmem:[#allocation75_spill] sm:$0xff] }
 0x367   : > { %v3383_v61 = vpop.f32.mrf.mxu1  ;;  %v10187_v32 = vld [vmem:[#allocation79_spill] sm:$0xff] }
 0x368   : > { %v3514_v40 = vadd.f32 %v3383_v61, %v10183_v21  ;;  %v9188_v22 = vadd.f32 %v9048_v43, %v3516_v30  ;;  %v3883_v31 = vpop.f32.mrf.mxu0  ;;  %v10188_v61 = vld [vmem:[#allocation97_spill] sm:$0xff] }
 0x369   : > { %v6466_v46 = vpop.f32.mrf.mxu1 }
 0x36a   : > { %v3517_v27 = vadd.f32 %v6466_v46, %v10184_v60  ;;  %v9192_v36 = vadd.f32 %v9054_v25, %v3514_v40 }
 0x36b   : > { %v3386_v63 = vpop.f32.mrf.mxu1 }
 0x36c   : > { %v3515_v58 = vadd.f32 %v3386_v63, %v10185_v9  ;;  %v9196_v6 = vadd.f32 %v9060_v1, %v3517_v27  ;;  %v10190_v9 = vld [vmem:[#allocation83_spill] sm:$0xff] }
 0x36d   : > { %v6469_v45 = vpop.f32.mrf.mxu1  ;;  %6724 = vmatmul.mubr.bf16.gmra.mxu1 %v10186_v53 }
 0x36e   : > { %v3520_v43 = vadd.f32 %v6469_v45, %v8920_v62  ;;  %6727 = vmatprep.mubr.bf16.mxu1 %v10187_v32  ;;  %v9202_v35 = vadd.f32 %v9066_v8, %v3515_v58  ;;  %v10189_v62 = vld [vmem:[#allocation74_spill] sm:$0xff]  ;;  %v6546_v8 = vpop.f32.mrf.mxu0  ;;  %v10192_v58 = vld [vmem:[#allocation87_spill] sm:$0xff] }
 0x36f   : > { %v3399_v34 = vpop.f32.mrf.mxu1 }
 0x370   : > { %v3518_v25 = vadd.f32 %v3399_v34, %v8927_v17  ;;  %v9206_v30 = vadd.f32 %v9074_v28, %v3520_v43  ;;  %v10191_v17 = vld [vmem:[#allocation4_spill] sm:$0xff]  ;;  %v3886_v34 = vpop.f32.mrf.mxu0 }
 0x371   : > { %v6470_v1 = vpop.f32.mrf.mxu1 }
 0x372   : > { %v3521_v21 = vadd.f32 %v6470_v1, %v10188_v61  ;;  %v9210_v40 = vadd.f32 %v9080_v2, %v3518_v25  ;;  %v10193_v2 = vld [vmem:[#allocation84_spill] sm:$0xff]  ;;  %v10194_v25 = vld [vmem:[#allocation10_spill] sm:$0xff] }
 0x373   : > { %v3402_v46 = vpop.f32.mrf.mxu1 }
 0x374   : > { %v3519_v60 = vadd.f32 %v3402_v46, %v10189_v62  ;;  %v9214_v27 = vadd.f32 %v9090_v15, %v3521_v21  ;;  %v10195_v46 = vld [vmem:[#allocation80_spill] sm:$0xff] }
 0x375   : > { %v6473_v63 = vpop.f32.mrf.mxu1  ;;  %6728 = vmatmul.mubr.bf16.gmra.mxu1 %v10190_v9  ;;  %v10196_v9 = vld [vmem:[#allocation91_spill] sm:$0xff] }
 0x376   : > { %v3524_v28 = vadd.f32 %v6473_v63, %v10191_v17  ;;  %6731 = vmatprep.mubr.bf16.mxu1 %v10192_v58  ;;  %v9220_v45 = vadd.f32 %v9102_v57, %v3519_v60  ;;  %v6549_v57 = vpop.f32.mrf.mxu0  ;;  %v10197_v17 = vld [vmem:[#allocation16_spill] sm:$0xff] }
 0x377   : > { %v3415_v53 = vpop.f32.mrf.mxu1 }
 0x378   : > { %v3522_v43 = vadd.f32 %v3415_v53, %v10193_v2  ;;  %v9224_v32 = vadd.f32 %v9112_v50, %v3524_v28  ;;  %v10198_v28 = vld [vmem:[#allocation96_spill] sm:$0xff] }
 0x379   : > { %v6474_v15 = vpop.f32.mrf.mxu1 }
 0x37a   : > { %v3525_v1 = vadd.f32 %v6474_v15, %v10194_v25  ;;  %v9228_v61 = vadd.f32 %v9124_v20, %v3522_v43  ;;  %v10199_v20 = vld [vmem:[#allocation47_spill] sm:$0xff]  ;;  %v3899_v15 = vpop.f32.mrf.mxu0  ;;  %v10200_v25 = vld [vmem:[#allocation86_spill] sm:$0xff] }
 0x37b   : > { %v3418_v21 = vpop.f32.mrf.mxu1 }
 0x37c   : > { %v3523_v62 = vadd.f32 %v3418_v21, %v10195_v46  ;;  %v9232_v63 = vadd.f32 %v9134_v41, %v3525_v1 }
 0x37d   : > { %v6477_v60 = vpop.f32.mrf.mxu1  ;;  %6732 = vmatmul.mubr.bf16.gmra.mxu1 %v10196_v9 }
 0x37e   : > { %v3528_v50 = vadd.f32 %v6477_v60, %v10197_v17  ;;  %6735 = vmatprep.mubr.bf16.mxu1 %v10198_v28  ;;  %v9238_v58 = vadd.f32 %v9146_v24, %v3523_v62  ;;  %v10202_v60 = vld [vmem:[#allocation19_spill] sm:$0xff]  ;;  %v6550_v24 = vpop.f32.mrf.mxu0  ;;  %v10204_v28 = vld [vmem:[#allocation101_spill] sm:$0xff] }
 0x37f   : > { %v3431_v53 = vpop.f32.mrf.mxu1 }
 0x380   : > { %v3526_v2 = vadd.f32 %v3431_v53, %v10199_v20  ;;  %v9242_v43 = vadd.f32 %v9156_v55, %v3528_v50  ;;  %v10205_v53 = vld [vmem:[#allocation102_spill] sm:$0xff] }
 0x381   : > { %v6478_v41 = vpop.f32.mrf.mxu1  ;;  %v10206_v50 = vld [vmem:[#allocation106_spill] sm:$0xff] }
 0x382   : > { %v3529_v1 = vadd.f32 %v6478_v41, %v10200_v25  ;;  %v9246_v21 = vadd.f32 %v9168_v42, %v3526_v2  ;;  %v3902_v25 = vpop.f32.mrf.mxu0 }
 0x383   : > { %v3434_v46 = vpop.f32.mrf.mxu1 }
 0x384   : > { %10201 = vst [vmem:[#allocation88_spill] sm:$0xff] %v9246_v21  ;;  %v3527_v9 = vadd.f32 %v3434_v46, %v10202_v60  ;;  %v9250_v17 = vadd.f32 %v9178_v38, %v3529_v1 }
 0x385   : > { %v6481_v62 = vpop.f32.mrf.mxu1  ;;  %6736 = vmatmul.mubr.bf16.gmra.mxu1 %v10204_v28 }
 0x386   : > { %10203 = vst [vmem:[#allocation122_spill] sm:$0xff] %v9250_v17  ;;  %v3532_v55 = vadd.f32 %v6481_v62, %v10205_v53  ;;  %6739 = vmatprep.mubr.bf16.mxu1 %v10206_v50  ;;  %v9255_v20 = vadd.f32 %v3870_v26, %v3527_v9  ;;  %v10207_v17 = vld [vmem:[#allocation82_spill] sm:$0xff]  ;;  %v6553_v62 = vpop.f32.mrf.mxu0  ;;  %v10210_v9 = vld [vmem:[#allocation120_spill] sm:$0xff] }
 0x387   : > { %v3447_v41 = vpop.f32.mrf.mxu1  ;;  %v10209_v26 = vld [vmem:[#allocation110_spill] sm:$0xff] }
 0x388   : > { %v3530_v42 = vadd.f32 %v3447_v41, %v9004_v0  ;;  %v9258_v2 = vadd.f32 %v6545_v29, %v3532_v55  ;;  %v10211_v0 = vld [vmem:[#allocation116_spill] sm:$0xff]  ;;  %v10212_v41 = vld [vmem:[#allocation93_spill] sm:$0xff] }
 0x389   : > { %v6482_v46 = vpop.f32.mrf.mxu1 }
 0x38a   : > { %v3533_v38 = vadd.f32 %v6482_v46, %v9010_v56  ;;  %v9261_v1 = vadd.f32 %v3883_v31, %v3530_v42  ;;  %v3915_v42 = vpop.f32.mrf.mxu0 }
 0x38b   : > { %v3450_v60 = vpop.f32.mrf.mxu1 }
 0x38c   : > { %v3531_v28 = vadd.f32 %v3450_v60, %v10207_v17  ;;  %v9264_v21 = vadd.f32 %v6546_v8, %v3533_v38  ;;  %v10213_v17 = vld [vmem:[#allocation121_spill] sm:$0xff] }
 0x38d   : > { %v6485_v53 = vpop.f32.mrf.mxu1  ;;  %6740 = vmatmul.mubr.bf16.gmra.mxu1 %v10209_v26 }
 0x38e   : > { %10208 = vst [vmem:[#allocation95_spill] sm:$0xff] %v9264_v21  ;;  %v3536_v50 = vadd.f32 %v6485_v53, %v10210_v9  ;;  %6743 = vmatprep.mubr.bf16.mxu1 %v10211_v0  ;;  %v9269_v29 = vadd.f32 %v3886_v34, %v3531_v28  ;;  %v6554_v53 = vpop.f32.mrf.mxu0  ;;  %v10214_v34 = vld [vmem:[#allocation119_spill] sm:$0xff]  ;;  %v10215_v28 = vld [vmem:[#allocation118_spill] sm:$0xff] }
 0x38f   : > { %v3463_v55 = vpop.f32.mrf.mxu1  ;;  %v10216_v0 = vpack.c.bf16 %v10214_v34, %v10215_v28 }
 0x390   : > { %v3534_v56 = vadd.f32 %v3463_v55, %v10212_v41  ;;  %v9272_v31 = vadd.f32 %v6549_v57, %v3536_v50  ;;  %v10217_v55 = vld [vmem:[#allocation107_spill] sm:$0xff] }
 0x391   : > { %v6486_v46 = vpop.f32.mrf.mxu1 }
 0x392   : > { %v3537_v8 = vadd.f32 %v6486_v46, %v10213_v17  ;;  %v9275_v38 = vadd.f32 %v3899_v15, %v3534_v56  ;;  %v3918_v56 = vpop.f32.mrf.mxu0 }
 0x393   : > { %v3466_v60 = vpop.f32.mrf.mxu1 }
 0x394   : > { %v3535_v26 = vadd.f32 %v3466_v60, %v9046_v59  ;;  %v9278_v21 = vadd.f32 %v6550_v24, %v3537_v8  ;;  %v9295_v28 = vpop.f32.mrf.mxu0 }
 0x395   : > { %v6489_v9 = vpop.f32.mrf.mxu1  ;;  %6744 = vmatmul.mubr.bf16.gmra.mxu1 %v10216_v0 }
 0x396   : > { %v3540_v57 = vadd.f32 %v6489_v9, %v10217_v55  ;;  %v9284_v50 = vadd.f32 %v3902_v25, %v3535_v26 }
 0x397   : > { %v3479_v41 = vpop.f32.mrf.mxu1 }
 0x398   : > { %v3538_v46 = vadd.f32 %v3479_v41, %v9058_v16  ;;  %v9287_v15 = vadd.f32 %v6553_v62, %v3540_v57 }
 0x399   : > { %v6490_v17 = vpop.f32.mrf.mxu1 }
 0x39a   : > { %v3541_v59 = vadd.f32 %v6490_v17, %v9064_v37  ;;  %v9290_v24 = vadd.f32 %v3915_v42, %v3538_v46  ;;  %v9305_v37 = vpop.f32.mrf.mxu0 }
 0x39b   : > { %v3482_v8 = vpop.f32.mrf.mxu1 }
 0x39c   : > { %v3539_v60 = vadd.f32 %v3482_v8, %v9072_v23  ;;  %v9293_v34 = vadd.f32 %v6554_v53, %v3541_v59  ;;  %v9313_v55 = vpop.f32.mrf.mxu0 }
 0x39d   : > { %v6573_v25 = vpop.f32.mrf.mxu1 }
 0x39e   : > { %v9298_v26 = vadd.f32 %v6573_v25, %v9078_v54  ;;  %v9300_v16 = vadd.f32 %v3918_v56, %v3539_v60  ;;  %v9321_v46 = vpop.f32.mrf.mxu0 }
 0x39f   : > { %v4077_v62 = vpop.f32.mrf.mxu1 }
 0x3a0   : > { %v9303_v9 = vadd.f32 %v4077_v62, %v9084_v33  ;;  %v9329_v59 = vpop.f32.mrf.mxu0 }
 0x3a1   : > { %v6574_v42 = vpop.f32.mrf.mxu1 }
 0x3a2   : > { %v9308_v0 = vadd.f32 %v6574_v42, %v9088_v7  ;;  %v9337_v25 = vpop.f32.mrf.mxu0 }
 0x3a3   : > { %v4080_v23 = vpop.f32.mrf.mxu1 }
 0x3a4   : > { %v9311_v53 = vadd.f32 %v4080_v23, %v9096_v5  ;;  %v9345_v23 = vpop.f32.mrf.mxu0 }
 0x3a5   : > { %v6577_v54 = vpop.f32.mrf.mxu1 }
 0x3a6   : > { %v9316_v57 = vadd.f32 %v6577_v54, %v9100_v44 }
 0x3a7   : > { %v4093_v41 = vpop.f32.mrf.mxu1 }
 0x3a8   : > { %v9319_v33 = vadd.f32 %v4093_v41, %v9106_v47 }
 0x3a9   : > { %v6578_v56 = vpop.f32.mrf.mxu1 }
 0x3aa   : > { %v9324_v7 = vadd.f32 %v6578_v56, %v9110_v18  ;;  %v9353_v56 = vpop.f32.mrf.mxu0 }
 0x3ab   : > { %v4096_v17 = vpop.f32.mrf.mxu1 }
 0x3ac   : > { %v9327_v5 = vadd.f32 %v4096_v17, %v9118_v3 }
 0x3ad   : > { %v6581_v8 = vpop.f32.mrf.mxu1 }
 0x3ae   : > { %v9332_v44 = vadd.f32 %v6581_v8, %v9122_v11 }
 0x3af   : > { %v4109_v60 = vpop.f32.mrf.mxu1 }
 0x3b0   : > { %v9335_v47 = vadd.f32 %v4109_v60, %v9128_v12  ;;  %v9361_v60 = vpop.f32.mrf.mxu0 }
 0x3b1   : > { %v6582_v62 = vpop.f32.mrf.mxu1 }
 0x3b2   : > { %v9340_v18 = vadd.f32 %v6582_v62, %v9132_v14 }
 0x3b3   : > { %v4112_v42 = vpop.f32.mrf.mxu1 }
 0x3b4   : > { %v9343_v3 = vadd.f32 %v4112_v42, %v9140_v4 }
 0x3b5   : > { %v6585_v54 = vpop.f32.mrf.mxu1 }
 0x3b6   : > { %v9348_v11 = vadd.f32 %v6585_v54, %v9144_v48  ;;  %v9369_v54 = vpop.f32.mrf.mxu0 }
 0x3b7   : > { %v4125_v41 = vpop.f32.mrf.mxu1 }
 0x3b8   : > { %v9351_v12 = vadd.f32 %v4125_v41, %v9150_v10 }
 0x3b9   : > { %v6586_v17 = vpop.f32.mrf.mxu1 }
 0x3ba   : > { %v9356_v14 = vadd.f32 %v6586_v17, %v9154_v19 }
 0x3bb   : > { %v4128_v8 = vpop.f32.mrf.mxu1 }
 0x3bc   : > { %v9359_v4 = vadd.f32 %v4128_v8, %v9162_v51  ;;  %v9377_v8 = vpop.f32.mrf.mxu0 }
 0x3bd   : > { %v6589_v62 = vpop.f32.mrf.mxu1 }
 0x3be   : > { %10218 = vst [vmem:[#allocation123_spill] sm:$0xff] %v9359_v4  ;;  %v9364_v48 = vadd.f32 %v6589_v62, %v9166_v39 }
 0x3bf   : > { %v4141_v42 = vpop.f32.mrf.mxu1 }
 0x3c0   : > { %v9367_v10 = vadd.f32 %v4141_v42, %v9172_v13  ;;  %v9385_v42 = vpop.f32.mrf.mxu0 }
 0x3c1   : > { %v6590_v41 = vpop.f32.mrf.mxu1 }
 0x3c2   : > { %10219 = vst [vmem:[#allocation90_spill] sm:$0xff] %v9367_v10  ;;  %v9372_v19 = vadd.f32 %v6590_v41, %v9176_v52 }
 0x3c3   : > { %v4144_v17 = vpop.f32.mrf.mxu1 }
 0x3c4   : > { %v9375_v51 = vadd.f32 %v4144_v17, %v9184_v49  ;;  %v9393_v17 = vpop.f32.mrf.mxu0 }
 0x3c5   : > { %v6593_v4 = vpop.f32.mrf.mxu1 }
 0x3c6   : > { %10220 = vst [vmem:[#allocation124_spill] sm:$0xff] %v9375_v51  ;;  %v9380_v39 = vadd.f32 %v6593_v4, %v9188_v22 }
 0x3c7   : > { %v4157_v62 = vpop.f32.mrf.mxu1 }
 0x3c8   : > { %v9383_v13 = vadd.f32 %v4157_v62, %v9192_v36  ;;  %v9401_v62 = vpop.f32.mrf.mxu0 }
 0x3c9   : > { %v6594_v10 = vpop.f32.mrf.mxu1 }
 0x3ca   : > { %10221 = vst [vmem:[#allocation103_spill] sm:$0xff] %v9383_v13  ;;  %v9388_v52 = vadd.f32 %v6594_v10, %v9196_v6 }
 0x3cb   : > { %v4160_v41 = vpop.f32.mrf.mxu1 }
 0x3cc   : > { %v9391_v49 = vadd.f32 %v4160_v41, %v9202_v35  ;;  %v9409_v41 = vpop.f32.mrf.mxu0 }
 0x3cd   : > { %v6597_v51 = vpop.f32.mrf.mxu1 }
 0x3ce   : > { %10222 = vst [vmem:[#allocation7_spill] sm:$0xff] %v9391_v49  ;;  %v9396_v22 = vadd.f32 %v6597_v51, %v9206_v30 }
 0x3cf   : > { %v4173_v4 = vpop.f32.mrf.mxu1 }
 0x3d0   : > { %v9399_v36 = vadd.f32 %v4173_v4, %v9210_v40  ;;  %v9417_v4 = vpop.f32.mrf.mxu0 }
 0x3d1   : > { %v6598_v13 = vpop.f32.mrf.mxu1 }
 0x3d2   : > { %10223 = vst [vmem:[#allocation113_spill] sm:$0xff] %v9399_v36  ;;  %v9404_v6 = vadd.f32 %v6598_v13, %v9214_v27 }
 0x3d3   : > { %v4176_v10 = vpop.f32.mrf.mxu1 }
 0x3d4   : > { %10224 = vst [vmem:[#allocation98_spill] sm:$0xff] %v9404_v6  ;;  %v9407_v35 = vadd.f32 %v4176_v10, %v9220_v45  ;;  %v9425_v10 = vpop.f32.mrf.mxu0  ;;  %v10232_v6 = vld [vmem:[#allocation122_spill] sm:$0xff] }
 0x3d5   : > { %v6601_v49 = vpop.f32.mrf.mxu1 }
 0x3d6   : > { %10225 = vst [vmem:[#allocation125_spill] sm:$0xff] %v9407_v35  ;;  %v9412_v30 = vadd.f32 %v6601_v49, %v9224_v32 }
 0x3d7   : > { %v4189_v51 = vpop.f32.mrf.mxu1 }
 0x3d8   : > { %10226 = vst [vmem:[#allocation18_spill] sm:$0xff] %v9412_v30  ;;  %v9415_v40 = vadd.f32 %v4189_v51, %v9228_v61  ;;  %v10230_v30 = vld [vmem:[#allocation88_spill] sm:$0xff]  ;;  %v9433_v51 = vpop.f32.mrf.mxu0 }
 0x3d9   : > { %v6602_v36 = vpop.f32.mrf.mxu1 }
 0x3da   : > { %10227 = vst [vmem:[#allocation105_spill] sm:$0xff] %v9415_v40  ;;  %v9420_v27 = vadd.f32 %v6602_v36, %v9232_v63 }
 0x3db   : > { %v4192_v13 = vpop.f32.mrf.mxu1 }
 0x3dc   : > { %v9423_v45 = vadd.f32 %v4192_v13, %v9238_v58  ;;  %v9441_v13 = vpop.f32.mrf.mxu0 }
 0x3dd   : > { %v6605_v35 = vpop.f32.mrf.mxu1 }
 0x3de   : > { %10228 = vst [vmem:[#allocation126_spill] sm:$0xff] %v9423_v45  ;;  %v9428_v32 = vadd.f32 %v6605_v35, %v9242_v43 }
 0x3df   : > { %v4205_v49 = vpop.f32.mrf.mxu1 }
 0x3e0   : > { %10229 = vst [vmem:[#allocation100_spill] sm:$0xff] %v9428_v32  ;;  %v9431_v61 = vadd.f32 %v4205_v49, %v10230_v30  ;;  %v9449_v49 = vpop.f32.mrf.mxu0  ;;  %v10235_v32 = vld [vmem:[#allocation95_spill] sm:$0xff] }
 0x3e1   : > { %v6606_v40 = vpop.f32.mrf.mxu1 }
 0x3e2   : > { %10231 = vst [vmem:[#allocation127_spill] sm:$0xff] %v9431_v61  ;;  %v9436_v63 = vadd.f32 %v6606_v40, %v10232_v6 }
 0x3e3   : > { %v4208_v36 = vpop.f32.mrf.mxu1 }
 0x3e4   : > { %v9439_v58 = vadd.f32 %v4208_v36, %v9255_v20  ;;  %v9457_v36 = vpop.f32.mrf.mxu0 }
 0x3e5   : > { %v6609_v45 = vpop.f32.mrf.mxu1 }
 0x3e6   : > { %10233 = vst [vmem:[#allocation23_spill] sm:$0xff] %v9439_v58  ;;  %v9444_v43 = vadd.f32 %v6609_v45, %v9258_v2 }
 0x3e7   : > { %v4221_v35 = vpop.f32.mrf.mxu1 }
 0x3e8   : > { %v9447_v30 = vadd.f32 %v4221_v35, %v9261_v1  ;;  %v9465_v35 = vpop.f32.mrf.mxu0 }
 0x3e9   : > { %v6610_v61 = vpop.f32.mrf.mxu1 }
 0x3ea   : > { %10234 = vst [vmem:[#allocation9_spill] sm:$0xff] %v9447_v30  ;;  %v9452_v6 = vadd.f32 %v6610_v61, %v10235_v32 }
 0x3eb   : > { %v4224_v40 = vpop.f32.mrf.mxu1 }
 0x3ec   : > { %v9455_v20 = vadd.f32 %v4224_v40, %v9269_v29  ;;  %v9473_v40 = vpop.f32.mrf.mxu0 }
 0x3ed   : > { %v6613_v58 = vpop.f32.mrf.mxu1 }
 0x3ee   : > { %10236 = vst [vmem:[#allocation27_spill] sm:$0xff] %v9455_v20  ;;  %v9460_v2 = vadd.f32 %v6613_v58, %v9272_v31 }
 0x3ef   : > { %v4237_v45 = vpop.f32.mrf.mxu1 }
 0x3f0   : > { %v9463_v1 = vadd.f32 %v4237_v45, %v9275_v38  ;;  %v9481_v45 = vpop.f32.mrf.mxu0 }
 0x3f1   : > { %v6614_v30 = vpop.f32.mrf.mxu1 }
 0x3f2   : > { %10237 = vst [vmem:[#allocation3_spill] sm:$0xff] %v9463_v1  ;;  %v9468_v32 = vadd.f32 %v6614_v30, %v9278_v21 }
 0x3f3   : > { %v4240_v61 = vpop.f32.mrf.mxu1 }
 0x3f4   : > { %v9471_v29 = vadd.f32 %v4240_v61, %v9284_v50  ;;  %v4608_v61 = vadd.f32 %v9295_v28, %v9298_v26 }
 0x3f5   : > { %v6617_v20 = vpop.f32.mrf.mxu1 }
 0x3f6   : > { %v9476_v31 = vadd.f32 %v6617_v20, %v9287_v15  ;;  %v9491_v15 = vpop.f32.mrf.mxu0 }
 0x3f7   : > { %v4253_v58 = vpop.f32.mrf.mxu1 }
 0x3f8   : > { %10238 = vst [vmem:[#allocation11_spill] sm:$0xff] %v9476_v31  ;;  %v9479_v38 = vadd.f32 %v4253_v58, %v9290_v24  ;;  %v4606_v24 = vadd.f32 %v9305_v37, %v9303_v9 }
 0x3f9   : > { %v6618_v1 = vpop.f32.mrf.mxu1 }
 0x3fa   : > { %v9484_v21 = vadd.f32 %v6618_v1, %v9293_v34  ;;  %v9498_v34 = vld [vmem:[%s9693_s4] ss:$0 sm:$0xff] }
 0x3fb   : > { %v4256_v30 = vpop.f32.mrf.mxu1 }
 0x3fc   : > { %10239 = vst [vmem:[#allocation31_spill] sm:$0xff] %v9484_v21  ;;  %v9487_v50 = vadd.f32 %v4256_v30, %v9300_v16  ;;  %v4609_v16 = vadd.f32 %v9313_v55, %v9308_v0  ;;  %v9502_v30 = vpop.f32.mrf.mxu0 }
 0x3fd   : > { %v6701_v20 = vpop.f32.mrf.mxu1 }
 0x3fe   : > { %10240 = vst [vmem:[#allocation6_spill] sm:$0xff] %v9487_v50  ;;  %v4946_v31 = vadd.f32 %v6701_v20, %v4608_v61  ;;  %v4607_v61 = vadd.f32 %v9321_v46, %v9311_v53  ;;  %v9512_v0 = vpop.f32.mrf.mxu0 }
 0x3ff   : > { %v4753_v1 = vpop.f32.mrf.mxu1 }
 0x400   : > { %v4944_v58 = vadd.f32 %v4753_v1, %v4606_v24  ;;  %v5001_v26 = vadd.f32 %v9498_v34, %v4946_v31  ;;  %v4612_v24 = vadd.f32 %v9329_v59, %v9316_v57  ;;  %v4610_v31 = vadd.f32 %v9337_v25, %v9319_v33  ;;  %v9524_v25 = vpop.f32.mrf.mxu0 }
 0x401   : > { %v6702_v28 = vpop.f32.mrf.mxu1  ;;  %v4613_v57 = vadd.f32 %v9345_v23, %v9324_v7 }
 0x402   : > { %v4947_v50 = vadd.f32 %v6702_v28, %v4609_v16  ;;  %v4999_v37 = vadd.f32 %v9498_v34, %v4944_v58  ;;  %v5049_v1 = vmax.f32 %v5001_v26, 0.0 }
 0x403   : > { %v4756_v9 = vpop.f32.mrf.mxu1 }
 0x404   : > { %v5002_v20 = vadd.f32 %v9498_v34, %v4947_v50  ;;  %v4945_v21 = vadd.f32 %v4756_v9, %v4607_v61  ;;  %v5047_v59 = vmax.f32 %v4999_v37, 0.0  ;;  %v4616_v37 = vadd.f32 %v9361_v60, %v9332_v44 }
 0x405   : > { %v6705_v55 = vpop.f32.mrf.mxu1 }
 0x406   : > { %v5050_v16 = vmax.f32 %v5002_v20, 0.0  ;;  %v5000_v53 = vadd.f32 %v9498_v34, %v4945_v21  ;;  %v4950_v46 = vadd.f32 %v6705_v55, %v4612_v24  ;;  %v4611_v20 = vadd.f32 %v9353_v56, %v9327_v5 }
 0x407   : > { %v4769_v50 = vpop.f32.mrf.mxu1 }
 0x408   : > { %v5748_v58 = vpack.c.bf16 %v5050_v16, %v5049_v1  ;;  %v5048_v28 = vmax.f32 %v5000_v53, 0.0  ;;  %v4948_v33 = vadd.f32 %v4769_v50, %v4610_v31  ;;  %v5005_v61 = vadd.f32 %v9498_v34, %v4950_v46  ;;  %v9535_v31 = vpop.f32.mrf.mxu0 }
 0x409   : > { %v6706_v26 = vpop.f32.mrf.mxu1  ;;  %v4614_v16 = vadd.f32 %v9369_v54, %v9335_v47 }
 0x40a   : > { %5860 = vst [vmem:[%s9520_s14 + $0x8] sm:$0xff] %v5748_v58   ;;  %v5743_v21 = vpack.c.bf16 %v5048_v28, %v5047_v59  ;;  %v4951_v9 = vadd.f32 %v6706_v26, %v4613_v57  ;;  %v5003_v55 = vadd.f32 %v9498_v34, %v4948_v33  ;;  %v5053_v53 = vmax.f32 %v5005_v61, 0.0  ;;  %v9542_v28 = vpop.f32.mrf.mxu0 }
 0x40b   : > { %v4772_v24 = vpop.f32.mrf.mxu1  ;;  %v4617_v57 = vadd.f32 %v9377_v8, %v9340_v18 }
 0x40c   : > { %5744 = vst [vmem:[%s9520_s14] sm:$0xff] %v5743_v21   ;;  %v5006_v7 = vadd.f32 %v9498_v34, %v4951_v9  ;;  %v4949_v23 = vadd.f32 %v4772_v24, %v4611_v20  ;;  %v5051_v59 = vmax.f32 %v5003_v55, 0.0  ;;  %v4615_v21 = vadd.f32 %v9385_v42, %v9343_v3  ;;  %v9553_v24 = vpop.f32.mrf.mxu0 }
 0x40d   : > { %v6709_v1 = vpop.f32.mrf.mxu1  ;;  %v4620_v20 = vadd.f32 %v9393_v17, %v9348_v11 }
 0x40e   : > { %v5054_v46 = vmax.f32 %v5006_v7, 0.0  ;;  %v5004_v5 = vadd.f32 %v9498_v34, %v4949_v23  ;;  %v4954_v56 = vadd.f32 %v6709_v1, %v4616_v37  ;;  %v4618_v7 = vadd.f32 %v9401_v62, %v9351_v12 }
 0x40f   : > { %v4785_v50 = vpop.f32.mrf.mxu1 }
 0x410   : > { %v5758_v58 = vpack.c.bf16 %v5054_v46, %v5053_v53  ;;  %v5052_v44 = vmax.f32 %v5004_v5, 0.0  ;;  %v4952_v60 = vadd.f32 %v4785_v50, %v4614_v16  ;;  %v5009_v47 = vadd.f32 %v9498_v34, %v4954_v56  ;;  %v9560_v5 = vpop.f32.mrf.mxu0 }
 0x411   : > { %v6710_v33 = vpop.f32.mrf.mxu1  ;;  %v4621_v16 = vadd.f32 %v9409_v41, %v9356_v14 }
 0x412   : > { %5862 = vst [vmem:[%s9520_s14 + $0x18] sm:$0xff] %v5758_v58   ;;  %v5753_v26 = vpack.c.bf16 %v5052_v44, %v5051_v59  ;;  %v4955_v54 = vadd.f32 %v6710_v33, %v4617_v57  ;;  %v5007_v9 = vadd.f32 %v9498_v34, %v4952_v60  ;;  %v5057_v23 = vmax.f32 %v5009_v47, 0.0  ;;  %v10241_v57 = vld [vmem:[#allocation123_spill] sm:$0xff]  ;;  %v9571_v33 = vpop.f32.mrf.mxu0  ;;  %v10242_v47 = vld [vmem:[#allocation90_spill] sm:$0xff] }
 0x413   : > { %v4788_v61 = vpop.f32.mrf.mxu1  ;;  %v4619_v59 = vadd.f32 %v9417_v4, %v10241_v57  ;;  %v4624_v60 = vadd.f32 %v9425_v10, %v9364_v48 }
 0x414   : > { %5861 = vst [vmem:[%s9520_s14 + $0x10] sm:$0xff] %v5753_v26   ;;  %v5010_v18 = vadd.f32 %v9498_v34, %v4955_v54  ;;  %v4953_v8 = vadd.f32 %v4788_v61, %v4615_v21  ;;  %v5055_v53 = vmax.f32 %v5007_v9, 0.0  ;;  %v4622_v54 = vadd.f32 %v9433_v51, %v10242_v47 }
 0x415   : > { %v6713_v55 = vpop.f32.mrf.mxu1 }
 0x416   : > { %v5058_v37 = vmax.f32 %v5010_v18, 0.0  ;;  %v5008_v3 = vadd.f32 %v9498_v34, %v4953_v8  ;;  %v4958_v42 = vadd.f32 %v6713_v55, %v4620_v20  ;;  %v4625_v8 = vadd.f32 %v9441_v13, %v9372_v19 }
 0x417   : > { %v4801_v1 = vpop.f32.mrf.mxu1 }
 0x418   : > { %v5768_v46 = vpack.c.bf16 %v5058_v37, %v5057_v23  ;;  %v5056_v11 = vmax.f32 %v5008_v3, 0.0  ;;  %v4956_v17 = vadd.f32 %v4801_v1, %v4618_v7  ;;  %v5013_v12 = vadd.f32 %v9498_v34, %v4958_v42  ;;  %v9578_v7 = vpop.f32.mrf.mxu0  ;;  %v10243_v42 = vld [vmem:[#allocation124_spill] sm:$0xff] }
 0x419   : > { %v6714_v56 = vpop.f32.mrf.mxu1  ;;  %v4623_v1 = vadd.f32 %v9449_v49, %v10243_v42 }
 0x41a   : > { %5864 = vst [vmem:[%s9520_s14 + $0x28] sm:$0xff] %v5768_v46   ;;  %v5763_v50 = vpack.c.bf16 %v5056_v11, %v5055_v53  ;;  %v4959_v62 = vadd.f32 %v6714_v56, %v4621_v16  ;;  %v5011_v44 = vadd.f32 %v9498_v34, %v4956_v17  ;;  %v5061_v21 = vmax.f32 %v5013_v12, 0.0  ;;  %v9589_v11 = vpop.f32.mrf.mxu0  ;;  %v10244_v56 = vld [vmem:[#allocation103_spill] sm:$0xff] }
 0x41b   : > { %v4804_v58 = vpop.f32.mrf.mxu1  ;;  %v4628_v46 = vadd.f32 %v9457_v36, %v9380_v39 }
 0x41c   : > { %5863 = vst [vmem:[%s9520_s14 + $0x20] sm:$0xff] %v5763_v50   ;;  %v5014_v14 = vadd.f32 %v9498_v34, %v4959_v62  ;;  %v4957_v41 = vadd.f32 %v4804_v58, %v4619_v59  ;;  %v5059_v20 = vmax.f32 %v5011_v44, 0.0  ;;  %v4626_v50 = vadd.f32 %v9465_v35, %v10244_v56 }
 0x41d   : > { %v6717_v26 = vpop.f32.mrf.mxu1  ;;  %v4629_v58 = vadd.f32 %v9473_v40, %v9388_v52 }
 0x41e   : > { %v5062_v61 = vmax.f32 %v5014_v14, 0.0  ;;  %v5012_v4 = vadd.f32 %v9498_v34, %v4957_v41  ;;  %v4962_v9 = vadd.f32 %v6717_v26, %v4624_v60  ;;  %v9596_v41 = vpop.f32.mrf.mxu0 }
 0x41f   : > { %v4817_v18 = vpop.f32.mrf.mxu1 }
 0x420   : > { %v5778_v55 = vpack.c.bf16 %v5062_v61, %v5061_v21  ;;  %v5060_v48 = vmax.f32 %v5012_v4, 0.0  ;;  %v4960_v10 = vadd.f32 %v4817_v18, %v4622_v54  ;;  %v5017_v51 = vadd.f32 %v9498_v34, %v4962_v9  ;;  %v10245_v54 = vld [vmem:[#allocation7_spill] sm:$0xff]  ;;  %v9607_v18 = vpop.f32.mrf.mxu0 }
 0x421   : > { %v6718_v23 = vpop.f32.mrf.mxu1  ;;  %v4627_v21 = vadd.f32 %v9481_v45, %v10245_v54  ;;  %v4632_v9 = vadd.f32 %v9491_v15, %v9396_v22 }
 0x422   : > { %5866 = vst [vmem:[%s9520_s14 + $0x38] sm:$0xff] %v5778_v55   ;;  %v5773_v37 = vpack.c.bf16 %v5060_v48, %v5059_v20  ;;  %v4963_v3 = vadd.f32 %v6718_v23, %v4625_v8  ;;  %v5015_v53 = vadd.f32 %v9498_v34, %v4960_v10  ;;  %v5065_v12 = vmax.f32 %v5017_v51, 0.0  ;;  %v10246_v20 = vld [vmem:[#allocation113_spill] sm:$0xff]  ;;  %v10247_v51 = vld [vmem:[#allocation98_spill] sm:$0xff] }
 0x423   : > { %v4820_v16 = vpop.f32.mrf.mxu1  ;;  %v4630_v55 = vadd.f32 %v9502_v30, %v10246_v20 }
 0x424   : > { %5865 = vst [vmem:[%s9520_s14 + $0x30] sm:$0xff] %v5773_v37   ;;  %v5018_v19 = vadd.f32 %v9498_v34, %v4963_v3  ;;  %v4961_v13 = vadd.f32 %v4820_v16, %v4623_v1  ;;  %v5063_v44 = vmax.f32 %v5015_v53, 0.0  ;;  %v4633_v3 = vadd.f32 %v9512_v0, %v10247_v51  ;;  %v9614_v16 = vpop.f32.mrf.mxu0 }
 0x425   : > { %v6721_v17 = vpop.f32.mrf.mxu1 }
 0x426   : > { %v5066_v62 = vmax.f32 %v5018_v19, 0.0  ;;  %v5016_v49 = vadd.f32 %v9498_v34, %v4961_v13  ;;  %v4966_v57 = vadd.f32 %v6721_v17, %v4628_v46  ;;  %v10248_v46 = vld [vmem:[#allocation125_spill] sm:$0xff] }
 0x427   : > { %v4833_v59 = vpop.f32.mrf.mxu1  ;;  %v4631_v17 = vadd.f32 %v9524_v25, %v10248_v46 }
 0x428   : > { %v5788_v14 = vpack.c.bf16 %v5066_v62, %v5065_v12  ;;  %v5064_v39 = vmax.f32 %v5016_v49, 0.0  ;;  %v4964_v36 = vadd.f32 %v4833_v59, %v4626_v50  ;;  %v5021_v35 = vadd.f32 %v9498_v34, %v4966_v57  ;;  %v10249_v62 = vld [vmem:[#allocation18_spill] sm:$0xff]  ;;  %v6674_v57 = vpop.f32.mrf.mxu0 }
 0x429   : > { %v6722_v60 = vpop.f32.mrf.mxu1  ;;  %v4636_v49 = vadd.f32 %v9535_v31, %v10249_v62  ;;  %v4644_v62 = vadd.f32 %v9607_v18, %v9444_v43 }
 0x42a   : > { %5868 = vst [vmem:[%s9520_s14 + $0x48] sm:$0xff] %v5788_v14   ;;  %v5783_v26 = vpack.c.bf16 %v5064_v39, %v5063_v44  ;;  %v4967_v47 = vadd.f32 %v6722_v60, %v4629_v58  ;;  %v5019_v4 = vadd.f32 %v9498_v34, %v4964_v36  ;;  %v5069_v48 = vmax.f32 %v5021_v35, 0.0  ;;  %v10250_v58 = vld [vmem:[#allocation105_spill] sm:$0xff] }
 0x42b   : > { %v4836_v61 = vpop.f32.mrf.mxu1  ;;  %v4634_v44 = vadd.f32 %v9542_v28, %v10250_v58  ;;  %v10255_v58 = vld [vmem:[#allocation9_spill] sm:$0xff] }
 0x42c   : > { %5867 = vst [vmem:[%s9520_s14 + $0x40] sm:$0xff] %v5783_v26   ;;  %v5022_v52 = vadd.f32 %v9498_v34, %v4967_v47  ;;  %v4965_v40 = vadd.f32 %v4836_v61, %v4627_v21  ;;  %v5067_v42 = vmax.f32 %v5019_v4, 0.0  ;;  %v4637_v26 = vadd.f32 %v9553_v24, %v9420_v27  ;;  %v4562_v21 = vpop.f32.mrf.mxu0 }
 0x42d   : > { %v6725_v8 = vpop.f32.mrf.mxu1 }
 0x42e   : > { %v5070_v10 = vmax.f32 %v5022_v52, 0.0  ;;  %v5020_v45 = vadd.f32 %v9498_v34, %v4965_v40  ;;  %v4970_v23 = vadd.f32 %v6725_v8, %v4632_v9  ;;  %v10251_v40 = vld [vmem:[#allocation126_spill] sm:$0xff] }
 0x42f   : > { %v4849_v37 = vpop.f32.mrf.mxu1  ;;  %v4635_v9 = vadd.f32 %v9560_v5, %v10251_v40 }
 0x430   : > { %v5798_v1 = vpack.c.bf16 %v5070_v10, %v5069_v48  ;;  %v5068_v22 = vmax.f32 %v5020_v45, 0.0  ;;  %v4968_v15 = vadd.f32 %v4849_v37, %v4630_v55  ;;  %v5025_v30 = vadd.f32 %v9498_v34, %v4970_v23  ;;  %v10252_v55 = vld [vmem:[#allocation100_spill] sm:$0xff]  ;;  %v6677_v10 = vpop.f32.mrf.mxu0  ;;  %v10253_v23 = vld [vmem:[#allocation127_spill] sm:$0xff] }
 0x431   : > { %v6726_v53 = vpop.f32.mrf.mxu1  ;;  %v4640_v48 = vadd.f32 %v9571_v33, %v10252_v55  ;;  %v4638_v37 = vadd.f32 %v9578_v7, %v10253_v23 }
 0x432   : > { %5870 = vst [vmem:[%s9520_s14 + $0x58] sm:$0xff] %v5798_v1   ;;  %v5793_v19 = vpack.c.bf16 %v5068_v22, %v5067_v42  ;;  %v4971_v13 = vadd.f32 %v6726_v53, %v4633_v3  ;;  %v5023_v50 = vadd.f32 %v9498_v34, %v4968_v15  ;;  %v5073_v14 = vmax.f32 %v5025_v30, 0.0  ;;  %v4575_v30 = vpop.f32.mrf.mxu0 }
 0x433   : > { %v4852_v56 = vpop.f32.mrf.mxu1  ;;  %v4641_v22 = vadd.f32 %v9589_v11, %v9436_v63 }
 0x434   : > { %5869 = vst [vmem:[%s9520_s14 + $0x50] sm:$0xff] %v5793_v19   ;;  %v5026_v0 = vadd.f32 %v9498_v34, %v4971_v13  ;;  %v4969_v12 = vadd.f32 %v4852_v56, %v4631_v17  ;;  %v5071_v35 = vmax.f32 %v5023_v50, 0.0  ;;  %v10254_v56 = vld [vmem:[#allocation23_spill] sm:$0xff] }
 0x435   : > { %v6729_v59 = vpop.f32.mrf.mxu1  ;;  %v4639_v50 = vadd.f32 %v9596_v41, %v10254_v56 }
 0x436   : > { %v5074_v39 = vmax.f32 %v5026_v0, 0.0  ;;  %v5024_v25 = vadd.f32 %v9498_v34, %v4969_v12  ;;  %v4974_v36 = vadd.f32 %v6729_v59, %v4636_v49  ;;  %v6678_v49 = vpop.f32.mrf.mxu0 }
 0x437   : > { %v4865_v60 = vpop.f32.mrf.mxu1 }
 0x438   : > { %v5808_v47 = vpack.c.bf16 %v5074_v39, %v5073_v14  ;;  %v5072_v54 = vmax.f32 %v5024_v25, 0.0  ;;  %v4972_v31 = vadd.f32 %v4865_v60, %v4634_v44  ;;  %v5029_v28 = vadd.f32 %v9498_v34, %v4974_v36  ;;  %v4578_v43 = vpop.f32.mrf.mxu0 }
 0x439   : > { %v6730_v61 = vpop.f32.mrf.mxu1  ;;  %v4642_v44 = vadd.f32 %v9614_v16, %v10255_v58  ;;  %v4645_v60 = vadd.f32 %v6674_v57, %v9452_v6  ;;  %v4648_v57 = vadd.f32 %v6677_v10, %v9460_v2 }
 0x43a   : > { %5872 = vst [vmem:[%s9520_s14 + $0x68] sm:$0xff] %v5808_v47   ;;  %v5803_v4 = vpack.c.bf16 %v5072_v54, %v5071_v35  ;;  %v4975_v52 = vadd.f32 %v6730_v61, %v4637_v26  ;;  %v5027_v20 = vadd.f32 %v9498_v34, %v4972_v31  ;;  %v5077_v51 = vmax.f32 %v5029_v28, 0.0 }
 0x43b   : > { %v4868_v8 = vpop.f32.mrf.mxu1 }
 0x43c   : > { %5871 = vst [vmem:[%s9520_s14 + $0x60] sm:$0xff] %v5803_v4   ;;  %v5030_v27 = vadd.f32 %v9498_v34, %v4975_v52  ;;  %v4973_v24 = vadd.f32 %v4868_v8, %v4635_v9  ;;  %v5075_v15 = vmax.f32 %v5027_v20, 0.0  ;;  %v10256_v4 = vld [vmem:[#allocation27_spill] sm:$0xff]  ;;  %v6681_v8 = vpop.f32.mrf.mxu0 }
 0x43d   : > { %v6733_v45 = vpop.f32.mrf.mxu1  ;;  %v4643_v28 = vadd.f32 %v4562_v21, %v10256_v4 }
 0x43e   : > { %v5078_v3 = vmax.f32 %v5030_v27, 0.0  ;;  %v5028_v5 = vadd.f32 %v9498_v34, %v4973_v24  ;;  %v4978_v42 = vadd.f32 %v6733_v45, %v4640_v48  ;;  %v10257_v27 = vld [vmem:[#allocation3_spill] sm:$0xff] }
 0x43f   : > { %v4881_v1 = vpop.f32.mrf.mxu1  ;;  %v4646_v24 = vadd.f32 %v4575_v30, %v10257_v27 }
 0x440   : > { %v5818_v53 = vpack.c.bf16 %v5078_v3, %v5077_v51  ;;  %v5076_v19 = vmax.f32 %v5028_v5, 0.0  ;;  %v4976_v33 = vadd.f32 %v4881_v1, %v4638_v37  ;;  %v5033_v7 = vadd.f32 %v9498_v34, %v4978_v42  ;;  %v4591_v1 = vpop.f32.mrf.mxu0 }
 0x441   : > { %v6734_v13 = vpop.f32.mrf.mxu1  ;;  %v4649_v37 = vadd.f32 %v6678_v49, %v9468_v32  ;;  %v4650_v56 = vadd.f32 %v4591_v1, %v9479_v38 }
 0x442   : > { %5874 = vst [vmem:[%s9520_s14 + $0x78] sm:$0xff] %v5818_v53   ;;  %v5813_v46 = vpack.c.bf16 %v5076_v19, %v5075_v15  ;;  %v4979_v17 = vadd.f32 %v6734_v13, %v4641_v22  ;;  %v5031_v12 = vadd.f32 %v9498_v34, %v4976_v33  ;;  %v5081_v14 = vmax.f32 %v5033_v7, 0.0  ;;  %v10258_v13 = vld [vmem:[#allocation11_spill] sm:$0xff]  ;;  %v6682_v7 = vpop.f32.mrf.mxu0 }
 0x443   : > { %v4884_v0 = vpop.f32.mrf.mxu1  ;;  %v4647_v53 = vadd.f32 %v4578_v43, %v9471_v29 }
 0x444   : > { %5873 = vst [vmem:[%s9520_s14 + $0x70] sm:$0xff] %v5813_v46   ;;  %v5034_v63 = vadd.f32 %v9498_v34, %v4979_v17  ;;  %v4977_v11 = vadd.f32 %v4884_v0, %v4639_v50  ;;  %v5079_v26 = vmax.f32 %v5031_v12, 0.0  ;;  %v4652_v46 = vadd.f32 %v6681_v8, %v10258_v13 }
 0x445   : > { %v6737_v59 = vpop.f32.mrf.mxu1 }
 0x446   : > { %v5082_v39 = vmax.f32 %v5034_v63, 0.0  ;;  %v5032_v41 = vadd.f32 %v9498_v34, %v4977_v11  ;;  %v4982_v25 = vadd.f32 %v6737_v59, %v4644_v62  ;;  %v10259_v11 = vld [vmem:[#allocation31_spill] sm:$0xff] }
 0x447   : > { %v4897_v36 = vpop.f32.mrf.mxu1  ;;  %v4653_v62 = vadd.f32 %v6682_v7, %v10259_v11 }
 0x448   : > { %v5828_v35 = vpack.c.bf16 %v5082_v39, %v5081_v14  ;;  %v5080_v47 = vmax.f32 %v5032_v41, 0.0  ;;  %v4980_v54 = vadd.f32 %v4897_v36, %v4642_v44  ;;  %v5037_v61 = vadd.f32 %v9498_v34, %v4982_v25  ;;  %v4594_v14 = vpop.f32.mrf.mxu0  ;;  %v10260_v36 = vld [vmem:[#allocation6_spill] sm:$0xff] }
 0x449   : > { %v6738_v18 = vpop.f32.mrf.mxu1 }
 0x44a   : > { %5876 = vst [vmem:[%s9520_s14 + $0x88] sm:$0xff] %v5828_v35   ;;  %v5823_v31 = vpack.c.bf16 %v5080_v47, %v5079_v26  ;;  %v4983_v16 = vadd.f32 %v6738_v18, %v4645_v60  ;;  %v5035_v40 = vadd.f32 %v9498_v34, %v4980_v54  ;;  %v5085_v55 = vmax.f32 %v5037_v61, 0.0 }
 0x44b   : > { %v4900_v52 = vpop.f32.mrf.mxu1  ;;  %v4651_v60 = vadd.f32 %v4594_v14, %v10260_v36 }
 0x44c   : > { %5875 = vst [vmem:[%s9520_s14 + $0x80] sm:$0xff] %v5823_v31   ;;  %v5038_v9 = vadd.f32 %v9498_v34, %v4983_v16  ;;  %v4981_v6 = vadd.f32 %v4900_v52, %v4643_v28  ;;  %v5083_v51 = vmax.f32 %v5035_v40, 0.0 }
 0x44d   : > { %v6741_v20 = vpop.f32.mrf.mxu1 }
 0x44e   : > { %v5086_v48 = vmax.f32 %v5038_v9, 0.0  ;;  %v5036_v45 = vadd.f32 %v9498_v34, %v4981_v6  ;;  %v4986_v21 = vadd.f32 %v6741_v20, %v4648_v57 }
 0x44f   : > { %v4913_v23 = vpop.f32.mrf.mxu1 }
 0x450   : > { %v5838_v3 = vpack.c.bf16 %v5086_v48, %v5085_v55  ;;  %v5084_v5 = vmax.f32 %v5036_v45, 0.0  ;;  %v4984_v42 = vadd.f32 %v4913_v23, %v4646_v24  ;;  %v5041_v22 = vadd.f32 %v9498_v34, %v4986_v21 }
 0x451   : > { %v6742_v2 = vpop.f32.mrf.mxu1 }
 0x452   : > { %5878 = vst [vmem:[%s9520_s14 + $0x98] sm:$0xff] %v5838_v3   ;;  %v5833_v10 = vpack.c.bf16 %v5084_v5, %v5083_v51  ;;  %v4987_v15 = vadd.f32 %v6742_v2, %v4649_v37  ;;  %v5039_v33 = vadd.f32 %v9498_v34, %v4984_v42  ;;  %v5089_v50 = vmax.f32 %v5041_v22, 0.0 }
 0x453   : > { %v4916_v19 = vpop.f32.mrf.mxu1 }
 0x454   : > { %5877 = vst [vmem:[%s9520_s14 + $0x90] sm:$0xff] %v5833_v10   ;;  %v5042_v30 = vadd.f32 %v9498_v34, %v4987_v15  ;;  %v4985_v32 = vadd.f32 %v4916_v19, %v4647_v53  ;;  %v5087_v49 = vmax.f32 %v5039_v33, 0.0 }
 0x455   : > { %v6745_v17 = vpop.f32.mrf.mxu1 }
 0x456   : > { %v5090_v0 = vmax.f32 %v5042_v30, 0.0  ;;  %v5040_v12 = vadd.f32 %v9498_v34, %v4985_v32  ;;  %v4990_v29 = vadd.f32 %v6745_v17, %v4652_v46 }
 0x457   : > { %v4929_v63 = vpop.f32.mrf.mxu1 }
 0x458   : > { %v5848_v59 = vpack.c.bf16 %v5090_v0, %v5089_v50  ;;  %v5088_v58 = vmax.f32 %v5040_v12, 0.0  ;;  %v4988_v44 = vadd.f32 %v4929_v63, %v4650_v56  ;;  %v5045_v38 = vadd.f32 %v9498_v34, %v4990_v29 }
 0x459   : > { %v6746_v39 = vpop.f32.mrf.mxu1 }
 0x45a   : > { %5880 = vst [vmem:[%s9520_s14 + $0xa8] sm:$0xff] %v5848_v59   ;;  %v5843_v41 = vpack.c.bf16 %v5088_v58, %v5087_v49  ;;  %v4991_v25 = vadd.f32 %v6746_v39, %v4653_v62  ;;  %v5043_v35 = vadd.f32 %v9498_v34, %v4988_v44  ;;  %v5093_v43 = vmax.f32 %v5045_v38, 0.0 }
 0x45b   : > { %v4932_v26 = vpop.f32.mrf.mxu1 }
 0x45c   : > { %5879 = vst [vmem:[%s9520_s14 + $0xa0] sm:$0xff] %v5843_v41   ;;  %v5046_v47 = vadd.f32 %v9498_v34, %v4991_v25  ;;  %v4989_v54 = vadd.f32 %v4932_v26, %v4651_v60  ;;  %v5091_v61 = vmax.f32 %v5043_v35, 0.0 }
 0x45e   : > { %v5094_v18 = vmax.f32 %v5046_v47, 0.0  ;;  %v5044_v31 = vadd.f32 %v9498_v34, %v4989_v54 }
 0x460   : > { %v5858_v16 = vpack.c.bf16 %v5094_v18, %v5093_v43  ;;  %v5092_v4 = vmax.f32 %v5044_v31, 0.0 }
 0x462   : > { %5882 = vst [vmem:[%s9520_s14 + $0xb8] sm:$0xff] %v5858_v16   ;;  %v5853_v28 = vpack.c.bf16 %v5092_v4, %v5091_v61 }
 0x464   : > { %5881 = vst [vmem:[%s9520_s14 + $0xb0] sm:$0xff] %v5853_v28  }
 0x465 PF: > { %s16_s21 = sadd.s32 1, %s6906_s21  }
 0x466   : > { %p13_p4 = scmp.ge.s32.totalorder %s16_s21, 4  }
 0x468   :  { %15 = sbr.rel (!%p13_p4) target bundleno = 1 (0x1), region = 82 }

</bundles_post_ra>
